<compile_context>
chip_gen: v6e
topology: v6e:2x2x1
jax: 0.10.0
libtpu: 0.0.40
codegen_flags: <defaults>
</compile_context>

<pallas_src>
import math

import numpy as np
import jax
import jax.numpy as jnp
from jax.experimental import pallas as pl
from jax.experimental.pallas import tpu as pltpu

# ----------------------------- problem sizes -----------------------------
DIM = 32                 # input / output feature dim
H = 4                    # number of heads
D_MODEL = 32             # model dim
DK = D_MODEL // H        # 8
PROJ = H * D_MODEL       # 128 lanes per packed q/k/v segment (lane-dense)
SCALE = 1.0 / math.sqrt(DK)

B = 1024                 # nbatches (rows); independent rows -> tile freely
ROW_TILE = 256           # rows per grid step (>= 256 per review)


# ------------------------------- kernel ----------------------------------
def mha_kernel(x_ref, w_ref, b_ref, s_ref, e_ref, wo_ref, bo_ref, out_ref):
    x = x_ref[...]                                                # (R, DIM)

    # Fused projection: one MXU matmul + one bias add emits
    #   [ q_tiled | k_bcast | v_bcast ]  at 128-lane-aligned segments.
    # (1/sqrt(d_k) is folded into the q columns at pack time.)
    qkv = jnp.dot(x, w_ref[...],
                  preferred_element_type=jnp.float32) + b_ref[...]  # (R, 3*PROJ)
    q_t = qkv[:, 0:PROJ]            # q_t[b, g*32 + h*8 + d] = q_s[b, h*8 + d]
    k_b = qkv[:, PROJ:2 * PROJ]     # k_b[b, g*32 + h*8 + d] = k  [b, g*8 + d]
    v_b = qkv[:, 2 * PROJ:3 * PROJ]  # v_b same broadcast layout as k_b

    # prod[b, g*32+h*8+d] = q_s[b,h,d] * k[b,g,d]; per-key-head scores are
    # segment sums over d, done as tiny constant matmuls (no slicing/reshape).
    prod = q_t * k_b                                              # (R, 128)
    s = [jnp.dot(prod, s_ref[g], preferred_element_type=jnp.float32)
         for g in range(H)]                                       # H x (R, H)

    # Softmax over key-heads g, elementwise across the H small arrays.
    m = s[0]
    for g in range(1, H):
        m = jnp.maximum(m, s[g])
    e = [jnp.exp(s[g] - m) for g in range(H)]
    denom = e[0]
    for g in range(1, H):
        denom = denom + e[g]
    inv = pl.reciprocal(denom, approx=True)                       # (R, H)

    # Expand normalized probs back into the (g, h, d) lane layout and weight v.
    p_exp = jnp.dot(e[0] * inv, e_ref[0], preferred_element_type=jnp.float32)
    for g in range(1, H):
        p_exp = p_exp + jnp.dot(e[g] * inv, e_ref[g],
                                preferred_element_type=jnp.float32)  # (R, 128)
    z = p_exp * v_b                                               # (R, 128)

    # Output projection; head-merge permutation is folded into wo_big, output
    # is padded to 128 lanes -> single unmasked lane-dense store.
    out = jnp.dot(z, wo_ref[...],
                  preferred_element_type=jnp.float32) + bo_ref[...]
    out_ref[...] = out.astype(out_ref.dtype)
    # nn.Dropout(p=0.0) is an identity -> nothing to apply.


# --------------------------- parameter packing -----------------------------
def pack_params(params):
    """Static one-time transform of the PyTorch Linear weights.

    Folds: 1/sqrt(d_k) into Wq, the head split/broadcast into the fused
    projection, the head merge into the output projection, and pads the
    output projection to 128 lanes.
    """
    wq, bq, wk, bk, wv, bv, wo, bo = (np.asarray(p, np.float32) for p in params)
    wq = wq * SCALE
    bq = bq * SCALE

    # Lane layout inside each 128-lane block: lane = g*D_MODEL + h*DK + d
    lane = np.arange(PROJ)
    g = lane // D_MODEL
    hd = lane % D_MODEL            # = h*DK + d
    h = hd // DK
    d = hd % DK
    q_cols = hd                    # q tiled per key-head block g
    kv_cols = g * DK + d           # k/v: key-head g broadcast over query heads

    w_big = np.concatenate([wq[:, q_cols], wk[:, kv_cols], wv[:, kv_cols]],
                           axis=1)                           # (DIM, 3*PROJ)
    b_big = np.concatenate([bq[:, q_cols], bk[:, kv_cols], bv[:, kv_cols]],
                           axis=1)                           # (1, 3*PROJ)

    # S_g[l, h'] = 1 iff lane l sits in key-head block g with query head h'.
    s_mats = np.zeros((H, PROJ, H), np.float32)
    s_mats[g, lane, h] = 1.0                                 # (H, 128, H)
    e_mats = np.ascontiguousarray(np.transpose(s_mats, (0, 2, 1)))  # (H, H, 128)

    # Head-merge folded into output projection, padded to 128 output lanes.
    wo_big = np.zeros((PROJ, PROJ), np.float32)
    wo_big[:, :DIM] = wo[hd, :]                              # (128, 128)
    bo_big = np.zeros((1, PROJ), np.float32)
    bo_big[:, :DIM] = bo

    to = lambda a: jnp.asarray(a, jnp.float32)
    return (to(w_big), to(b_big), to(s_mats), to(e_mats), to(wo_big), to(bo_big))


# ------------------------------- wrapper ----------------------------------
def multi_headed_attention(x, packed_params):
    """x: (nbatches, DIM) f32 -> (nbatches, DIM) f32."""
    w_big, b_big, s_mats, e_mats, wo_big, bo_big = packed_params
    n = x.shape[0]
    assert n % ROW_TILE == 0, "row count must be a multiple of ROW_TILE"
    grid = (n // ROW_TILE,)

    res2 = lambda i: (0, 0)       # resident weights / constants
    res3 = lambda i: (0, 0, 0)

    out_pad = pl.pallas_call(
        mha_kernel,
        out_shape=jax.ShapeDtypeStruct((n, PROJ), jnp.float32),
        grid=grid,
        in_specs=[
            pl.BlockSpec((ROW_TILE, DIM), lambda i: (i, 0)),   # x row tile
            pl.BlockSpec((DIM, 3 * PROJ), res2),               # fused proj W
            pl.BlockSpec((1, 3 * PROJ), res2),                 # fused proj b
            pl.BlockSpec((H, PROJ, H), res3),                  # score seg-sums
            pl.BlockSpec((H, H, PROJ), res3),                  # prob expansion
            pl.BlockSpec((PROJ, PROJ), res2),                  # out proj (padded)
            pl.BlockSpec((1, PROJ), res2),                     # out bias (padded)
        ],
        out_specs=pl.BlockSpec((ROW_TILE, PROJ), lambda i: (i, 0)),
        compiler_params=pltpu.CompilerParams(
            dimension_semantics=("parallel",),       # shards row tiles on v7x
            vmem_limit_bytes=32 * 1024 * 1024,       # explicit (v7x-safe)
        ),
    )(x, w_big, b_big, s_mats, e_mats, wo_big, bo_big)

    return out_pad[:, :DIM]   # drop the lane padding outside the kernel


# --------------------------- pure-JAX reference ----------------------------
def reference_forward(x, params):
    wq, bq, wk, bk, wv, bv, wo, bo = params
    n = x.shape[0]
    q = (x @ wq + bq).reshape(n, H, DK)
    k = (x @ wk + bk).reshape(n, H, DK)
    v = (x @ wv + bv).reshape(n, H, DK)
    scores = jnp.einsum("bhd,bgd->bhg", q, k) * SCALE
    p = jax.nn.softmax(scores, axis=-1)
    o = jnp.einsum("bhg,bgd->bhd", p, v).reshape(n, D_MODEL)
    return o @ wo + bo


# ----------------------- deterministic parameter init ----------------------
def init_params(key):
    ks = jax.random.split(key, 8)
    bound_in = 1.0 / math.sqrt(DIM)
    bound_dm = 1.0 / math.sqrt(D_MODEL)
    # nn.Linear(dim, d_model).weight is (d_model, dim); store transposed.
    wq = jax.random.uniform(ks[0], (DIM, D_MODEL), jnp.float32, -bound_in, bound_in)
    bq = jax.random.uniform(ks[1], (1, D_MODEL), jnp.float32, -bound_in, bound_in)
    wk = jax.random.uniform(ks[2], (DIM, D_MODEL), jnp.float32, -bound_in, bound_in)
    bk = jax.random.uniform(ks[3], (1, D_MODEL), jnp.float32, -bound_in, bound_in)
    wv = jax.random.uniform(ks[4], (DIM, D_MODEL), jnp.float32, -bound_in, bound_in)
    bv = jax.random.uniform(ks[5], (1, D_MODEL), jnp.float32, -bound_in, bound_in)
    wo = jax.random.uniform(ks[6], (D_MODEL, DIM), jnp.float32, -bound_dm, bound_dm)
    bo = jax.random.uniform(ks[7], (1, DIM), jnp.float32, -bound_dm, bound_dm)
    return (wq, bq, wk, bk, wv, bv, wo, bo)


if __name__ == "__main__":
    key = jax.random.PRNGKey(0)
    k_x, k_p = jax.random.split(key)
    x = jax.random.normal(k_x, (B, DIM), jnp.float32)
    params = init_params(k_p)
    packed = pack_params(params)          # static one-time weight transform

    out = multi_headed_attention(x, packed)
    out = jax.block_until_ready(out)

    ref = reference_forward(x, params)
    assert out.shape == (B, DIM)
    err = jnp.max(jnp.abs(out - ref))
    assert jnp.allclose(out, ref, atol=2e-3, rtol=2e-3), f"max abs err {err}"
    print("KERNEL_OK")
</pallas_src>

<mosaic_0001>
module attributes {stable_mosaic.version = 11 : i64} {
  func.func @mha_kernel(%arg0: i32, %arg1: memref<256x32xf32, #tpu.memory_space<vmem>>, %arg2: memref<32x384xf32, #tpu.memory_space<vmem>>, %arg3: memref<1x384xf32, #tpu.memory_space<vmem>>, %arg4: memref<4x128x4xf32, #tpu.memory_space<vmem>>, %arg5: memref<4x4x128xf32, #tpu.memory_space<vmem>>, %arg6: memref<128x128xf32, #tpu.memory_space<vmem>>, %arg7: memref<1x128xf32, #tpu.memory_space<vmem>>, %arg8: memref<256x128xf32, #tpu.memory_space<vmem>>) attributes {dimension_semantics = [#tpu.dimension_semantics<parallel>], iteration_bounds = array<i64: 4>, scalar_prefetch = 0 : i64, scratch_operands = 0 : i64, tpu.core_type = #tpu.core_type<tc>, window_params = [{transform_indices = @transform_0, window_bounds = array<i64: 256, 32>}, {pipeline_mode = #tpu.pipeline_mode<synchronous>, transform_indices = @transform_1, window_bounds = array<i64: 32, 384>}, {pipeline_mode = #tpu.pipeline_mode<synchronous>, transform_indices = @transform_2, window_bounds = array<i64: 1, 384>}, {pipeline_mode = #tpu.pipeline_mode<synchronous>, transform_indices = @transform_3, window_bounds = array<i64: 4, 128, 4>}, {pipeline_mode = #tpu.pipeline_mode<synchronous>, transform_indices = @transform_4, window_bounds = array<i64: 4, 4, 128>}, {pipeline_mode = #tpu.pipeline_mode<synchronous>, transform_indices = @transform_5, window_bounds = array<i64: 128, 128>}, {pipeline_mode = #tpu.pipeline_mode<synchronous>, transform_indices = @transform_6, window_bounds = array<i64: 1, 128>}, {transform_indices = @transform_7, window_bounds = array<i64: 256, 128>}]} {
    %c0 = arith.constant 0 : index
    %c0_0 = arith.constant 0 : index
    %0 = vector.load %arg1[%c0, %c0_0] : memref<256x32xf32, #tpu.memory_space<vmem>>, vector<256x32xf32>
    %c0_1 = arith.constant 0 : index
    %c0_2 = arith.constant 0 : index
    %1 = vector.load %arg2[%c0_1, %c0_2] : memref<32x384xf32, #tpu.memory_space<vmem>>, vector<32x384xf32>
    %cst = arith.constant dense<0.000000e+00> : vector<256x384xf32>
    %2 = tpu.matmul %0, %1, %cst {dimension_numbers = #tpu.dot_dimension_numbers<[1], [0], [0], [1], [0, 0, 1, 1], [], []>} : vector<256x32xf32>, vector<32x384xf32>, vector<256x384xf32> -> vector<256x384xf32>
    %c0_3 = arith.constant 0 : index
    %c0_4 = arith.constant 0 : index
    %3 = vector.load %arg3[%c0_3, %c0_4] : memref<1x384xf32, #tpu.memory_space<vmem>>, vector<1x384xf32>
    %4 = vector.broadcast %3 : vector<1x384xf32> to vector<256x384xf32>
    %5 = arith.addf %2, %4 : vector<256x384xf32>
    %6 = vector.extract_strided_slice %5 {offsets = [0, 0], sizes = [256, 128], strides = [1, 1]} : vector<256x384xf32> to vector<256x128xf32>
    %7 = vector.extract_strided_slice %5 {offsets = [0, 128], sizes = [256, 128], strides = [1, 1]} : vector<256x384xf32> to vector<256x128xf32>
    %8 = vector.extract_strided_slice %5 {offsets = [0, 256], sizes = [256, 128], strides = [1, 1]} : vector<256x384xf32> to vector<256x128xf32>
    %9 = arith.mulf %6, %7 : vector<256x128xf32>
    %c0_5 = arith.constant 0 : index
    %c0_6 = arith.constant 0 : index
    %c0_7 = arith.constant 0 : index
    %10 = vector.load %arg4[%c0_5, %c0_6, %c0_7] : memref<4x128x4xf32, #tpu.memory_space<vmem>>, vector<1x128x4xf32>
    %11 = vector.shape_cast %10 : vector<1x128x4xf32> to vector<128x4xf32>
    %cst_8 = arith.constant dense<0.000000e+00> : vector<256x4xf32>
    %12 = tpu.matmul %9, %11, %cst_8 {dimension_numbers = #tpu.dot_dimension_numbers<[1], [0], [0], [1], [0, 0, 1, 1], [], []>} : vector<256x128xf32>, vector<128x4xf32>, vector<256x4xf32> -> vector<256x4xf32>
    %c1 = arith.constant 1 : index
    %c0_9 = arith.constant 0 : index
    %c0_10 = arith.constant 0 : index
    %13 = vector.load %arg4[%c1, %c0_9, %c0_10] : memref<4x128x4xf32, #tpu.memory_space<vmem>>, vector<1x128x4xf32>
    %14 = vector.shape_cast %13 : vector<1x128x4xf32> to vector<128x4xf32>
    %cst_11 = arith.constant dense<0.000000e+00> : vector<256x4xf32>
    %15 = tpu.matmul %9, %14, %cst_11 {dimension_numbers = #tpu.dot_dimension_numbers<[1], [0], [0], [1], [0, 0, 1, 1], [], []>} : vector<256x128xf32>, vector<128x4xf32>, vector<256x4xf32> -> vector<256x4xf32>
    %c2 = arith.constant 2 : index
    %c0_12 = arith.constant 0 : index
    %c0_13 = arith.constant 0 : index
    %16 = vector.load %arg4[%c2, %c0_12, %c0_13] : memref<4x128x4xf32, #tpu.memory_space<vmem>>, vector<1x128x4xf32>
    %17 = vector.shape_cast %16 : vector<1x128x4xf32> to vector<128x4xf32>
    %cst_14 = arith.constant dense<0.000000e+00> : vector<256x4xf32>
    %18 = tpu.matmul %9, %17, %cst_14 {dimension_numbers = #tpu.dot_dimension_numbers<[1], [0], [0], [1], [0, 0, 1, 1], [], []>} : vector<256x128xf32>, vector<128x4xf32>, vector<256x4xf32> -> vector<256x4xf32>
    %c3 = arith.constant 3 : index
    %c0_15 = arith.constant 0 : index
    %c0_16 = arith.constant 0 : index
    %19 = vector.load %arg4[%c3, %c0_15, %c0_16] : memref<4x128x4xf32, #tpu.memory_space<vmem>>, vector<1x128x4xf32>
    %20 = vector.shape_cast %19 : vector<1x128x4xf32> to vector<128x4xf32>
    %cst_17 = arith.constant dense<0.000000e+00> : vector<256x4xf32>
    %21 = tpu.matmul %9, %20, %cst_17 {dimension_numbers = #tpu.dot_dimension_numbers<[1], [0], [0], [1], [0, 0, 1, 1], [], []>} : vector<256x128xf32>, vector<128x4xf32>, vector<256x4xf32> -> vector<256x4xf32>
    %22 = arith.maximumf %12, %15 : vector<256x4xf32>
    %23 = arith.maximumf %22, %18 : vector<256x4xf32>
    %24 = arith.maximumf %23, %21 : vector<256x4xf32>
    %25 = arith.subf %12, %24 : vector<256x4xf32>
    %26 = math.exp %25 : vector<256x4xf32>
    %27 = arith.subf %15, %24 : vector<256x4xf32>
    %28 = math.exp %27 : vector<256x4xf32>
    %29 = arith.subf %18, %24 : vector<256x4xf32>
    %30 = math.exp %29 : vector<256x4xf32>
    %31 = arith.subf %21, %24 : vector<256x4xf32>
    %32 = math.exp %31 : vector<256x4xf32>
    %33 = arith.addf %26, %28 : vector<256x4xf32>
    %34 = arith.addf %33, %30 : vector<256x4xf32>
    %35 = arith.addf %34, %32 : vector<256x4xf32>
    %36 = tpu.reciprocal %35 {approx = true} : vector<256x4xf32> -> vector<256x4xf32>
    %37 = arith.mulf %26, %36 : vector<256x4xf32>
    %c0_18 = arith.constant 0 : index
    %c0_19 = arith.constant 0 : index
    %c0_20 = arith.constant 0 : index
    %38 = vector.load %arg5[%c0_18, %c0_19, %c0_20] : memref<4x4x128xf32, #tpu.memory_space<vmem>>, vector<1x4x128xf32>
    %39 = vector.shape_cast %38 : vector<1x4x128xf32> to vector<4x128xf32>
    %cst_21 = arith.constant dense<0.000000e+00> : vector<256x128xf32>
    %40 = tpu.matmul %37, %39, %cst_21 {dimension_numbers = #tpu.dot_dimension_numbers<[1], [0], [0], [1], [0, 0, 1, 1], [], []>} : vector<256x4xf32>, vector<4x128xf32>, vector<256x128xf32> -> vector<256x128xf32>
    %41 = arith.mulf %28, %36 : vector<256x4xf32>
    %c1_22 = arith.constant 1 : index
    %c0_23 = arith.constant 0 : index
    %c0_24 = arith.constant 0 : index
    %42 = vector.load %arg5[%c1_22, %c0_23, %c0_24] : memref<4x4x128xf32, #tpu.memory_space<vmem>>, vector<1x4x128xf32>
    %43 = vector.shape_cast %42 : vector<1x4x128xf32> to vector<4x128xf32>
    %cst_25 = arith.constant dense<0.000000e+00> : vector<256x128xf32>
    %44 = tpu.matmul %41, %43, %cst_25 {dimension_numbers = #tpu.dot_dimension_numbers<[1], [0], [0], [1], [0, 0, 1, 1], [], []>} : vector<256x4xf32>, vector<4x128xf32>, vector<256x128xf32> -> vector<256x128xf32>
    %45 = arith.addf %40, %44 : vector<256x128xf32>
    %46 = arith.mulf %30, %36 : vector<256x4xf32>
    %c2_26 = arith.constant 2 : index
    %c0_27 = arith.constant 0 : index
    %c0_28 = arith.constant 0 : index
    %47 = vector.load %arg5[%c2_26, %c0_27, %c0_28] : memref<4x4x128xf32, #tpu.memory_space<vmem>>, vector<1x4x128xf32>
    %48 = vector.shape_cast %47 : vector<1x4x128xf32> to vector<4x128xf32>
    %cst_29 = arith.constant dense<0.000000e+00> : vector<256x128xf32>
    %49 = tpu.matmul %46, %48, %cst_29 {dimension_numbers = #tpu.dot_dimension_numbers<[1], [0], [0], [1], [0, 0, 1, 1], [], []>} : vector<256x4xf32>, vector<4x128xf32>, vector<256x128xf32> -> vector<256x128xf32>
    %50 = arith.addf %45, %49 : vector<256x128xf32>
    %51 = arith.mulf %32, %36 : vector<256x4xf32>
    %c3_30 = arith.constant 3 : index
    %c0_31 = arith.constant 0 : index
    %c0_32 = arith.constant 0 : index
    %52 = vector.load %arg5[%c3_30, %c0_31, %c0_32] : memref<4x4x128xf32, #tpu.memory_space<vmem>>, vector<1x4x128xf32>
    %53 = vector.shape_cast %52 : vector<1x4x128xf32> to vector<4x128xf32>
    %cst_33 = arith.constant dense<0.000000e+00> : vector<256x128xf32>
    %54 = tpu.matmul %51, %53, %cst_33 {dimension_numbers = #tpu.dot_dimension_numbers<[1], [0], [0], [1], [0, 0, 1, 1], [], []>} : vector<256x4xf32>, vector<4x128xf32>, vector<256x128xf32> -> vector<256x128xf32>
    %55 = arith.addf %50, %54 : vector<256x128xf32>
    %56 = arith.mulf %55, %8 : vector<256x128xf32>
    %c0_34 = arith.constant 0 : index
    %c0_35 = arith.constant 0 : index
    %57 = vector.load %arg6[%c0_34, %c0_35] : memref<128x128xf32, #tpu.memory_space<vmem>>, vector<128x128xf32>
    %cst_36 = arith.constant dense<0.000000e+00> : vector<256x128xf32>
    %58 = tpu.matmul %56, %57, %cst_36 {dimension_numbers = #tpu.dot_dimension_numbers<[1], [0], [0], [1], [0, 0, 1, 1], [], []>} : vector<256x128xf32>, vector<128x128xf32>, vector<256x128xf32> -> vector<256x128xf32>
    %c0_37 = arith.constant 0 : index
    %c0_38 = arith.constant 0 : index
    %59 = vector.load %arg7[%c0_37, %c0_38] : memref<1x128xf32, #tpu.memory_space<vmem>>, vector<1x128xf32>
    %60 = vector.broadcast %59 : vector<1x128xf32> to vector<256x128xf32>
    %61 = arith.addf %58, %60 : vector<256x128xf32>
    %c0_39 = arith.constant 0 : index
    %c0_40 = arith.constant 0 : index
    %62 = vector.load %arg8[%c0_39, %c0_40] : memref<256x128xf32, #tpu.memory_space<vmem>>, vector<256x128xf32>
    tpu.vector_store %arg8[%c0_39, %c0_40], %61 {strides = array<i32>} : memref<256x128xf32, #tpu.memory_space<vmem>>, vector<256x128xf32>,
    return
  }
  func.func @transform_0(%arg0: i32) -> (i32, i32) {
    %c0_i32 = arith.constant 0 : i32
    %c0_i32_0 = arith.constant 0 : i32
    return %arg0, %c0_i32 : i32, i32
  }
  func.func @transform_1(%arg0: i32) -> (i32, i32) {
    %c0_i32 = arith.constant 0 : i32
    %c0_i32_0 = arith.constant 0 : i32
    %c0_i32_1 = arith.constant 0 : i32
    return %c0_i32, %c0_i32_0 : i32, i32
  }
  func.func @transform_2(%arg0: i32) -> (i32, i32) {
    %c0_i32 = arith.constant 0 : i32
    %c0_i32_0 = arith.constant 0 : i32
    %c0_i32_1 = arith.constant 0 : i32
    return %c0_i32, %c0_i32_0 : i32, i32
  }
  func.func @transform_3(%arg0: i32) -> (i32, i32, i32) {
    %c0_i32 = arith.constant 0 : i32
    %c0_i32_0 = arith.constant 0 : i32
    %c0_i32_1 = arith.constant 0 : i32
    %c0_i32_2 = arith.constant 0 : i32
    return %c0_i32, %c0_i32_0, %c0_i32_1 : i32, i32, i32
  }
  func.func @transform_4(%arg0: i32) -> (i32, i32, i32) {
    %c0_i32 = arith.constant 0 : i32
    %c0_i32_0 = arith.constant 0 : i32
    %c0_i32_1 = arith.constant 0 : i32
    %c0_i32_2 = arith.constant 0 : i32
    return %c0_i32, %c0_i32_0, %c0_i32_1 : i32, i32, i32
  }
  func.func @transform_5(%arg0: i32) -> (i32, i32) {
    %c0_i32 = arith.constant 0 : i32
    %c0_i32_0 = arith.constant 0 : i32
    %c0_i32_1 = arith.constant 0 : i32
    return %c0_i32, %c0_i32_0 : i32, i32
  }
  func.func @transform_6(%arg0: i32) -> (i32, i32) {
    %c0_i32 = arith.constant 0 : i32
    %c0_i32_0 = arith.constant 0 : i32
    %c0_i32_1 = arith.constant 0 : i32
    return %c0_i32, %c0_i32_0 : i32, i32
  }
  func.func @transform_7(%arg0: i32) -> (i32, i32) {
    %c0_i32 = arith.constant 0 : i32
    %c0_i32_0 = arith.constant 0 : i32
    return %arg0, %c0_i32 : i32, i32
  }
}

</mosaic_0001>

<bundles_post_ra>
// kernel: tpu_custom_call.1
= control target key start
LH: loop header
LB: loop body
LE: loop exit
PB: predicated region body
PF: predicated region fallthrough
CT: control target
= control target key end

     0   :  { %12 = vsyncpa [#allocation3], 0  ;;  %s8983_s0 = inlined_call_operand.vmem [shape: f32[1024,32], index: 0, kind: input, shape index: {}]   ;;  %s8984_s1 = inlined_call_operand.vmem [shape: f32[32,384], index: 1, kind: input, shape index: {}]   ;;  %s8985_s2 = inlined_call_operand.vmem [shape: f32[1,384], index: 2, kind: input, shape index: {}]   ;;  %s8986_s3 = inlined_call_operand.vmem [shape: f32[4,128,4], index: 3, kind: input, shape index: {}]   ;;  %s8987_s4 = inlined_call_operand.vmem [shape: f32[4,4,128], index: 4, kind: input, shape index: {}]   ;;  %s8988_s5 = inlined_call_operand.vmem [shape: f32[128,128], index: 5, kind: input, shape index: {}]   ;;  %s8989_s6 = inlined_call_operand.vmem [shape: f32[1,128], index: 6, kind: input, shape index: {}]   ;;  %s8990_s7 = inlined_call_operand.hbm [shape: f32[1024,128], index: 7, kind: output, shape index: {}]  }
   0x1   :  { %14 = vsyncpa [#allocation3 + $0x1], 0  ;;  %s6206_s24 = smov 0   ;;  %s6208_s25 = smov 0  }
   0x2   :  { %s6210_s26 = smov 0   ;;  %s6212_s27 = smov 0  }
   0x3 LB: > { %s6227_s28 = sadd.s32 4294967295, %s6160_s27   ;;  %s4412_s29 = sadd.s32 4294967294, %s6160_s27   ;;  %s6160_s27 = sphi %s6212_s27, %s9484_s27   ;;  %s6156_s26 = sphi %s6210_s26, %s9483_s26   ;;  %s6152_s25 = sphi %s6208_s25, %s9482_s25   ;;  %s6148_s24 = sphi %s6206_s24, %s9481_s24  }
   0x4   : > { %s6231_s30 = sadd.s32 1, %s6160_s27   ;;  %s179_s8 = sadd.s32 1, %s6156_s26 }
   0x5   : > { %s176_s9 = ssub.s32 %s6160_s27, %s6231_s30  ;;  %p189_p0 = scmp.ne.s32.totalorder %s6156_s26, %s6152_s25 }
   0x6   : > { %p177_p1 = scmp.eq.s32.totalorder %s176_s9, 0  ;;  %p190_p2 = scmp.eq.s32.totalorder %s6227_s28, 3 }
   0x7   : > { %p195_p3 = scmp.ne.s32.totalorder %s6152_s25, %s6148_s24  ;;  %p196_p4 = scmp.eq.s32.totalorder %s4412_s29, 3 }
   0x8   : > { %s6242_s10 = scalar_select %p177_p1, %s6156_s26, %s179_s8  }
   0x9   : > { %p6244_p5 = por %p190_p2, %p189_p0  ;;  %p6248_p6 = por %p196_p4, %p195_p3 }
   0xa   : > { %p4415_p7 = scmp.ge.s32.totalorder %s6160_s27, 1  ;;  %p241_p8 = scmp.lt.s32.totalorder %s6160_s27, 5 }
   0xc   : > { %p242_p9 = pnand %p4415_p7, %p241_p8 }
   0xe   : > { %245 = sbr.rel (%p242_p9) target bundleno = 1224 (0x4c8), region = 48 }
  0x13   : > { %v322_v0 = vld [vmem:[%s8984_s1 + $0x50] sm:$0xff]  ;;  %v321_v1 = vld [vmem:[%s8984_s1 + $0x48] sm:$0xff]  ;;  %v319_v2 = vld [vmem:[%s8984_s1 + $0x38] sm:$0xff]  ;;  %s4417_s19 = sshll.u32 %s6227_s28, 5  ;;  %v6162_v4 = vmov 0.0   ;;  %vm341_vm0 = vcmask 261120  }
  0x14   : > { %462 = vmatprep.subr.mxu0 %v322_v0  ;;  %v318_v3 = vld [vmem:[%s8984_s1 + $0x30] sm:$0xff]  ;;  %502 = vmatprep.mubr.f32.mxu0 %v6162_v4  ;;  %p274_p10 = scmp.lt.s32.totalorder %s4417_s19, 127  ;;  %v316_v5 = vld [vmem:[%s8984_s1 + $0x20] sm:$0xff]  ;;  %v315_v6 = vld [vmem:[%s8984_s1 + $0x18] sm:$0xff]  ;;  %vm2691_vm1 = vcmask 1043456   ;;  %vm2594_vm2 = vcmask 31744  }
  0x15   : > { %463 = vmatpush1.msra.mxu0 %v321_v1  ;;  %v313_v7 = vld [vmem:[%s8984_s1 + $0x8] sm:$0xff]  ;;  %v312_v8 = vld [vmem:[%s8984_s1] sm:$0xff]  ;;  %v323_v9 = vld [vmem:[%s8984_s1 + $0x58] sm:$0xff]  ;;  %s4672_s13 = sshll.u32 %s6227_s28, 12  ;;  %s6163_s20 = smov [#allocation2]  }
  0x16   : > { %464 = vmatprep.subr.mxu0 %v319_v2  ;;  %s9486_s19 = smov (!%p274_p10, %s4417_s19), 127  ;;  %v320_v10 = vld [vmem:[%s8984_s1 + $0x40] sm:$0xff]  ;;  %5081 = vmatprep.subr.mxu1 %v323_v9  ;;  %v317_v12 = vld [vmem:[%s8984_s1 + $0x28] sm:$0xff]  ;;  %v4498_v13 = vld [vmem:[%s8986_s3 + $0xf8] sm:$0xff]  ;;  %s8934_s17 = scalar_lea.hbm %s8990_s7, %s4672_s13 }
  0x17   : > { %465 = vmatpush1.msra.mxu0 %v318_v3  ;;  %s4418_s16 = sshll.u32 %s9486_s19, 3  ;;  %5082 = vmatpush3.msra.mxu1 %v323_v9  ;;  %v314_v14 = vld [vmem:[%s8984_s1 + $0x10] sm:$0xff]  ;;  %v4496_v18 = vld [vmem:[%s8986_s3 + $0xe8] sm:$0xff]  ;;  %v4495_v20 = vld [vmem:[%s8986_s3 + $0xe0] sm:$0xff]  ;;  %s6104_s21 = sshll.u32 %s6163_s20, 4  ;;  %s6105_s21 = int_to_ptr.vmem [resolvable:$false] %s6104_s21 }
  0x18   : > { %466 = vmatprep.subr.mxu0 %v316_v5  ;;  %s6289_s29 = scalar_lea.vmem %s8983_s0, %s4418_s16  ;;  %5083 = vmatprep.subr.mxu1 %v320_v10  ;;  %v4497_v16 = vld [vmem:[%s8986_s3 + $0xf0] sm:$0xff]  ;;  %v967_v21 = vld [vmem:[%s8986_s3 + $0x78] sm:$0xff]  ;;  %v965_v29 = vld [vmem:[%s8986_s3 + $0x68] sm:$0xff]  ;;  %s6106_s22 = scalar_lea.vmem %s6105_s21, 8192 }
  0x19   : > { %467 = vmatpush1.msra.mxu0 %v315_v6  ;;  %v280_v11 = vld [vmem:[%s6289_s29] sm:$0xff]  ;;  %5084 = vmatpush3.msra.mxu1 %v320_v10  ;;  %v281_v15 = vld [vmem:[%s6289_s29 + $0x8] sm:$0xff]  ;;  %v282_v17 = vld [vmem:[%s6289_s29 + $0x10] sm:$0xff] }
  0x1a   : > { %468 = vmatprep.subr.mxu0 %v313_v7  ;;  %5085 = vmatprep.subr.mxu1 %v317_v12  ;;  %v283_v19 = vld [vmem:[%s6289_s29 + $0x18] sm:$0xff]  ;;  %v284_v22 = vld [vmem:[%s6289_s29 + $0x20] sm:$0xff]  ;;  %v285_v24 = vld [vmem:[%s6289_s29 + $0x28] sm:$0xff] }
  0x1b   : > { %469 = vmatpush1.msra.mxu0 %v312_v8  ;;  %5086 = vmatpush3.msra.mxu1 %v317_v12  ;;  %v4494_v23 = vld [vmem:[%s8986_s3 + $0xd8] sm:$0xff]  ;;  %v286_v25 = vld [vmem:[%s6289_s29 + $0x30] sm:$0xff]  ;;  %v288_v30 = vld [vmem:[%s6289_s29 + $0x40] sm:$0xff] }
  0x1c   : > { %4419 = vmatmul.mubr.msk.f32.vlgmr.msra.gmra.mxu0 %vm341_vm0, %v280_v11  ;;  %5217 = vmatprep.subr.mxu0 %v4498_v13  ;;  %v966_v26 = vld [vmem:[%s8986_s3 + $0x70] sm:$0xff]  ;;  %v287_v28 = vld [vmem:[%s6289_s29 + $0x38] sm:$0xff]  ;;  %v964_v31 = vld [vmem:[%s8986_s3 + $0x60] sm:$0xff] }
  0x1d   : > { %508 = vmatprep.mubr.f32.mxu0 %v6162_v4  ;;  %5087 = vmatprep.subr.mxu1 %v314_v14  ;;  %v4493_v27 = vld [vmem:[%s8986_s3 + $0xd0] sm:$0xff]  ;;  %v289_v32 = vld [vmem:[%s6289_s29 + $0x48] sm:$0xff]  ;;  %v963_v34 = vld [vmem:[%s8986_s3 + $0x58] sm:$0xff] }
  0x1e   : > { %5089 = vmatprep.mubr.msk.f32.mxu1 %vm341_vm0, %v280_v11  ;;  %5088 = vmatpush3.msra.mxu1 %v314_v14  ;;  %v290_v33 = vld [vmem:[%s6289_s29 + $0x50] sm:$0xff]  ;;  %v4492_v35 = vld [vmem:[%s8986_s3 + $0xc8] sm:$0xff]  ;;  %v291_v36 = vld [vmem:[%s6289_s29 + $0x58] sm:$0xff] }
  0x1f   : > { %5218 = vmatpush3.msra.mxu0 %v4498_v13  ;;  %5090 = vmatmul.mubr.msk.f32.vlgmr.msra.gmra.mxu1 %vm341_vm0, %v281_v15  ;;  %v962_v37 = vld [vmem:[%s8986_s3 + $0x50] sm:$0xff]  ;;  %v6374_v38 = vld [vmem:[%s6289_s29 + $0x60] sm:$0xff]  ;;  %v961_v39 = vld [vmem:[%s8986_s3 + $0x48] sm:$0xff] }
  0x20   : > { %4420 = vmatmul.mubr.msk.f32.gmra.mxu0 %vm341_vm0, %v281_v15  ;;  %5219 = vmatprep.subr.mxu0 %v4497_v16  ;;  %v293_v40 = vld [vmem:[%s6289_s29 + $0x68] sm:$0xff]  ;;  %v960_v41 = vld [vmem:[%s8986_s3 + $0x40] sm:$0xff]  ;;  %v6389_v42 = vld [vmem:[%s6289_s29 + $0x70] sm:$0xff] }
  0x21   : > { %514 = vmatprep.mubr.f32.mxu0 %v6162_v4  ;;  %5092 = vmatprep.mubr.msk.f32.mxu1 %vm341_vm0, %v282_v17  ;;  %v4491_v43 = vld [vmem:[%s8986_s3 + $0xc0] sm:$0xff]  ;;  %v295_v44 = vld [vmem:[%s6289_s29 + $0x78] sm:$0xff]  ;;  %v6415_v48 = vld [vmem:[%s6289_s29 + $0x88] sm:$0xff] }
  0x22   : > { %5220 = vmatpush3.msra.mxu0 %v4497_v16  ;;  %5137 = vmatprep.subr.mxu1 %v967_v21  ;;  %v959_v45 = vld [vmem:[%s8986_s3 + $0x38] sm:$0xff]  ;;  %v6404_v46 = vld [vmem:[%s6289_s29 + $0x80] sm:$0xff]  ;;  %v958_v49 = vld [vmem:[%s8986_s3 + $0x30] sm:$0xff]  ;;  %v326_v16 = vlaneseq }
  0x23   : > { %5221 = vmatprep.subr.mxu0 %v4496_v18  ;;  %5093 = vmatmul.mubr.msk.f32.gmra.mxu1 %vm341_vm0, %v283_v19  ;;  %v4490_v47 = vld [vmem:[%s8986_s3 + $0xb8] sm:$0xff]  ;;  %v6421_v50 = vld [vmem:[%s6289_s29 + $0x90] sm:$0xff]  ;;  %v957_v53 = vld [vmem:[%s8986_s3 + $0x28] sm:$0xff] }
  0x24   : > { %4421 = vmatmul.mubr.msk.f32.gmra.mxu0 %vm341_vm0, %v282_v17  ;;  %5095 = vmatprep.mubr.msk.f32.mxu1 %vm341_vm0, %v284_v22  ;;  %v4489_v51 = vld [vmem:[%s8986_s3 + $0xb0] sm:$0xff]  ;;  %v6433_v52 = vld [vmem:[%s6289_s29 + $0x98] sm:$0xff]  ;;  %v6439_v54 = vld [vmem:[%s6289_s29 + $0xa0] sm:$0xff]  ;;  %v6590_v17 = vshrl.u32 %v326_v16, 7 }
  0x25   : > { %520 = vmatprep.mubr.f32.mxu0 %v6162_v4  ;;  %5222 = vmatpush3.msra.mxu0 %v4496_v18  ;;  %v4488_v55 = vld [vmem:[%s8986_s3 + $0xa8] sm:$0xff]  ;;  %v6454_v57 = vld [vmem:[%s6289_s29 + $0xb0] sm:$0xff]  ;;  %v6464_v58 = vld [vmem:[%s6289_s29 + $0xb8] sm:$0xff] }
  0x26   : > { %5223 = vmatprep.subr.mxu0 %v4495_v20  ;;  %5138 = vmatpush3.msra.mxu1 %v967_v21  ;;  %v6451_v56 = vld [vmem:[%s6289_s29 + $0xa8] sm:$0xff]  ;;  %v6467_v59 = vld [vmem:[%s6289_s29 + $0xc0] sm:$0xff]  ;;  %v6479_v61 = vld [vmem:[%s6289_s29 + $0xd0] sm:$0xff]  ;;  %9117 = vst [vmem:[#allocation5_spill] sm:$0xff] %v6590_v17  ;;  %v328_v18 = vsub.s32 0, %v6590_v17 }
  0x27   : > { %5224 = vmatpush3.msra.mxu0 %v4495_v20  ;;  %5096 = vmatmul.mubr.msk.f32.gmra.mxu1 %vm341_vm0, %v285_v24  ;;  %v6476_v60 = vld [vmem:[%s6289_s29 + $0xc8] sm:$0xff]  ;;  %v6489_v62 = vld [vmem:[%s6289_s29 + $0xd8] sm:$0xff]  ;;  %v6492_v63 = vld [vmem:[%s6289_s29 + $0xe0] sm:$0xff] }
  0x28   : > { %4422 = vmatmul.mubr.msk.f32.gmra.mxu0 %vm341_vm0, %v283_v19  ;;  %5225 = vmatprep.subr.mxu0 %v4494_v23  ;;  %v309_v0 = vld [vmem:[%s6289_s29 + $0xe8] sm:$0xff]  ;;  %v6502_v1 = vld [vmem:[%s6289_s29 + $0xf0] sm:$0xff]  ;;  %v956_v2 = vld [vmem:[%s8986_s3 + $0x20] sm:$0xff]  ;;  %v332_v19 = vsub.s32 1, %v6590_v17 }
  0x29   : > { %526 = vmatprep.mubr.f32.mxu0 %v6162_v4  ;;  %5098 = vmatprep.mubr.msk.f32.mxu1 %vm341_vm0, %v286_v25  ;;  %v4487_v3 = vld [vmem:[%s8986_s3 + $0xa0] sm:$0xff]  ;;  %v955_v5 = vld [vmem:[%s8986_s3 + $0x18] sm:$0xff]  ;;  %v954_v7 = vld [vmem:[%s8986_s3 + $0x10] sm:$0xff] }
  0x2a   : > { %5226 = vmatpush3.msra.mxu0 %v4494_v23  ;;  %5139 = vmatprep.subr.mxu1 %v966_v26  ;;  %v4486_v6 = vld [vmem:[%s8986_s3 + $0x98] sm:$0xff]  ;;  %v4485_v8 = vld [vmem:[%s8986_s3 + $0x90] sm:$0xff]  ;;  %v953_v10 = vld [vmem:[%s8986_s3 + $0x8] sm:$0xff] }
  0x2b   : > { %5099 = vmatmul.mubr.msk.f32.gmra.mxu1 %vm341_vm0, %v287_v28  ;;  %5227 = vmatprep.subr.mxu0 %v4493_v27  ;;  %v311_v9 = vld [vmem:[%s6289_s29 + $0xf8] sm:$0xff]  ;;  %v4484_v11 = vld [vmem:[%s8986_s3 + $0x88] sm:$0xff]  ;;  %v952_v12 = vld [vmem:[%s8986_s3] sm:$0xff]  ;;  %s270_s29 = sand.u32 1, %s6152_s25  }
  0x2c   : > { %4423 = vmatmul.mubr.msk.f32.gmra.mxu0 %vm341_vm0, %v284_v22  ;;  %5101 = vmatprep.mubr.msk.f32.mxu1 %vm341_vm0, %v288_v30  ;;  %v4483_v13 = vld [vmem:[%s8986_s3 + $0x80] sm:$0xff]  ;;  %v4514_v14 = vld [vmem:[%s8986_s3 + $0x178] sm:$0xff]  ;;  %s4416_s23 = sshll.u32 %s270_s29, 8  ;;  %s8943_s28 = scalar_lea.sflag [#allocation3], %s270_s29 }
  0x2d   : > { %532 = vmatprep.mubr.f32.mxu0 %v6162_v4  ;;  %5140 = vmatpush3.msra.mxu1 %v966_v26  ;;  %v4530_v15 = vld [vmem:[%s8986_s3 + $0x1f8] sm:$0xff]  ;;  %s8867_s9 = scalar_lea.vmem [#allocation2], %s4416_s23 }
  0x2e   : > { %5141 = vmatprep.subr.mxu1 %v965_v29  ;;  %5228 = vmatpush3.msra.mxu0 %v4493_v27  ;;  %s4350_s14 = sshll.u32 %s8867_s9, 4  ;;  %s8936_s14 = int_to_ptr.vmem [resolvable:$true] %s4350_s14 }
  0x2f   : > { %5142 = vmatpush3.msra.mxu1 %v965_v29  ;;  %5229 = vmatprep.subr.mxu0 %v4492_v35  ;;  %s6100_s18 = scalar_lea.vmem %s8936_s14, 4096  ;;  %p6107_p0 = scmp.lt.s32.totalorder %s8936_s14, %s6105_s21 }
  0x30   : > { %4424 = vmatmul.mubr.msk.f32.gmra.mxu0 %vm341_vm0, %v285_v24  ;;  %5102 = vmatmul.mubr.msk.f32.gmra.mxu1 %vm341_vm0, %v289_v32  ;;  %p6101_p11 = scmp.ne.s32.totalorder %s8936_s14, %s6100_s18  ;;  %p6108_p1 = scmp.lt.s32.totalorder %s6106_s22, %s6100_s18 }
  0x31   : > { %538 = vmatprep.mubr.f32.mxu0 %v6162_v4  ;;  %5143 = vmatprep.subr.mxu1 %v964_v31 }
  0x32   : > { %5104 = vmatprep.mubr.msk.f32.mxu1 %vm341_vm0, %v290_v33  ;;  %5144 = vmatpush3.msra.mxu1 %v964_v31  ;;  %p6102_p12 = pnand %p6101_p11, %p6244_p5  ;;  %p6109_p2 = por %p6108_p1, %p6107_p0 }
  0x33   : > { %5145 = vmatprep.subr.mxu1 %v963_v34  ;;  %5230 = vmatpush3.msra.mxu0 %v4492_v35  ;;  %v4529_v35 = vld [vmem:[%s8986_s3 + $0x1f0] sm:$0xff] }
  0x34   : > { %4425 = vmatmul.mubr.msk.f32.gmra.mxu0 %vm341_vm0, %v286_v25  ;;  %5105 = vmatmul.mubr.msk.f32.gmra.mxu1 %vm341_vm0, %v291_v36  ;;  %p6103_p13 = pneg %p6102_p12 }
  0x35   : > { %544 = vmatprep.mubr.f32.mxu0 %v6162_v4  ;;  %5107 = vmatprep.mubr.msk.f32.mxu1 %vm341_vm0, %v6374_v38 }
  0x36   : > { %5146 = vmatpush3.msra.mxu1 %v963_v34  ;;  %5231 = vmatprep.subr.mxu0 %v4491_v43  ;;  %v4513_v34 = vld [vmem:[%s8986_s3 + $0x170] sm:$0xff]  ;;  %p6110_p3 = pnand %p6109_p2, %p6103_p13 }
  0x37   : > { %5147 = vmatprep.subr.mxu1 %v962_v37  ;;  %5232 = vmatpush3.msra.mxu0 %v4491_v43 }
  0x38   : > { %4426 = vmatmul.mubr.msk.f32.gmra.mxu0 %vm341_vm0, %v287_v28  ;;  %5148 = vmatpush3.msra.mxu1 %v962_v37 }
  0x39   : > { %550 = vmatprep.mubr.f32.mxu0 %v6162_v4  ;;  %5108 = vmatmul.mubr.msk.f32.gmra.mxu1 %vm341_vm0, %v293_v40 }
  0x3a   : > { %5149 = vmatprep.subr.mxu1 %v961_v39  ;;  %5110 = vmatprep.mubr.msk.f32.mxu1 %vm341_vm0, %v6389_v42 }
  0x3b   : > { %5150 = vmatpush3.msra.mxu1 %v961_v39  ;;  %5233 = vmatprep.subr.mxu0 %v4490_v47 }
  0x3c   : > { %4427 = vmatmul.mubr.msk.f32.gmra.mxu0 %vm341_vm0, %v288_v30  ;;  %5151 = vmatprep.subr.mxu1 %v960_v41 }
  0x3d   : > { %556 = vmatprep.mubr.f32.mxu0 %v6162_v4  ;;  %5111 = vmatmul.mubr.msk.f32.gmra.mxu1 %vm341_vm0, %v295_v44 }
  0x3e   : > { %5113 = vmatprep.mubr.msk.f32.mxu1 %vm341_vm0, %v6404_v46  ;;  %5152 = vmatpush3.msra.mxu1 %v960_v41  ;;  %v4528_v41 = vld [vmem:[%s8986_s3 + $0x1e8] sm:$0xff] }
  0x3f   : > { %5153 = vmatprep.subr.mxu1 %v959_v45  ;;  %5234 = vmatpush3.msra.mxu0 %v4490_v47 }
  0x40   : > { %4428 = vmatmul.mubr.msk.f32.gmra.mxu0 %vm341_vm0, %v289_v32  ;;  %5154 = vmatpush3.msra.mxu1 %v959_v45  ;;  %v4511_v45 = vld [vmem:[%s8986_s3 + $0x160] sm:$0xff] }
  0x41   : > { %562 = vmatprep.mubr.f32.mxu0 %v6162_v4  ;;  %5114 = vmatmul.mubr.msk.f32.gmra.mxu1 %vm341_vm0, %v6415_v48 }
  0x42   : > { %5116 = vmatprep.mubr.msk.f32.mxu1 %vm341_vm0, %v6421_v50  ;;  %5155 = vmatprep.subr.mxu1 %v958_v49 }
  0x43   : > { %5235 = vmatprep.subr.mxu0 %v4489_v51  ;;  %5156 = vmatpush3.msra.mxu1 %v958_v49 }
  0x44   : > { %4429 = vmatmul.mubr.msk.f32.gmra.mxu0 %vm341_vm0, %v290_v33  ;;  %5157 = vmatprep.subr.mxu1 %v957_v53 }
  0x45   : > { %568 = vmatprep.mubr.f32.mxu0 %v6162_v4  ;;  %5117 = vmatmul.mubr.msk.f32.gmra.mxu1 %vm341_vm0, %v6433_v52 }
  0x46   : > { %5119 = vmatprep.mubr.msk.f32.mxu1 %vm341_vm0, %v6439_v54  ;;  %5236 = vmatpush3.msra.mxu0 %v4489_v51  ;;  %v4526_v51 = vld [vmem:[%s8986_s3 + $0x1d8] sm:$0xff] }
  0x47   : > { %5237 = vmatprep.subr.mxu0 %v4488_v55  ;;  %5158 = vmatpush3.msra.mxu1 %v957_v53 }
  0x48   : > { %4430 = vmatmul.mubr.msk.f32.gmra.mxu0 %vm341_vm0, %v291_v36  ;;  %5159 = vmatprep.subr.mxu1 %v956_v2 }
  0x49   : > { %574 = vmatprep.mubr.f32.mxu0 %v6162_v4  ;;  %5120 = vmatmul.mubr.msk.f32.gmra.mxu1 %vm341_vm0, %v6451_v56 }
  0x4a   : > { %5122 = vmatprep.mubr.msk.f32.mxu1 %vm341_vm0, %v6454_v57  ;;  %5238 = vmatpush3.msra.mxu0 %v4488_v55 }
  0x4b   : > { %5239 = vmatprep.subr.mxu0 %v4487_v3  ;;  %5160 = vmatpush3.msra.mxu1 %v956_v2  ;;  %v4507_v2 = vld [vmem:[%s8986_s3 + $0x140] sm:$0xff] }
  0x4c   : > { %4431 = vmatmul.mubr.msk.f32.gmra.mxu0 %vm341_vm0, %v6374_v38  ;;  %5161 = vmatprep.subr.mxu1 %v955_v5 }
  0x4d   : > { %580 = vmatprep.mubr.f32.mxu0 %v6162_v4  ;;  %5123 = vmatmul.mubr.msk.f32.gmra.mxu1 %vm341_vm0, %v6464_v58 }
  0x4e   : > { %5125 = vmatprep.mubr.msk.f32.mxu1 %vm341_vm0, %v6467_v59  ;;  %5240 = vmatpush3.msra.mxu0 %v4487_v3  ;;  %v4523_v3 = vld [vmem:[%s8986_s3 + $0x1c0] sm:$0xff] }
  0x4f   : > { %5241 = vmatprep.subr.mxu0 %v4486_v6  ;;  %5162 = vmatpush3.msra.mxu1 %v955_v5 }
  0x50   : > { %4432 = vmatmul.mubr.msk.f32.gmra.mxu0 %vm341_vm0, %v293_v40  ;;  %5163 = vmatprep.subr.mxu1 %v954_v7  ;;  %v4512_v40 = vld [vmem:[%s8986_s3 + $0x168] sm:$0xff] }
  0x51   : > { %586 = vmatprep.mubr.f32.mxu0 %v6162_v4  ;;  %5126 = vmatmul.mubr.msk.f32.gmra.mxu1 %vm341_vm0, %v6476_v60 }
  0x52   : > { %5128 = vmatprep.mubr.msk.f32.mxu1 %vm341_vm0, %v6479_v61  ;;  %5242 = vmatpush3.msra.mxu0 %v4486_v6 }
  0x53   : > { %5243 = vmatprep.subr.mxu0 %v4485_v8  ;;  %5164 = vmatpush3.msra.mxu1 %v954_v7 }
  0x54   : > { %4433 = vmatmul.mubr.msk.f32.gmra.mxu0 %vm341_vm0, %v6389_v42  ;;  %5165 = vmatprep.subr.mxu1 %v953_v10 }
  0x55   : > { %592 = vmatprep.mubr.f32.mxu0 %v6162_v4  ;;  %5129 = vmatmul.mubr.msk.f32.gmra.mxu1 %vm341_vm0, %v6489_v62 }
  0x56   : > { %5131 = vmatprep.mubr.msk.f32.mxu1 %vm341_vm0, %v6492_v63  ;;  %5244 = vmatpush3.msra.mxu0 %v4485_v8 }
  0x57   : > { %5245 = vmatprep.subr.mxu0 %v4484_v11  ;;  %5166 = vmatpush3.msra.mxu1 %v953_v10  ;;  %v4522_v10 = vld [vmem:[%s8986_s3 + $0x1b8] sm:$0xff] }
  0x58   : > { %4434 = vmatmul.mubr.msk.f32.gmra.mxu0 %vm341_vm0, %v295_v44  ;;  %5167 = vmatprep.subr.mxu1 %v952_v12 }
  0x59   : > { %598 = vmatprep.mubr.f32.mxu0 %v6162_v4  ;;  %5132 = vmatmul.mubr.msk.f32.gmra.mxu1 %vm341_vm0, %v309_v0 }
  0x5a   : > { %5134 = vmatprep.mubr.msk.f32.mxu1 %vm341_vm0, %v6502_v1  ;;  %5246 = vmatpush3.msra.mxu0 %v4484_v11 }
  0x5b   : > { %5247 = vmatprep.subr.mxu0 %v4483_v13  ;;  %5168 = vmatpush3.msra.mxu1 %v952_v12 }
  0x5c   : > { %4435 = vmatmul.mubr.msk.f32.gmra.mxu0 %vm341_vm0, %v6404_v46  ;;  %5297 = vmatprep.subr.mxu1 %v4514_v14  ;;  %v4527_v46 = vld [vmem:[%s8986_s3 + $0x1e0] sm:$0xff] }
  0x5d   : > { %604 = vmatprep.mubr.f32.mxu0 %v6162_v4  ;;  %5135 = vmatmul.mubr.msk.f32.gmra.mxu1 %vm341_vm0, %v311_v9 }
  0x5e   : > { %5248 = vmatpush3.msra.mxu0 %v4483_v13 }
  0x5f   : > { %5377 = vmatprep.subr.mxu0 %v4530_v15 }
  0x60   : > { %4436 = vmatmul.mubr.msk.f32.gmra.mxu0 %vm341_vm0, %v6415_v48 }
  0x61   : > { %610 = vmatprep.mubr.f32.mxu0 %v6162_v4 }
  0x64   : > { %4437 = vmatmul.mubr.msk.f32.gmra.mxu0 %vm341_vm0, %v6421_v50  ;;  %v4510_v50 = vld [vmem:[%s8986_s3 + $0x158] sm:$0xff] }
  0x65   : > { %616 = vmatprep.mubr.f32.mxu0 %v6162_v4 }
  0x68   : > { %4438 = vmatmul.mubr.msk.f32.gmra.mxu0 %vm341_vm0, %v6433_v52 }
  0x69   : > { %622 = vmatprep.mubr.f32.mxu0 %v6162_v4 }
  0x6c   : > { %4439 = vmatmul.mubr.msk.f32.gmra.mxu0 %vm341_vm0, %v6439_v54 }
  0x6d   : > { %628 = vmatprep.mubr.f32.mxu0 %v6162_v4 }
  0x70   : > { %4440 = vmatmul.mubr.msk.f32.gmra.mxu0 %vm341_vm0, %v6451_v56  ;;  %v4509_v56 = vld [vmem:[%s8986_s3 + $0x150] sm:$0xff] }
  0x71   : > { %634 = vmatprep.mubr.f32.mxu0 %v6162_v4 }
  0x74   : > { %4441 = vmatmul.mubr.msk.f32.gmra.mxu0 %vm341_vm0, %v6454_v57  ;;  %v4525_v57 = vld [vmem:[%s8986_s3 + $0x1d0] sm:$0xff] }
  0x75   : > { %640 = vmatprep.mubr.f32.mxu0 %v6162_v4 }
  0x78   : > { %4442 = vmatmul.mubr.msk.f32.gmra.mxu0 %vm341_vm0, %v6464_v58 }
  0x79   : > { %646 = vmatprep.mubr.f32.mxu0 %v6162_v4 }
  0x7c   : > { %4443 = vmatmul.mubr.msk.f32.gmra.mxu0 %vm341_vm0, %v6467_v59 }
  0x7d   : > { %652 = vmatprep.mubr.f32.mxu0 %v6162_v4 }
  0x80   : > { %4444 = vmatmul.mubr.msk.f32.gmra.mxu0 %vm341_vm0, %v6476_v60 }
  0x81   : > { %658 = vmatprep.mubr.f32.mxu0 %v6162_v4 }
  0x84   : > { %4445 = vmatmul.mubr.msk.f32.gmra.mxu0 %vm341_vm0, %v6479_v61  ;;  %v4508_v61 = vld [vmem:[%s8986_s3 + $0x148] sm:$0xff] }
  0x85   : > { %664 = vmatprep.mubr.f32.mxu0 %v6162_v4 }
  0x88   : > { %4446 = vmatmul.mubr.msk.f32.gmra.mxu0 %vm341_vm0, %v6489_v62  ;;  %v4524_v62 = vld [vmem:[%s8986_s3 + $0x1c8] sm:$0xff] }
  0x89   : > { %670 = vmatprep.mubr.f32.mxu0 %v6162_v4 }
  0x8c   : > { %4447 = vmatmul.mubr.msk.f32.gmra.mxu0 %vm341_vm0, %v6492_v63 }
  0x8d   : > { %676 = vmatprep.mubr.f32.mxu0 %v6162_v4 }
  0x90   : > { %4448 = vmatmul.mubr.msk.f32.gmra.mxu0 %vm341_vm0, %v309_v0 }
  0x91   : > { %682 = vmatprep.mubr.f32.mxu0 %v6162_v4 }
  0x94   : > { %4449 = vmatmul.mubr.msk.f32.gmra.mxu0 %vm341_vm0, %v6502_v1 }
  0x95   : > { %688 = vmatprep.mubr.f32.mxu0 %v6162_v4  ;;  %v324_v4 = vld [vmem:[%s8985_s2] sm:$0x7] }
  0x96   : > { %v6597_v20 = vrot.slane %v324_v4, %v328_v18  ;;  %v6599_v21 = vrot.slane %v324_v4, %v332_v19  ;;  %v4504_v4 = vld [vmem:[%s8986_s3 + $0x128] sm:$0xff] }
  0x98   : > { %4450 = vmatmul.mubr.msk.f32.gmra.mxu0 %vm341_vm0, %v311_v9  ;;  %v4506_v9 = vld [vmem:[%s8986_s3 + $0x138] sm:$0xff] }
  0xdc   : > { %v504_v22 = vpop.f32.mrf.mxu0 }
  0xdd   : > { %v505_v24 = vadd.f32 %v504_v22, %v6597_v20  ;;  %v4520_v22 = vld [vmem:[%s8986_s3 + $0x1a8] sm:$0xff] }
  0xde   : > { %v506_v23 = vpop.f32.mrf.mxu0 }
  0xdf   : > { %v507_v25 = vadd.f32 %v506_v23, %v6599_v21 }
  0xe0   : > { %v510_v26 = vpop.f32.mrf.mxu0 }
  0xe1   : > { %v6603_v27 = vmul.f32 %v507_v25, %v505_v24  ;;  %v511_v29 = vadd.f32 %v510_v26, %v6597_v20 }
  0xe2   : > { %v512_v28 = vpop.f32.mrf.mxu0 }
  0xe3   : > { %v513_v30 = vadd.f32 %v512_v28, %v6599_v21  ;;  %5169 = vmatprep.mubr.f32.mxu1 %v6603_v27  ;;  %5249 = vmatprep.mubr.f32.mxu0 %v6603_v27  ;;  %v4503_v28 = vld [vmem:[%s8986_s3 + $0x120] sm:$0xff] }
  0xe4   : > { %v516_v31 = vpop.f32.mrf.mxu0 }
  0xe5   : > { %v6609_v32 = vmul.f32 %v513_v30, %v511_v29  ;;  %v517_v36 = vadd.f32 %v516_v31, %v6597_v20  ;;  %v4519_v29 = vld [vmem:[%s8986_s3 + $0x1a0] sm:$0xff] }
  0xe6   : > { %v518_v33 = vpop.f32.mrf.mxu0 }
  0xe7   : > { %v519_v37 = vadd.f32 %v518_v33, %v6599_v21  ;;  %5170 = vmatmul.mubr.f32.vlgmr.msra.gmra.mxu1 %v6609_v32  ;;  %5250 = vmatmul.mubr.f32.vlgmr.msra.gmra.mxu0 %v6609_v32 }
  0xe8   : > { %v522_v38 = vpop.f32.mrf.mxu0  ;;  %5298 = vmatpush3.msra.mxu1 %v4514_v14  ;;  %5378 = vmatpush3.msra.mxu0 %v4530_v15  ;;  %v4505_v14 = vld [vmem:[%s8986_s3 + $0x130] sm:$0xff] }
  0xe9   : > { %v6621_v39 = vmul.f32 %v519_v37, %v517_v36  ;;  %5299 = vmatprep.subr.mxu1 %v4513_v34  ;;  %5379 = vmatprep.subr.mxu0 %v4529_v35  ;;  %v523_v43 = vadd.f32 %v522_v38, %v6597_v20  ;;  %v4521_v15 = vld [vmem:[%s8986_s3 + $0x1b0] sm:$0xff] }
  0xea   : > { %v524_v42 = vpop.f32.mrf.mxu0  ;;  %5300 = vmatpush3.msra.mxu1 %v4513_v34  ;;  %5380 = vmatpush3.msra.mxu0 %v4529_v35  ;;  %v4502_v34 = vld [vmem:[%s8986_s3 + $0x118] sm:$0xff] }
  0xeb   : > { %v525_v44 = vadd.f32 %v524_v42, %v6599_v21  ;;  %5172 = vmatprep.mubr.f32.mxu1 %v6621_v39  ;;  %5252 = vmatprep.mubr.f32.mxu0 %v6621_v39  ;;  %v4518_v35 = vld [vmem:[%s8986_s3 + $0x198] sm:$0xff] }
  0xec   : > { %v528_v47 = vpop.f32.mrf.mxu0  ;;  %5301 = vmatprep.subr.mxu1 %v4512_v40  ;;  %5381 = vmatprep.subr.mxu0 %v4528_v41 }
  0xed   : > { %v6639_v48 = vmul.f32 %v525_v44, %v523_v43  ;;  %5302 = vmatpush3.msra.mxu1 %v4512_v40  ;;  %5382 = vmatpush3.msra.mxu0 %v4528_v41  ;;  %v529_v52 = vadd.f32 %v528_v47, %v6597_v20  ;;  %v4501_v40 = vld [vmem:[%s8986_s3 + $0x110] sm:$0xff]  ;;  %v4516_v47 = vld [vmem:[%s8986_s3 + $0x188] sm:$0xff] }
  0xee   : > { %v530_v49 = vpop.f32.mrf.mxu0  ;;  %5303 = vmatprep.subr.mxu1 %v4511_v45  ;;  %5383 = vmatprep.subr.mxu0 %v4527_v46  ;;  %v4517_v41 = vld [vmem:[%s8986_s3 + $0x190] sm:$0xff] }
  0xef   : > { %v531_v53 = vadd.f32 %v530_v49, %v6599_v21  ;;  %5173 = vmatmul.mubr.f32.gmra.mxu1 %v6639_v48  ;;  %5253 = vmatmul.mubr.f32.gmra.mxu0 %v6639_v48 }
  0xf0   : > { %v534_v54 = vpop.f32.mrf.mxu0  ;;  %5304 = vmatpush3.msra.mxu1 %v4511_v45  ;;  %5384 = vmatpush3.msra.mxu0 %v4527_v46  ;;  %v4500_v46 = vld [vmem:[%s8986_s3 + $0x108] sm:$0xff] }
  0xf1   : > { %v6651_v55 = vmul.f32 %v531_v53, %v529_v52  ;;  %5305 = vmatprep.subr.mxu1 %v4510_v50  ;;  %5385 = vmatprep.subr.mxu0 %v4526_v51  ;;  %v535_v59 = vadd.f32 %v534_v54, %v6597_v20  ;;  %v4499_v52 = vld [vmem:[%s8986_s3 + $0x100] sm:$0xff] }
  0xf2   : > { %v536_v58 = vpop.f32.mrf.mxu0  ;;  %5306 = vmatpush3.msra.mxu1 %v4510_v50  ;;  %5386 = vmatpush3.msra.mxu0 %v4526_v51  ;;  %v4515_v53 = vld [vmem:[%s8986_s3 + $0x180] sm:$0xff] }
  0xf3   : > { %v537_v60 = vadd.f32 %v536_v58, %v6599_v21  ;;  %5175 = vmatprep.mubr.f32.mxu1 %v6651_v55  ;;  %5255 = vmatprep.mubr.f32.mxu0 %v6651_v55 }
  0xf4   : > { %v540_v63 = vpop.f32.mrf.mxu0  ;;  %5307 = vmatprep.subr.mxu1 %v4509_v56  ;;  %5387 = vmatprep.subr.mxu0 %v4525_v57 }
  0xf5   : > { %v6669_v0 = vmul.f32 %v537_v60, %v535_v59  ;;  %5308 = vmatpush3.msra.mxu1 %v4509_v56  ;;  %5388 = vmatpush3.msra.mxu0 %v4525_v57  ;;  %v541_v5 = vadd.f32 %v540_v63, %v6597_v20 }
  0xf6   : > { %v542_v1 = vpop.f32.mrf.mxu0  ;;  %5309 = vmatprep.subr.mxu1 %v4508_v61  ;;  %5389 = vmatprep.subr.mxu0 %v4524_v62 }
  0xf7   : > { %v543_v6 = vadd.f32 %v542_v1, %v6599_v21  ;;  %5176 = vmatmul.mubr.f32.gmra.mxu1 %v6669_v0  ;;  %5256 = vmatmul.mubr.f32.gmra.mxu0 %v6669_v0 }
  0xf8   : > { %v546_v7 = vpop.f32.mrf.mxu0  ;;  %5310 = vmatpush3.msra.mxu1 %v4508_v61  ;;  %5390 = vmatpush3.msra.mxu0 %v4524_v62 }
  0xf9   : > { %v6681_v8 = vmul.f32 %v543_v6, %v541_v5  ;;  %5311 = vmatprep.subr.mxu1 %v4507_v2  ;;  %5391 = vmatprep.subr.mxu0 %v4523_v3  ;;  %v547_v12 = vadd.f32 %v546_v7, %v6597_v20 }
  0xfa   : > { %v548_v11 = vpop.f32.mrf.mxu0  ;;  %5312 = vmatpush3.msra.mxu1 %v4507_v2  ;;  %5392 = vmatpush3.msra.mxu0 %v4523_v3 }
  0xfb   : > { %v549_v13 = vadd.f32 %v548_v11, %v6599_v21  ;;  %5178 = vmatprep.mubr.f32.mxu1 %v6681_v8  ;;  %5258 = vmatprep.mubr.f32.mxu0 %v6681_v8 }
  0xfc   : > { %v552_v16 = vpop.f32.mrf.mxu0  ;;  %5313 = vmatprep.subr.mxu1 %v4506_v9  ;;  %5393 = vmatprep.subr.mxu0 %v4522_v10 }
  0xfd   : > { %v6699_v18 = vmul.f32 %v549_v13, %v547_v12  ;;  %5314 = vmatpush3.msra.mxu1 %v4506_v9  ;;  %5394 = vmatpush3.msra.mxu0 %v4522_v10  ;;  %v553_v23 = vadd.f32 %v552_v16, %v6597_v20 }
  0xfe   : > { %v554_v19 = vpop.f32.mrf.mxu0  ;;  %5315 = vmatprep.subr.mxu1 %v4505_v14  ;;  %5395 = vmatprep.subr.mxu0 %v4521_v15 }
  0xff   : > { %v555_v24 = vadd.f32 %v554_v19, %v6599_v21  ;;  %5179 = vmatmul.mubr.f32.gmra.mxu1 %v6699_v18  ;;  %5259 = vmatmul.mubr.f32.gmra.mxu0 %v6699_v18 }
 0x100   : > { %v558_v25 = vpop.f32.mrf.mxu0  ;;  %5316 = vmatpush3.msra.mxu1 %v4505_v14  ;;  %5396 = vmatpush3.msra.mxu0 %v4521_v15 }
 0x101   : > { %v6711_v26 = vmul.f32 %v555_v24, %v553_v23  ;;  %5317 = vmatprep.subr.mxu1 %v4504_v4  ;;  %5397 = vmatprep.subr.mxu0 %v4520_v22  ;;  %v559_v31 = vadd.f32 %v558_v25, %v6597_v20 }
 0x102   : > { %v560_v30 = vpop.f32.mrf.mxu0  ;;  %5318 = vmatpush3.msra.mxu1 %v4504_v4  ;;  %5398 = vmatpush3.msra.mxu0 %v4520_v22 }
 0x103   : > { %v561_v33 = vadd.f32 %v560_v30, %v6599_v21  ;;  %5181 = vmatprep.mubr.f32.mxu1 %v6711_v26  ;;  %5261 = vmatprep.mubr.f32.mxu0 %v6711_v26 }
 0x104   : > { %v564_v36 = vpop.f32.mrf.mxu0  ;;  %5319 = vmatprep.subr.mxu1 %v4503_v28  ;;  %5399 = vmatprep.subr.mxu0 %v4519_v29 }
 0x105   : > { %v6729_v37 = vmul.f32 %v561_v33, %v559_v31  ;;  %5320 = vmatpush3.msra.mxu1 %v4503_v28  ;;  %5400 = vmatpush3.msra.mxu0 %v4519_v29  ;;  %v565_v42 = vadd.f32 %v564_v36, %v6597_v20 }
 0x106   : > { %v566_v38 = vpop.f32.mrf.mxu0  ;;  %5321 = vmatprep.subr.mxu1 %v4502_v34  ;;  %5401 = vmatprep.subr.mxu0 %v4518_v35 }
 0x107   : > { %v567_v43 = vadd.f32 %v566_v38, %v6599_v21  ;;  %5182 = vmatmul.mubr.f32.gmra.mxu1 %v6729_v37  ;;  %5262 = vmatmul.mubr.f32.gmra.mxu0 %v6729_v37 }
 0x108   : > { %v570_v44 = vpop.f32.mrf.mxu0  ;;  %5322 = vmatpush3.msra.mxu1 %v4502_v34  ;;  %5402 = vmatpush3.msra.mxu0 %v4518_v35 }
 0x109   : > { %v6741_v45 = vmul.f32 %v567_v43, %v565_v42  ;;  %5323 = vmatprep.subr.mxu1 %v4501_v40  ;;  %5403 = vmatprep.subr.mxu0 %v4517_v41  ;;  %v571_v50 = vadd.f32 %v570_v44, %v6597_v20 }
 0x10a   : > { %v572_v49 = vpop.f32.mrf.mxu0  ;;  %5324 = vmatpush3.msra.mxu1 %v4501_v40  ;;  %5404 = vmatpush3.msra.mxu0 %v4517_v41 }
 0x10b   : > { %v573_v51 = vadd.f32 %v572_v49, %v6599_v21  ;;  %5184 = vmatprep.mubr.f32.mxu1 %v6741_v45  ;;  %5264 = vmatprep.mubr.f32.mxu0 %v6741_v45 }
 0x10c   : > { %v576_v54 = vpop.f32.mrf.mxu0  ;;  %5325 = vmatprep.subr.mxu1 %v4500_v46  ;;  %5405 = vmatprep.subr.mxu0 %v4516_v47 }
 0x10d   : > { %v6759_v56 = vmul.f32 %v573_v51, %v571_v50  ;;  %5326 = vmatpush3.msra.mxu1 %v4500_v46  ;;  %5406 = vmatpush3.msra.mxu0 %v4516_v47  ;;  %v577_v58 = vadd.f32 %v576_v54, %v6597_v20 }
 0x10e   : > { %v578_v57 = vpop.f32.mrf.mxu0  ;;  %5327 = vmatprep.subr.mxu1 %v4499_v52  ;;  %5407 = vmatprep.subr.mxu0 %v4515_v53 }
 0x10f   : > { %v579_v59 = vadd.f32 %v578_v57, %v6599_v21  ;;  %5185 = vmatmul.mubr.f32.gmra.mxu1 %v6759_v56  ;;  %5265 = vmatmul.mubr.f32.gmra.mxu0 %v6759_v56 }
 0x110   : > { %v582_v60 = vpop.f32.mrf.mxu0  ;;  %5328 = vmatpush3.msra.mxu1 %v4499_v52  ;;  %5408 = vmatpush3.msra.mxu0 %v4515_v53 }
 0x111   : > { %v6765_v61 = vmul.f32 %v579_v59, %v577_v58  ;;  %v583_v63 = vadd.f32 %v582_v60, %v6597_v20 }
 0x112   : > { %v584_v62 = vpop.f32.mrf.mxu0 }
 0x113   : > { %v585_v1 = vadd.f32 %v584_v62, %v6599_v21  ;;  %5187 = vmatprep.mubr.f32.mxu1 %v6765_v61  ;;  %5267 = vmatprep.mubr.f32.mxu0 %v6765_v61 }
 0x114   : > { %v588_v2 = vpop.f32.mrf.mxu0 }
 0x115   : > { %v6771_v3 = vmul.f32 %v585_v1, %v583_v63  ;;  %v589_v6 = vadd.f32 %v588_v2, %v6597_v20 }
 0x116   : > { %v590_v5 = vpop.f32.mrf.mxu0 }
 0x117   : > { %v591_v7 = vadd.f32 %v590_v5, %v6599_v21  ;;  %5188 = vmatmul.mubr.f32.gmra.mxu1 %v6771_v3  ;;  %5268 = vmatmul.mubr.f32.gmra.mxu0 %v6771_v3 }
 0x118   : > { %v594_v9 = vpop.f32.mrf.mxu0 }
 0x119   : > { %v6777_v10 = vmul.f32 %v591_v7, %v589_v6  ;;  %v595_v12 = vadd.f32 %v594_v9, %v6597_v20 }
 0x11a   : > { %v596_v11 = vpop.f32.mrf.mxu0 }
 0x11b   : > { %v597_v13 = vadd.f32 %v596_v11, %v6599_v21  ;;  %5190 = vmatprep.mubr.f32.mxu1 %v6777_v10  ;;  %5270 = vmatprep.mubr.f32.mxu0 %v6777_v10 }
 0x11c   : > { %v600_v14 = vpop.f32.mrf.mxu0 }
 0x11d   : > { %v6783_v15 = vmul.f32 %v597_v13, %v595_v12  ;;  %v601_v19 = vadd.f32 %v600_v14, %v6597_v20 }
 0x11e   : > { %v602_v16 = vpop.f32.mrf.mxu0 }
 0x11f   : > { %v603_v4 = vadd.f32 %v602_v16, %v6599_v21  ;;  %5191 = vmatmul.mubr.f32.gmra.mxu1 %v6783_v15  ;;  %5271 = vmatmul.mubr.f32.gmra.mxu0 %v6783_v15 }
 0x120   : > { %v606_v22 = vpop.f32.mrf.mxu0 }
 0x121   : > { %v6789_v23 = vmul.f32 %v603_v4, %v601_v19  ;;  %v607_v25 = vadd.f32 %v606_v22, %v6597_v20 }
 0x122   : > { %v608_v24 = vpop.f32.mrf.mxu0 }
 0x123   : > { %v609_v28 = vadd.f32 %v608_v24, %v6599_v21  ;;  %5193 = vmatprep.mubr.f32.mxu1 %v6789_v23  ;;  %5273 = vmatprep.mubr.f32.mxu0 %v6789_v23 }
 0x124   : > { %v612_v29 = vpop.f32.mrf.mxu0 }
 0x125   : > { %v6795_v30 = vmul.f32 %v609_v28, %v607_v25  ;;  %v613_v33 = vadd.f32 %v612_v29, %v6597_v20  ;;  %v6845_v25 = vpop.f32.mrf.mxu1 }
 0x126   : > { %v614_v31 = vpop.f32.mrf.mxu0  ;;  %9118 = vst [vmem:[#allocation6_spill] sm:$0xff] %v6845_v25 }
 0x127   : > { %v615_v34 = vadd.f32 %v614_v31, %v6599_v21  ;;  %5194 = vmatmul.mubr.f32.gmra.mxu1 %v6795_v30  ;;  %5274 = vmatmul.mubr.f32.gmra.mxu0 %v6795_v30 }
 0x128   : > { %v618_v35 = vpop.f32.mrf.mxu0 }
 0x129   : > { %v6801_v36 = vmul.f32 %v615_v34, %v613_v33  ;;  %v619_v40 = vadd.f32 %v618_v35, %v6597_v20  ;;  %v6853_v35 = vpop.f32.mrf.mxu1 }
 0x12a   : > { %v620_v38 = vpop.f32.mrf.mxu0  ;;  %9119 = vst [vmem:[#allocation7_spill] sm:$0xff] %v6853_v35 }
 0x12b   : > { %v621_v41 = vadd.f32 %v620_v38, %v6599_v21  ;;  %5196 = vmatprep.mubr.f32.mxu1 %v6801_v36  ;;  %5276 = vmatprep.mubr.f32.mxu0 %v6801_v36 }
 0x12c   : > { %v624_v42 = vpop.f32.mrf.mxu0 }
 0x12d   : > { %v6807_v43 = vmul.f32 %v621_v41, %v619_v40  ;;  %v625_v46 = vadd.f32 %v624_v42, %v6597_v20 }
 0x12e   : > { %v626_v44 = vpop.f32.mrf.mxu0 }
 0x12f   : > { %v627_v47 = vadd.f32 %v626_v44, %v6599_v21  ;;  %5197 = vmatmul.mubr.f32.gmra.mxu1 %v6807_v43  ;;  %5277 = vmatmul.mubr.f32.gmra.mxu0 %v6807_v43 }
 0x130   : > { %v630_v49 = vpop.f32.mrf.mxu0 }
 0x131   : > { %v6813_v50 = vmul.f32 %v627_v47, %v625_v46  ;;  %v631_v52 = vadd.f32 %v630_v49, %v6597_v20  ;;  %v6861_v46 = vpop.f32.mrf.mxu1 }
 0x132   : > { %v632_v51 = vpop.f32.mrf.mxu0  ;;  %9120 = vst [vmem:[#allocation8_spill] sm:$0xff] %v6861_v46 }
 0x133   : > { %v633_v53 = vadd.f32 %v632_v51, %v6599_v21  ;;  %5199 = vmatprep.mubr.f32.mxu1 %v6813_v50  ;;  %5279 = vmatprep.mubr.f32.mxu0 %v6813_v50 }
 0x134   : > { %v636_v54 = vpop.f32.mrf.mxu0 }
 0x135   : > { %v6819_v57 = vmul.f32 %v633_v53, %v631_v52  ;;  %v637_v59 = vadd.f32 %v636_v54, %v6597_v20  ;;  %v6869_v54 = vpop.f32.mrf.mxu1 }
 0x136   : > { %v638_v58 = vpop.f32.mrf.mxu0  ;;  %9121 = vst [vmem:[#allocation9_spill] sm:$0xff] %v6869_v54 }
 0x137   : > { %v639_v60 = vadd.f32 %v638_v58, %v6599_v21  ;;  %5200 = vmatmul.mubr.f32.gmra.mxu1 %v6819_v57  ;;  %5280 = vmatmul.mubr.f32.gmra.mxu0 %v6819_v57 }
 0x138   : > { %v642_v62 = vpop.f32.mrf.mxu0 }
 0x139   : > { %v6825_v63 = vmul.f32 %v639_v60, %v637_v59  ;;  %v643_v2 = vadd.f32 %v642_v62, %v6597_v20 }
 0x13a   : > { %v644_v1 = vpop.f32.mrf.mxu0 }
 0x13b   : > { %v645_v5 = vadd.f32 %v644_v1, %v6599_v21  ;;  %5202 = vmatprep.mubr.f32.mxu1 %v6825_v63  ;;  %5282 = vmatprep.mubr.f32.mxu0 %v6825_v63 }
 0x13c   : > { %v648_v6 = vpop.f32.mrf.mxu0 }
 0x13d   : > { %v6831_v7 = vmul.f32 %v645_v5, %v643_v2  ;;  %v649_v11 = vadd.f32 %v648_v6, %v6597_v20  ;;  %v6877_v2 = vpop.f32.mrf.mxu1 }
 0x13e   : > { %v650_v9 = vpop.f32.mrf.mxu0  ;;  %9122 = vst [vmem:[#allocation10_spill] sm:$0xff] %v6877_v2 }
 0x13f   : > { %v651_v12 = vadd.f32 %v650_v9, %v6599_v21  ;;  %5203 = vmatmul.mubr.f32.gmra.mxu1 %v6831_v7  ;;  %5283 = vmatmul.mubr.f32.gmra.mxu0 %v6831_v7 }
 0x140   : > { %v654_v13 = vpop.f32.mrf.mxu0 }
 0x141   : > { %v6837_v14 = vmul.f32 %v651_v12, %v649_v11  ;;  %v655_v19 = vadd.f32 %v654_v13, %v6597_v20  ;;  %v6885_v13 = vpop.f32.mrf.mxu1 }
 0x142   : > { %v656_v16 = vpop.f32.mrf.mxu0  ;;  %9123 = vst [vmem:[#allocation11_spill] sm:$0xff] %v6885_v13 }
 0x143   : > { %v657_v4 = vadd.f32 %v656_v16, %v6599_v21  ;;  %5205 = vmatprep.mubr.f32.mxu1 %v6837_v14  ;;  %5285 = vmatprep.mubr.f32.mxu0 %v6837_v14 }
 0x144   : > { %v660_v22 = vpop.f32.mrf.mxu0 }
 0x145   : > { %v6843_v24 = vmul.f32 %v657_v4, %v655_v19  ;;  %v661_v29 = vadd.f32 %v660_v22, %v6597_v20 }
 0x146   : > { %v662_v28 = vpop.f32.mrf.mxu0 }
 0x147   : > { %v663_v31 = vadd.f32 %v662_v28, %v6599_v21  ;;  %5206 = vmatmul.mubr.f32.gmra.mxu1 %v6843_v24  ;;  %5286 = vmatmul.mubr.f32.gmra.mxu0 %v6843_v24  ;;  %v6893_v28 = vpop.f32.mrf.mxu1 }
 0x148   : > { %v666_v33 = vpop.f32.mrf.mxu0  ;;  %9124 = vst [vmem:[#allocation12_spill] sm:$0xff] %v6893_v28 }
 0x149   : > { %v6851_v34 = vmul.f32 %v663_v31, %v661_v29  ;;  %v667_v40 = vadd.f32 %v666_v33, %v6597_v20  ;;  %v6899_v29 = vpop.f32.mrf.mxu1 }
 0x14a   : > { %v668_v38 = vpop.f32.mrf.mxu0  ;;  %9125 = vst [vmem:[#allocation13_spill] sm:$0xff] %v6899_v29 }
 0x14b   : > { %v669_v41 = vadd.f32 %v668_v38, %v6599_v21  ;;  %5208 = vmatprep.mubr.f32.mxu1 %v6851_v34  ;;  %5288 = vmatprep.mubr.f32.mxu0 %v6851_v34 }
 0x14c   : > { %v672_v42 = vpop.f32.mrf.mxu0 }
 0x14d   : > { %v6859_v44 = vmul.f32 %v669_v41, %v667_v40  ;;  %v673_v49 = vadd.f32 %v672_v42, %v6597_v20 }
 0x14e   : > { %v674_v47 = vpop.f32.mrf.mxu0 }
 0x14f   : > { %v675_v51 = vadd.f32 %v674_v47, %v6599_v21  ;;  %5209 = vmatmul.mubr.f32.gmra.mxu1 %v6859_v44  ;;  %5289 = vmatmul.mubr.f32.gmra.mxu0 %v6859_v44 }
 0x150   : > { %v678_v52 = vpop.f32.mrf.mxu0 }
 0x151   : > { %v6867_v53 = vmul.f32 %v675_v51, %v673_v49  ;;  %v679_v59 = vadd.f32 %v678_v52, %v6597_v20 }
 0x152   : > { %v680_v58 = vpop.f32.mrf.mxu0 }
 0x153   : > { %v681_v60 = vadd.f32 %v680_v58, %v6599_v21  ;;  %5211 = vmatprep.mubr.f32.mxu1 %v6867_v53  ;;  %5291 = vmatprep.mubr.f32.mxu0 %v6867_v53 }
 0x154   : > { %v684_v62 = vpop.f32.mrf.mxu0 }
 0x155   : > { %v6875_v1 = vmul.f32 %v681_v60, %v679_v59  ;;  %v685_v6 = vadd.f32 %v684_v62, %v6597_v20 }
 0x156   : > { %v686_v5 = vpop.f32.mrf.mxu0 }
 0x157   : > { %v687_v9 = vadd.f32 %v686_v5, %v6599_v21  ;;  %5212 = vmatmul.mubr.f32.gmra.mxu1 %v6875_v1  ;;  %5292 = vmatmul.mubr.f32.gmra.mxu0 %v6875_v1 }
 0x158   : > { %v690_v11 = vpop.f32.mrf.mxu0 }
 0x159   : > { %v6883_v12 = vmul.f32 %v687_v9, %v685_v6  ;;  %v691_v19 = vadd.f32 %v690_v11, %v6597_v20  ;;  %v6905_v20 = vpop.f32.mrf.mxu1 }
 0x15a   : > { %v692_v16 = vpop.f32.mrf.mxu0  ;;  %9126 = vst [vmem:[#allocation14_spill] sm:$0xff] %v6905_v20 }
 0x15b   : > { %v693_v4 = vadd.f32 %v692_v16, %v6599_v21  ;;  %5214 = vmatprep.mubr.f32.mxu1 %v6883_v12  ;;  %5294 = vmatprep.mubr.f32.mxu0 %v6883_v12  ;;  %v6911_v21 = vpop.f32.mrf.mxu1 }
 0x15c   : > { %9127 = vst [vmem:[#allocation15_spill] sm:$0xff] %v6911_v21 }
 0x15d   : > { %v6891_v22 = vmul.f32 %v693_v4, %v691_v19 }
 0x15f   : > { %5215 = vmatmul.mubr.f32.gmra.mxu1 %v6891_v22  ;;  %5295 = vmatmul.mubr.f32.gmra.mxu0 %v6891_v22 }
 0x160   : > { %5329 = vmatprep.mubr.f32.mxu1 %v6603_v27  ;;  %5409 = vmatprep.mubr.f32.mxu0 %v6603_v27  ;;  %v6917_v27 = vpop.f32.mrf.mxu1 }
 0x161   : > { %9128 = vst [vmem:[#allocation16_spill] sm:$0xff] %v6917_v27 }
 0x163   : > { %5330 = vmatmul.mubr.f32.vlgmr.msra.gmra.mxu1 %v6609_v32  ;;  %5410 = vmatmul.mubr.f32.vlgmr.msra.gmra.mxu0 %v6609_v32  ;;  %v6923_v32 = vpop.f32.mrf.mxu1 }
 0x164   : > { %5332 = vmatprep.mubr.f32.mxu1 %v6621_v39  ;;  %5412 = vmatprep.mubr.f32.mxu0 %v6621_v39  ;;  %9129 = vst [vmem:[#allocation17_spill] sm:$0xff] %v6923_v32 }
 0x165   : > { %v6929_v39 = vpop.f32.mrf.mxu1 }
 0x166   : > { %9130 = vst [vmem:[#allocation18_spill] sm:$0xff] %v6929_v39 }
 0x167   : > { %5333 = vmatmul.mubr.f32.gmra.mxu1 %v6639_v48  ;;  %5413 = vmatmul.mubr.f32.gmra.mxu0 %v6639_v48  ;;  %v6935_v48 = vpop.f32.mrf.mxu1 }
 0x168   : > { %5335 = vmatprep.mubr.f32.mxu1 %v6651_v55  ;;  %5415 = vmatprep.mubr.f32.mxu0 %v6651_v55  ;;  %9131 = vst [vmem:[#allocation19_spill] sm:$0xff] %v6935_v48 }
 0x169   : > { %v6941_v55 = vpop.f32.mrf.mxu1 }
 0x16a   : > { %9132 = vst [vmem:[#allocation20_spill] sm:$0xff] %v6941_v55 }
 0x16b   : > { %5336 = vmatmul.mubr.f32.gmra.mxu1 %v6669_v0  ;;  %5416 = vmatmul.mubr.f32.gmra.mxu0 %v6669_v0  ;;  %v6947_v0 = vpop.f32.mrf.mxu1 }
 0x16c   : > { %5338 = vmatprep.mubr.f32.mxu1 %v6681_v8  ;;  %5418 = vmatprep.mubr.f32.mxu0 %v6681_v8  ;;  %9133 = vst [vmem:[#allocation21_spill] sm:$0xff] %v6947_v0 }
 0x16d   : > { %v6953_v8 = vpop.f32.mrf.mxu1 }
 0x16e   : > { %9134 = vst [vmem:[#allocation22_spill] sm:$0xff] %v6953_v8 }
 0x16f   : > { %5339 = vmatmul.mubr.f32.gmra.mxu1 %v6699_v18  ;;  %5419 = vmatmul.mubr.f32.gmra.mxu0 %v6699_v18  ;;  %v6959_v18 = vpop.f32.mrf.mxu1 }
 0x170   : > { %5341 = vmatprep.mubr.f32.mxu1 %v6711_v26  ;;  %5421 = vmatprep.mubr.f32.mxu0 %v6711_v26  ;;  %9135 = vst [vmem:[#allocation23_spill] sm:$0xff] %v6959_v18 }
 0x171   : > { %v6965_v26 = vpop.f32.mrf.mxu1 }
 0x172   : > { %9136 = vst [vmem:[#allocation24_spill] sm:$0xff] %v6965_v26 }
 0x173   : > { %5342 = vmatmul.mubr.f32.gmra.mxu1 %v6729_v37  ;;  %5422 = vmatmul.mubr.f32.gmra.mxu0 %v6729_v37  ;;  %v6971_v37 = vpop.f32.mrf.mxu1 }
 0x174   : > { %5344 = vmatprep.mubr.f32.mxu1 %v6741_v45  ;;  %5424 = vmatprep.mubr.f32.mxu0 %v6741_v45  ;;  %9137 = vst [vmem:[#allocation25_spill] sm:$0xff] %v6971_v37  ;;  %v4531_v45 = vld [vmem:[%s8987_s4 + $0x4] sm:$0xf] }
 0x175   : > { %5457 = vmatprep.subr.msk.mxu1 %vm2691_vm1, %v4531_v45 }
 0x176   : > { %5458 = vmatpush3.msk.msra.mxu1 %vm2691_vm1, %v4531_v45 }
 0x177   : > { %5345 = vmatmul.mubr.f32.gmra.mxu1 %v6759_v56  ;;  %5425 = vmatmul.mubr.f32.gmra.mxu0 %v6759_v56  ;;  %v2559_v56 = vld [vmem:[%s8987_s4] sm:$0xf] }
 0x178   : > { %5347 = vmatprep.mubr.f32.mxu1 %v6765_v61  ;;  %5427 = vmatprep.mubr.f32.mxu0 %v6765_v61  ;;  %v6983_v61 = vpop.f32.mrf.mxu1 }
 0x179   : > { %9138 = vst [vmem:[#allocation26_spill] sm:$0xff] %v6983_v61  ;;  %5507 = vmatprep.subr.msk.mxu0 %vm2691_vm1, %v2559_v56 }
 0x17a   : > { %5508 = vmatpush3.msk.msra.mxu0 %vm2691_vm1, %v2559_v56 }
 0x17b   : > { %5348 = vmatmul.mubr.f32.gmra.mxu1 %v6771_v3  ;;  %5428 = vmatmul.mubr.f32.gmra.mxu0 %v6771_v3  ;;  %v6993_v3 = vpop.f32.mrf.mxu1 }
 0x17c   : > { %5350 = vmatprep.mubr.f32.mxu1 %v6777_v10  ;;  %5430 = vmatprep.mubr.f32.mxu0 %v6777_v10  ;;  %9139 = vst [vmem:[#allocation27_spill] sm:$0xff] %v6993_v3 }
 0x17d   : > { %v6999_v10 = vpop.f32.mrf.mxu1 }
 0x17e   : > { %9140 = vst [vmem:[#allocation28_spill] sm:$0xff] %v6999_v10 }
 0x17f   : > { %5351 = vmatmul.mubr.f32.gmra.mxu1 %v6783_v15  ;;  %5431 = vmatmul.mubr.f32.gmra.mxu0 %v6783_v15  ;;  %v7003_v15 = vpop.f32.mrf.mxu1 }
 0x180   : > { %5353 = vmatprep.mubr.f32.mxu1 %v6789_v23  ;;  %5433 = vmatprep.mubr.f32.mxu0 %v6789_v23  ;;  %9141 = vst [vmem:[#allocation29_spill] sm:$0xff] %v7003_v15 }
 0x181   : > { %v7005_v23 = vpop.f32.mrf.mxu1 }
 0x182   : > { %9142 = vst [vmem:[#allocation30_spill] sm:$0xff] %v7005_v23 }
 0x183   : > { %5354 = vmatmul.mubr.f32.gmra.mxu1 %v6795_v30  ;;  %5434 = vmatmul.mubr.f32.gmra.mxu0 %v6795_v30  ;;  %v7007_v30 = vpop.f32.mrf.mxu1 }
 0x184   : > { %5356 = vmatprep.mubr.f32.mxu1 %v6801_v36  ;;  %5436 = vmatprep.mubr.f32.mxu0 %v6801_v36  ;;  %9143 = vst [vmem:[#allocation31_spill] sm:$0xff] %v7007_v30 }
 0x185   : > { %v7009_v36 = vpop.f32.mrf.mxu1 }
 0x186   : > { %9144 = vst [vmem:[#allocation32_spill] sm:$0xff] %v7009_v36 }
 0x187   : > { %5357 = vmatmul.mubr.f32.gmra.mxu1 %v6807_v43  ;;  %5437 = vmatmul.mubr.f32.gmra.mxu0 %v6807_v43  ;;  %v7011_v43 = vpop.f32.mrf.mxu1 }
 0x188   : > { %5359 = vmatprep.mubr.f32.mxu1 %v6813_v50  ;;  %5439 = vmatprep.mubr.f32.mxu0 %v6813_v50  ;;  %9145 = vst [vmem:[#allocation33_spill] sm:$0xff] %v7011_v43 }
 0x189   : > { %v7013_v50 = vpop.f32.mrf.mxu1 }
 0x18a   : > { %9146 = vst [vmem:[#allocation34_spill] sm:$0xff] %v7013_v50 }
 0x18b   : > { %5360 = vmatmul.mubr.f32.gmra.mxu1 %v6819_v57  ;;  %5440 = vmatmul.mubr.f32.gmra.mxu0 %v6819_v57  ;;  %v7015_v57 = vpop.f32.mrf.mxu1 }
 0x18c   : > { %5362 = vmatprep.mubr.f32.mxu1 %v6825_v63  ;;  %5442 = vmatprep.mubr.f32.mxu0 %v6825_v63  ;;  %9147 = vst [vmem:[#allocation35_spill] sm:$0xff] %v7015_v57 }
 0x18d   : > { %v7017_v63 = vpop.f32.mrf.mxu1 }
 0x18e   : > { %9148 = vst [vmem:[#allocation36_spill] sm:$0xff] %v7017_v63 }
 0x18f   : > { %5363 = vmatmul.mubr.f32.gmra.mxu1 %v6831_v7  ;;  %5443 = vmatmul.mubr.f32.gmra.mxu0 %v6831_v7  ;;  %v7019_v7 = vpop.f32.mrf.mxu1 }
 0x190   : > { %5365 = vmatprep.mubr.f32.mxu1 %v6837_v14  ;;  %5445 = vmatprep.mubr.f32.mxu0 %v6837_v14  ;;  %9149 = vst [vmem:[#allocation37_spill] sm:$0xff] %v7019_v7 }
 0x193   : > { %5366 = vmatmul.mubr.f32.gmra.mxu1 %v6843_v24  ;;  %5446 = vmatmul.mubr.f32.gmra.mxu0 %v6843_v24 }
 0x194   : > { %5368 = vmatprep.mubr.f32.mxu1 %v6851_v34  ;;  %5448 = vmatprep.mubr.f32.mxu0 %v6851_v34 }
 0x197   : > { %5369 = vmatmul.mubr.f32.gmra.mxu1 %v6859_v44  ;;  %5449 = vmatmul.mubr.f32.gmra.mxu0 %v6859_v44 }
 0x198   : > { %5371 = vmatprep.mubr.f32.mxu1 %v6867_v53  ;;  %5451 = vmatprep.mubr.f32.mxu0 %v6867_v53 }
 0x19b   : > { %5372 = vmatmul.mubr.f32.gmra.mxu1 %v6875_v1  ;;  %5452 = vmatmul.mubr.f32.gmra.mxu0 %v6875_v1 }
 0x19c   : > { %5374 = vmatprep.mubr.f32.mxu1 %v6883_v12  ;;  %5454 = vmatprep.mubr.f32.mxu0 %v6883_v12 }
 0x19f   : > { %5375 = vmatmul.mubr.f32.gmra.mxu1 %v6891_v22  ;;  %5455 = vmatmul.mubr.f32.gmra.mxu0 %v6891_v22 }
 0x1a7   : > { %v7021_v14 = vpop.f32.mrf.mxu1  ;;  %v7023_v24 = vpop.f32.mrf.mxu0 }
 0x1a9   : > { %v7025_v31 = vpop.f32.mrf.mxu1  ;;  %v7027_v33 = vpop.f32.mrf.mxu0 }
 0x1af   : > { %v7029_v34 = vpop.f32.mrf.mxu1  ;;  %v7031_v38 = vpop.f32.mrf.mxu0 }
 0x1b1   : > { %v7033_v40 = vpop.f32.mrf.mxu1  ;;  %v7035_v41 = vpop.f32.mrf.mxu0 }
 0x1b7   : > { %v7037_v42 = vpop.f32.mrf.mxu1  ;;  %v7039_v44 = vpop.f32.mrf.mxu0 }
 0x1b9   : > { %v7041_v47 = vpop.f32.mrf.mxu1  ;;  %v7043_v49 = vpop.f32.mrf.mxu0 }
 0x1bf   : > { %v7045_v51 = vpop.f32.mrf.mxu1  ;;  %v7047_v52 = vpop.f32.mrf.mxu0 }
 0x1c1   : > { %v7049_v53 = vpop.f32.mrf.mxu1  ;;  %v7051_v58 = vpop.f32.mrf.mxu0 }
 0x1c7   : > { %v7053_v59 = vpop.f32.mrf.mxu1  ;;  %v7055_v60 = vpop.f32.mrf.mxu0 }
 0x1c9   : > { %v7057_v62 = vpop.f32.mrf.mxu1  ;;  %v7059_v1 = vpop.f32.mrf.mxu0 }
 0x1cf   : > { %v7061_v5 = vpop.f32.mrf.mxu1  ;;  %v7063_v6 = vpop.f32.mrf.mxu0 }
 0x1d1   : > { %v7065_v9 = vpop.f32.mrf.mxu1  ;;  %v7067_v11 = vpop.f32.mrf.mxu0 }
 0x1d7   : > { %v7069_v12 = vpop.f32.mrf.mxu1  ;;  %v7071_v16 = vpop.f32.mrf.mxu0 }
 0x1d9   : > { %v7073_v19 = vpop.f32.mrf.mxu1  ;;  %v7075_v4 = vpop.f32.mrf.mxu0 }
 0x1df   : > { %v7077_v22 = vpop.f32.mrf.mxu1  ;;  %v7079_v45 = vpop.f32.mrf.mxu0 }
 0x1e1   : > { %v7081_v56 = vpop.f32.mrf.mxu1  ;;  %v7083_v7 = vpop.f32.mrf.mxu0 }
 0x1e7   : > { %v7085_v63 = vpop.f32.mrf.mxu1  ;;  %v7087_v57 = vpop.f32.mrf.mxu0 }
 0x1e9   : > { %v7089_v50 = vpop.f32.mrf.mxu1  ;;  %v7091_v43 = vpop.f32.mrf.mxu0 }
 0x1ef   : > { %v7093_v36 = vpop.f32.mrf.mxu1  ;;  %v7095_v30 = vpop.f32.mrf.mxu0 }
 0x1f0   : > { %9150 = vst [vmem:[#allocation38_spill] sm:$0xff] %v7093_v36 }
 0x1f1   : > { %v7097_v23 = vpop.f32.mrf.mxu1  ;;  %v7099_v15 = vpop.f32.mrf.mxu0 }
 0x1f2   : > { %9151 = vst [vmem:[#allocation39_spill] sm:$0xff] %v7097_v23  ;;  %9152 = vst [vmem:[#allocation40_spill] sm:$0xff] %v7099_v15 }
 0x1f7   : > { %v7101_v10 = vpop.f32.mrf.mxu1  ;;  %v7103_v3 = vpop.f32.mrf.mxu0 }
 0x1f8   : > { %9153 = vst [vmem:[#allocation41_spill] sm:$0xff] %v7101_v10  ;;  %9154 = vst [vmem:[#allocation42_spill] sm:$0xff] %v7103_v3 }
 0x1f9   : > { %v7105_v61 = vpop.f32.mrf.mxu1  ;;  %v7107_v37 = vpop.f32.mrf.mxu0 }
 0x1fa   : > { %9155 = vst [vmem:[#allocation43_spill] sm:$0xff] %v7105_v61  ;;  %9156 = vst [vmem:[#allocation44_spill] sm:$0xff] %v7107_v37 }
 0x1ff   : > { %v7109_v26 = vpop.f32.mrf.mxu1  ;;  %v7111_v18 = vpop.f32.mrf.mxu0 }
 0x200   : > { %9157 = vst [vmem:[#allocation45_spill] sm:$0xff] %v7109_v26  ;;  %9158 = vst [vmem:[#allocation46_spill] sm:$0xff] %v7111_v18 }
 0x201   : > { %v7113_v8 = vpop.f32.mrf.mxu1  ;;  %v7115_v0 = vpop.f32.mrf.mxu0 }
 0x202   : > { %9159 = vst [vmem:[#allocation47_spill] sm:$0xff] %v7113_v8  ;;  %9160 = vst [vmem:[#allocation48_spill] sm:$0xff] %v7115_v0 }
 0x207   : > { %v7117_v55 = vpop.f32.mrf.mxu1  ;;  %v7119_v48 = vpop.f32.mrf.mxu0 }
 0x208   : > { %9161 = vst [vmem:[#allocation49_spill] sm:$0xff] %v7117_v55  ;;  %9162 = vst [vmem:[#allocation50_spill] sm:$0xff] %v7119_v48 }
 0x209   : > { %v7121_v39 = vpop.f32.mrf.mxu1  ;;  %v7123_v32 = vpop.f32.mrf.mxu0 }
 0x20a   : > { %9163 = vst [vmem:[#allocation51_spill] sm:$0xff] %v7121_v39  ;;  %9164 = vst [vmem:[#allocation52_spill] sm:$0xff] %v7123_v32 }
 0x20f   : > { %v7125_v27 = vpop.f32.mrf.mxu1  ;;  %v7127_v21 = vpop.f32.mrf.mxu0 }
 0x210   : > { %9165 = vst [vmem:[#allocation53_spill] sm:$0xff] %v7125_v27  ;;  %9166 = vst [vmem:[#allocation54_spill] sm:$0xff] %v7127_v21 }
 0x211   : > { %v7129_v20 = vpop.f32.mrf.mxu1  ;;  %v7131_v29 = vpop.f32.mrf.mxu0 }
 0x212   : > { %9167 = vst [vmem:[#allocation55_spill] sm:$0xff] %v7129_v20  ;;  %9168 = vst [vmem:[#allocation56_spill] sm:$0xff] %v7131_v29  ;;  %v1920_v20 = vmax.f32 %v7021_v14, %v7023_v24 }
 0x217   : > { %v7133_v28 = vpop.f32.mrf.mxu1  ;;  %v7135_v13 = vpop.f32.mrf.mxu0 }
 0x218   : > { %9169 = vst [vmem:[#allocation57_spill] sm:$0xff] %v7133_v28  ;;  %9170 = vst [vmem:[#allocation58_spill] sm:$0xff] %v7135_v13  ;;  %v1919_v28 = vmax.f32 %v7025_v31, %v7027_v33 }
 0x219   : > { %v7137_v2 = vpop.f32.mrf.mxu1  ;;  %v7139_v54 = vpop.f32.mrf.mxu0 }
 0x21a   : > { %9171 = vst [vmem:[#allocation59_spill] sm:$0xff] %v7137_v2  ;;  %9172 = vst [vmem:[#allocation60_spill] sm:$0xff] %v7139_v54 }
 0x21f   : > { %v7141_v46 = vpop.f32.mrf.mxu1  ;;  %v7143_v35 = vpop.f32.mrf.mxu0 }
 0x220   : > { %9173 = vst [vmem:[#allocation61_spill] sm:$0xff] %v7141_v46  ;;  %9174 = vst [vmem:[#allocation62_spill] sm:$0xff] %v7143_v35  ;;  %v1922_v46 = vmax.f32 %v7029_v34, %v7031_v38  ;;  %v1923_v35 = vmax.f32 %v7041_v47, %v7043_v49 }
 0x221   : > { %v7145_v25 = vpop.f32.mrf.mxu1  ;;  %v7147_v17 = vpop.f32.mrf.mxu0 }
 0x222   : > { %9175 = vst [vmem:[#allocation63_spill] sm:$0xff] %v7145_v25  ;;  %9176 = vst [vmem:[#allocation64_spill] sm:$0xff] %v7147_v17  ;;  %v1921_v25 = vmax.f32 %v7033_v40, %v7035_v41  ;;  %v1924_v17 = vmax.f32 %v7037_v42, %v7039_v44 }
 0x223   : > { %v5331_v29 = vpop.f32.mrf.mxu1  ;;  %v5411_v27 = vpop.f32.mrf.mxu0 }
 0x224   : > { %v1952_v13 = vmax.f32 %v1920_v20, %v5331_v29 }
 0x225   : > { %v1518_v2 = vpop.f32.mrf.mxu1  ;;  %v1760_v21 = vpop.f32.mrf.mxu0 }
 0x226   : > { %v1984_v54 = vmax.f32 %v1952_v13, %v5411_v27  ;;  %v1951_v39 = vmax.f32 %v1919_v28, %v1518_v2 }
 0x227   : > { %v5334_v32 = vpop.f32.mrf.mxu1  ;;  %v5414_v55 = vpop.f32.mrf.mxu0 }
 0x228   : > { %v2016_v20 = vsub.f32 %v7021_v14, %v1984_v54  ;;  %v2112_v48 = vsub.f32 %v7023_v24, %v1984_v54  ;;  %v2208_v13 = vsub.f32 %v5331_v29, %v1984_v54  ;;  %v2304_v28 = vsub.f32 %v5411_v27, %v1984_v54 }
 0x229   : > { %v1983_v26 = vmax.f32 %v1951_v39, %v1760_v21  ;;  %v1954_v18 = vmax.f32 %v1922_v46, %v5334_v32  ;;  %v1528_v61 = vpop.f32.mrf.mxu1  ;;  %v1770_v54 = vpop.f32.mrf.mxu0  ;;  %v1928_v46 = vmax.f32 %v7053_v59, %v7055_v60 }
 0x22a   : > { %v2049_v37 = vmul.f32 1.442695, %v2016_v20  ;;  %v2145_v10 = vmul.f32 1.442695, %v2112_v48  ;;  %v2241_v3 = vmul.f32 1.442695, %v2208_v13  ;;  %v1953_v23 = vmax.f32 %v1921_v25, %v1528_v61 }
 0x22b   : > { %v2337_v15 = vmul.f32 1.442695, %v2304_v28  ;;  %v2015_v14 = vsub.f32 %v7025_v31, %v1983_v26  ;;  %v2111_v24 = vsub.f32 %v7027_v33, %v1983_v26  ;;  %v2207_v29 = vsub.f32 %v1518_v2, %v1983_v26  ;;  %v7169_v27 = vpop.f32.mrf.mxu1 }
 0x22c   : > { %5779 = vpow2.f32 %v2049_v37  ;;  %v2303_v8 = vsub.f32 %v1760_v21, %v1983_v26  ;;  %v1986_v36 = vmax.f32 %v1954_v18, %v5414_v55  ;;  %v1985_v0 = vmax.f32 %v1953_v23, %v1770_v54  ;;  %v5417_v23 = vpop.f32.mrf.mxu0 }
 0x22d   : > { %5781 = vpow2.f32 %v2145_v10  ;;  %v2047_v39 = vmul.f32 1.442695, %v2015_v14  ;;  %v2143_v48 = vmul.f32 1.442695, %v2111_v24  ;;  %v2239_v25 = vmul.f32 1.442695, %v2207_v29  ;;  %v7175_v2 = vpop.f32.mrf.mxu1 }
 0x22e   : > { %5783 = vpow2.f32 %v2241_v3  ;;  %v2018_v31 = vsub.f32 %v7029_v34, %v1986_v36  ;;  %v2114_v33 = vsub.f32 %v7031_v38, %v1986_v36  ;;  %v2335_v20 = vmul.f32 1.442695, %v2303_v8  ;;  %v7183_v3 = vld [vmem:[%s8987_s4 + $0x8] sm:$0xf]  ;;  %v1780_v29 = vpop.f32.mrf.mxu0  ;;  %v9192_v14 = vld [vmem:[#allocation40_spill] sm:$0xff] }
 0x22f   : > { %5785 = vpow2.f32 %v2337_v15  ;;  %v2210_v37 = vsub.f32 %v5334_v32, %v1986_v36  ;;  %v2306_v21 = vsub.f32 %v5414_v55, %v1986_v36  ;;  %v1927_v18 = vmax.f32 %v7057_v62, %v7059_v1  ;;  %9177 = vst [vmem:[#allocation65_spill] sm:$0xff] %v7183_v3  ;;  %5557 = vmatprep.subr.msk.mxu1 %vm2691_vm1, %v7183_v3  ;;  %v7190_v38 = vpop.f32.mrf.mxu1 }
 0x230   : > { %5787 = vpow2.f32 %v2047_v39  ;;  %v2053_v26 = vmul.f32 1.442695, %v2018_v31  ;;  %v2017_v10 = vsub.f32 %v7033_v40, %v1985_v0  ;;  %v2149_v8 = vmul.f32 1.442695, %v2114_v33  ;;  %v7207_v31 = vld [vmem:[%s8987_s4 + $0xc] sm:$0xf] }
 0x231   : > { %5789 = vpow2.f32 %v2143_v48  ;;  %v2113_v32 = vsub.f32 %v7035_v41, %v1985_v0  ;;  %v2245_v55 = vmul.f32 1.442695, %v2210_v37  ;;  %v2209_v15 = vsub.f32 %v1528_v61, %v1985_v0  ;;  %9179 = vst [vmem:[#allocation66_spill] sm:$0xff] %v7207_v31  ;;  %5607 = vmatprep.subr.msk.mxu0 %vm2691_vm1, %v7207_v31 }
 0x232   : > { %5791 = vpow2.f32 %v2239_v25  ;;  %v2305_v36 = vsub.f32 %v1770_v54, %v1985_v0  ;;  %v2341_v40 = vmul.f32 1.442695, %v2306_v21  ;;  %v1956_v13 = vmax.f32 %v1924_v17, %v7169_v27  ;;  %v7202_v25 = vpop.f32.mrf.mxu1 }
 0x233   : > { %5793 = vpow2.f32 %v2335_v20  ;;  %v1955_v28 = vmax.f32 %v1923_v35, %v7175_v2  ;;  %v2051_v24 = vmul.f32 1.442695, %v2017_v10  ;;  %v2147_v61 = vmul.f32 1.442695, %v2113_v32 }
 0x234   : > { %5795 = vpow2.f32 %v2053_v26  ;;  %v1988_v0 = vmax.f32 %v1956_v13, %v5417_v23  ;;  %v2243_v39 = vmul.f32 1.442695, %v2209_v15  ;;  %v2339_v48 = vmul.f32 1.442695, %v2305_v36 }
 0x235   : > { %5797 = vpow2.f32 %v2149_v8  ;;  %v1987_v54 = vmax.f32 %v1955_v28, %v1780_v29  ;;  %v9178_v17 = vmax.f32 %v7045_v51, %v7047_v52  ;;  %v7217_v8 = vpop.f32.mrf.mxu0 }
 0x236   : > { %5799 = vpow2.f32 %v2245_v55  ;;  %v2020_v33 = vsub.f32 %v7037_v42, %v1988_v0  ;;  %v2116_v20 = vsub.f32 %v7039_v44, %v1988_v0  ;;  %v2212_v37 = vsub.f32 %v7169_v27, %v1988_v0 }
 0x237   : > { %v1958_v35 = vmax.f32 %v9178_v17, %v7190_v38  ;;  %5801 = vpow2.f32 %v2341_v40  ;;  %v2308_v26 = vsub.f32 %v5417_v23, %v1988_v0  ;;  %v2019_v10 = vsub.f32 %v7041_v47, %v1987_v54  ;;  %v7240_v17 = vpop.f32.mrf.mxu0 }
 0x238   : > { %5803 = vpow2.f32 %v2051_v24  ;;  %v2057_v42 = vmul.f32 1.442695, %v2020_v33  ;;  %v2153_v55 = vmul.f32 1.442695, %v2116_v20  ;;  %v9180_v44 = vmax.f32 %v7049_v53, %v7051_v58  ;;  %v7250_v20 = vpop.f32.mrf.mxu1 }
 0x239   : > { %v7219_v32 = vpop.eup %5779  ;;  %5805 = vpow2.f32 %v2147_v61  ;;  %v2249_v36 = vmul.f32 1.442695, %v2212_v37  ;;  %v2115_v23 = vsub.f32 %v7043_v49, %v1987_v54  ;;  %v7229_v47 = vmax.f32 %v1958_v35, %v7217_v8 }
 0x23a   : > { %v1957_v27 = vmax.f32 %v9180_v44, %v7202_v25  ;;  %v7225_v15 = vpop.eup %5781  ;;  %5807 = vpow2.f32 %v2243_v39  ;;  %v2345_v28 = vmul.f32 1.442695, %v2308_v26  ;;  %v2211_v24 = vsub.f32 %v7175_v2, %v1987_v54 }
 0x23b   : > { %v7231_v40 = vpop.eup %5783  ;;  %v2400_v13 = vadd.f32 %v7225_v15, %v7219_v32  ;;  %5809 = vpow2.f32 %v2339_v48  ;;  %v2055_v39 = vmul.f32 1.442695, %v2019_v10  ;;  %v2307_v49 = vsub.f32 %v1780_v29, %v1987_v54 }
 0x23c   : > { %9181 = vst [vmem:[#allocation67_spill] sm:$0xff] %v7231_v40  ;;  %v7236_v61 = vpop.eup %5785  ;;  %5811 = vpow2.f32 %v2057_v42  ;;  %v7248_v2 = vmax.f32 %v1957_v27, %v7240_v17  ;;  %v2151_v26 = vmul.f32 1.442695, %v2115_v23  ;;  %v2022_v29 = vsub.f32 %v7045_v51, %v7229_v47 }
 0x23d   : > { %9182 = vst [vmem:[#allocation68_spill] sm:$0xff] %v7236_v61  ;;  %v7242_v35 = vpop.eup %5787  ;;  %v2432_v48 = vadd.f32 %v7231_v40, %v2400_v13  ;;  %5813 = vpow2.f32 %v2153_v55  ;;  %v2118_v54 = vsub.f32 %v7047_v52, %v7229_v47  ;;  %v2247_v44 = vmul.f32 1.442695, %v2211_v24 }
 0x23e   : > { %v7252_v37 = vpop.eup %5789  ;;  %5815 = vpow2.f32 %v2249_v36  ;;  %v2343_v36 = vmul.f32 1.442695, %v2307_v49  ;;  %v2214_v23 = vsub.f32 %v7190_v38, %v7229_v47  ;;  %v1960_v51 = vmax.f32 %v1928_v46, %v7250_v20  ;;  %v7282_v46 = vpop.f32.mrf.mxu1 }
 0x23f   : > { %v7258_v10 = vpop.eup %5791  ;;  %v2464_v42 = vadd.f32 %v7236_v61, %v2432_v48  ;;  %v2399_v55 = vadd.f32 %v7252_v37, %v7242_v35  ;;  %5817 = vpow2.f32 %v2345_v28  ;;  %v2061_v38 = vmul.f32 1.442695, %v2022_v29  ;;  %v9203_v61 = vld [vmem:[#allocation43_spill] sm:$0xff] }
 0x240   : > { %9183 = vst [vmem:[#allocation69_spill] sm:$0xff] %v7258_v10  ;;  %v7263_v27 = vpop.eup %5793  ;;  %5819 = vpow2.f32 %v2055_v39  ;;  %v2157_v49 = vmul.f32 1.442695, %v2118_v54  ;;  %v2310_v48 = vsub.f32 %v7217_v8, %v7229_v47  ;;  %v2253_v29 = vmul.f32 1.442695, %v2214_v23 }
 0x241   : > { %9184 = vst [vmem:[#allocation70_spill] sm:$0xff] %v7263_v27  ;;  %v7271_v52 = vpop.eup %5795  ;;  %5821 = vrcp.f32 %v2464_v42  ;;  %v2431_v24 = vadd.f32 %v7258_v10, %v2399_v55  ;;  %v2021_v42 = vsub.f32 %v7049_v53, %v7248_v2  ;;  %v7291_v55 = vpop.f32.mrf.mxu0  ;;  %v2117_v8 = vsub.f32 %v7051_v58, %v7248_v2  ;;  %v9189_v58 = vld [vmem:[#allocation38_spill] sm:$0xff] }
 0x242   : > { %9185 = vst [vmem:[#allocation71_spill] sm:$0xff] %v7271_v52  ;;  %v7278_v39 = vpop.eup %5797  ;;  %5823 = vpow2.f32 %v2151_v26  ;;  %v7298_v47 = vmax.f32 %v1960_v51, %v7291_v55  ;;  %v2213_v53 = vsub.f32 %v7202_v25, %v7248_v2  ;;  %v2349_v51 = vmul.f32 1.442695, %v2310_v48 }
 0x243   : > { %9186 = vst [vmem:[#allocation72_spill] sm:$0xff] %v7278_v39  ;;  %v7284_v33 = vpop.eup %5799  ;;  %v2463_v13 = vadd.f32 %v7263_v27, %v2431_v24  ;;  %v2402_v28 = vadd.f32 %v7278_v39, %v7271_v52  ;;  %5825 = vpow2.f32 %v2247_v44  ;;  %v2059_v21 = vmul.f32 1.442695, %v2021_v42  ;;  %v9193_v24 = vld [vmem:[#allocation39_spill] sm:$0xff] }
 0x244   : > { %9187 = vst [vmem:[#allocation73_spill] sm:$0xff] %v7284_v33  ;;  %v7293_v26 = vpop.eup %5801  ;;  %5827 = vpow2.f32 %v2343_v36  ;;  %v1959_v36 = vmax.f32 %v1927_v18, %v7282_v46  ;;  %v7320_v18 = vpop.f32.mrf.mxu1  ;;  %v2155_v48 = vmul.f32 1.442695, %v2117_v8  ;;  %v2251_v42 = vmul.f32 1.442695, %v2213_v53 }
 0x245   : > { %9188 = vst [vmem:[#allocation74_spill] sm:$0xff] %v7293_v26  ;;  %v7300_v54 = vpop.eup %5803  ;;  %5829 = vrcp.f32 %v2463_v13  ;;  %v2434_v44 = vadd.f32 %v7284_v33, %v2402_v28  ;;  %v2309_v13 = vsub.f32 %v7240_v17, %v7248_v2  ;;  %v2024_v17 = vsub.f32 %v7053_v59, %v7298_v47  ;;  %v7328_v2 = vpop.f32.mrf.mxu0 }
 0x246   : > { %v7309_v23 = vpop.eup %5805  ;;  %5831 = vpow2.f32 %v2061_v38  ;;  %v7334_v34 = vmax.f32 %v1959_v36, %v7328_v2  ;;  %v9196_v59 = vmax.f32 %v7061_v5, %v7063_v6  ;;  %v2216_v36 = vsub.f32 %v7250_v20, %v7298_v47 }
 0x247   : > { %v7315_v0 = vpop.eup %5807  ;;  %v2466_v28 = vadd.f32 %v7293_v26, %v2434_v44  ;;  %v2401_v25 = vadd.f32 %v7309_v23, %v7300_v54  ;;  %5833 = vpow2.f32 %v2157_v49  ;;  %v2347_v38 = vmul.f32 1.442695, %v2309_v13  ;;  %v7366_v10 = vpop.f32.mrf.mxu0 }
 0x248   : > { %9190 = vst [vmem:[#allocation38_spill] sm:$0xff] %v7315_v0  ;;  %v7322_v41 = vpop.eup %5809  ;;  %5835 = vpow2.f32 %v2253_v29  ;;  %v2120_v29 = vsub.f32 %v7055_v60, %v7298_v47  ;;  %v1962_v8 = vmax.f32 %v9196_v59, %v7320_v18  ;;  %v9199_v60 = vld [vmem:[#allocation42_spill] sm:$0xff]  ;;  %v2065_v59 = vmul.f32 1.442695, %v2024_v17 }
 0x249   : > { %9191 = vst [vmem:[#allocation75_spill] sm:$0xff] %v7322_v41  ;;  %v7330_v44 = vpop.eup %5811  ;;  %5837 = vrcp.f32 %v2466_v28  ;;  %v2433_v49 = vadd.f32 %v7315_v0, %v2401_v25  ;;  %v9200_v25 = vld [vmem:[#allocation41_spill] sm:$0xff]  ;;  %v2312_v40 = vsub.f32 %v7291_v55, %v7298_v47  ;;  %v2023_v27 = vsub.f32 %v7057_v62, %v7334_v34  ;;  %v7403_v52 = vpop.f32.mrf.mxu0 }
 0x24a   : > { %9194 = vst [vmem:[#allocation40_spill] sm:$0xff] %v7330_v44  ;;  %v7336_v26 = vpop.eup %5813  ;;  %5839 = vpow2.f32 %v2349_v51  ;;  %v7351_v51 = vpop.f32.mrf.mxu1  ;;  %v7371_v17 = vmax.f32 %v1962_v8, %v7366_v10  ;;  %v9205_v55 = vmax.f32 %v7065_v9, %v7067_v11  ;;  %v2257_v62 = vmul.f32 1.442695, %v2216_v36 }
 0x24b   : > { %9195 = vst [vmem:[#allocation39_spill] sm:$0xff] %v7336_v26  ;;  %v7344_v33 = vpop.eup %5815  ;;  %v2465_v28 = vadd.f32 %v7322_v41, %v2433_v49  ;;  %v2404_v53 = vadd.f32 %v7336_v26, %v7330_v44  ;;  %5841 = vpow2.f32 %v2059_v21  ;;  %v9202_v41 = vld [vmem:[#allocation44_spill] sm:$0xff]  ;;  %v2119_v21 = vsub.f32 %v7059_v1, %v7334_v34 }
 0x24c   : > { %9197 = vst [vmem:[#allocation76_spill] sm:$0xff] %v7344_v33  ;;  %v7353_v13 = vpop.eup %5817  ;;  %5843 = vpow2.f32 %v2155_v48  ;;  %v2161_v48 = vmul.f32 1.442695, %v2120_v29  ;;  %v1961_v47 = vmax.f32 %v9205_v55, %v7351_v51  ;;  %v2353_v29 = vmul.f32 1.442695, %v2312_v40  ;;  %v7388_v55 = vpop.f32.mrf.mxu1 }
 0x24d   : > { %9198 = vst [vmem:[#allocation77_spill] sm:$0xff] %v7353_v13  ;;  %v7359_v49 = vpop.eup %5819  ;;  %5845 = vrcp.f32 %v2465_v28  ;;  %v2436_v20 = vadd.f32 %v7344_v33, %v2404_v53  ;;  %v2215_v8 = vsub.f32 %v7282_v46, %v7334_v34  ;;  %v2311_v1 = vsub.f32 %v7328_v2, %v7334_v34 }
 0x24e   : > { %9201 = vst [vmem:[#allocation42_spill] sm:$0xff] %v7359_v49  ;;  %v7368_v44 = vpop.eup %5821  ;;  %5847 = vpow2.f32 %v2251_v42  ;;  %v2026_v46 = vsub.f32 %v7061_v5, %v7371_v17  ;;  %v9215_v34 = vmax.f32 %v7069_v12, %v7071_v16 }
 0x24f   : > { %9204 = vst [vmem:[#allocation41_spill] sm:$0xff] %v7368_v44  ;;  %v7377_v28 = vpop.eup %5823  ;;  %v2468_v53 = vadd.f32 %v7353_v13, %v2436_v20  ;;  %5849 = vpow2.f32 %v2347_v38  ;;  %v9209_v20 = vld [vmem:[#allocation46_spill] sm:$0xff]  ;;  %v9210_v38 = vld [vmem:[#allocation45_spill] sm:$0xff]  ;;  %v2063_v13 = vmul.f32 1.442695, %v2023_v27 }
 0x250   : > { %9206 = vst [vmem:[#allocation44_spill] sm:$0xff] %v7377_v28  ;;  %v7382_v0 = vpop.eup %5825  ;;  %v2403_v42 = vadd.f32 %v7377_v28, %v7359_v49  ;;  %5851 = vpow2.f32 %v2065_v59  ;;  %v9212_v49 = vld [vmem:[#allocation48_spill] sm:$0xff]  ;;  %v9213_v59 = vld [vmem:[#allocation47_spill] sm:$0xff]  ;;  %v2159_v27 = vmul.f32 1.442695, %v2119_v21  ;;  %v1964_v2 = vmax.f32 %v9215_v34, %v7388_v55  ;;  %v7425_v34 = vpop.f32.mrf.mxu1 }
 0x251   : > { %9207 = vst [vmem:[#allocation43_spill] sm:$0xff] %v7382_v0  ;;  %v7390_v33 = vpop.eup %5827  ;;  %5853 = vrcp.f32 %v2468_v53  ;;  %v7408_v53 = vmax.f32 %v1961_v47, %v7403_v52  ;;  %v2255_v5 = vmul.f32 1.442695, %v2215_v8  ;;  %v2351_v47 = vmul.f32 1.442695, %v2311_v1 }
 0x252   : > { %9208 = vst [vmem:[#allocation78_spill] sm:$0xff] %v7390_v33  ;;  %v7396_v26 = vpop.eup %5829  ;;  %v2435_v28 = vadd.f32 %v7382_v0, %v2403_v42  ;;  %5855 = vpow2.f32 %v2161_v48  ;;  %v2122_v42 = vsub.f32 %v7063_v6, %v7371_v17  ;;  %v2314_v6 = vsub.f32 %v7366_v10, %v7371_v17  ;;  %v7454_v8 = vpop.f32.mrf.mxu1 }
 0x253   : > { %9211 = vst [vmem:[#allocation46_spill] sm:$0xff] %v7396_v26  ;;  %v7405_v39 = vpop.eup %5831  ;;  %5857 = vpow2.f32 %v2257_v62  ;;  %v2218_v62 = vsub.f32 %v7320_v18, %v7371_v17  ;;  %v2025_v18 = vsub.f32 %v7065_v9, %v7408_v53  ;;  %v9225_v10 = vmax.f32 %v7073_v19, %v7075_v4 }
 0x254   : > { %9214 = vst [vmem:[#allocation45_spill] sm:$0xff] %v7405_v39  ;;  %v7414_v40 = vpop.eup %5833  ;;  %v2467_v48 = vadd.f32 %v7390_v33, %v2435_v28  ;;  %5859 = vpow2.f32 %v2353_v29  ;;  %v9220_v29 = vld [vmem:[#allocation49_spill] sm:$0xff]  ;;  %v2069_v33 = vmul.f32 1.442695, %v2026_v46  ;;  %v2165_v46 = vmul.f32 1.442695, %v2122_v42 }
 0x255   : > { %9216 = vst [vmem:[#allocation48_spill] sm:$0xff] %v7414_v40  ;;  %v7419_v36 = vpop.eup %5835  ;;  %v2406_v21 = vadd.f32 %v7414_v40, %v7405_v39  ;;  %5861 = vpow2.f32 %v2063_v13  ;;  %v1963_v17 = vmax.f32 %v9225_v10, %v7425_v34  ;;  %v2121_v9 = vsub.f32 %v7067_v11, %v7408_v53 }
 0x256   : > { %9217 = vst [vmem:[#allocation47_spill] sm:$0xff] %v7419_v36  ;;  %v7427_v0 = vpop.eup %5837  ;;  %5863 = vrcp.f32 %v2467_v48  ;;  %v2357_v42 = vmul.f32 1.442695, %v2314_v6  ;;  %v2217_v10 = vsub.f32 %v7351_v51, %v7408_v53  ;;  %v2313_v11 = vsub.f32 %v7403_v52, %v7408_v53 }
 0x257   : > { %9218 = vst [vmem:[#allocation79_spill] sm:$0xff] %v7427_v0  ;;  %v7433_v31 = vpop.eup %5839  ;;  %v2438_v40 = vadd.f32 %v7419_v36, %v2406_v21  ;;  %5865 = vpow2.f32 %v2159_v27  ;;  %v7440_v0 = vpop.f32.mrf.mxu0  ;;  %v2261_v21 = vmul.f32 1.442695, %v2218_v62  ;;  %v9232_v51 = vmax.f32 %v7077_v22, %v7079_v45 }
 0x258   : > { %9221 = vst [vmem:[#allocation49_spill] sm:$0xff] %v7433_v31  ;;  %v7442_v3 = vpop.eup %5841  ;;  %5867 = vpow2.f32 %v2255_v5  ;;  %v1996_v48 = vmax.f32 %v1964_v2, %v7440_v0 }
 0x259   : > { %9224 = vst [vmem:[#allocation80_spill] sm:$0xff] %v7442_v3  ;;  %v7449_v1 = vpop.eup %5843  ;;  %v2470_v27 = vadd.f32 %v7433_v31, %v2438_v40  ;;  %5869 = vpow2.f32 %v2351_v47  ;;  %v2067_v31 = vmul.f32 1.442695, %v2025_v18  ;;  %v7472_v6 = vpop.f32.mrf.mxu0  ;;  %v2163_v18 = vmul.f32 1.442695, %v2121_v9  ;;  %v9240_v47 = vld [vmem:[#allocation57_spill] sm:$0xff] }
 0x25a   : > { %9226 = vst [vmem:[#allocation81_spill] sm:$0xff] %v7449_v1  ;;  %v7456_v5 = vpop.eup %5845  ;;  %v2405_v2 = vadd.f32 %v7449_v1, %v7442_v3  ;;  %5871 = vpow2.f32 %v2069_v33  ;;  %v2028_v33 = vsub.f32 %v7069_v12, %v1996_v48  ;;  %v1966_v3 = vmax.f32 %v9232_v51, %v7454_v8  ;;  %v9236_v12 = vld [vmem:[#allocation55_spill] sm:$0xff]  ;;  %v7489_v40 = vpop.f32.mrf.mxu1 }
 0x25b   : > { %9227 = vst [vmem:[#allocation82_spill] sm:$0xff] %v7456_v5  ;;  %v7462_v36 = vpop.eup %5847  ;;  %5873 = vrcp.f32 %v2470_v27  ;;  %v2124_v52 = vsub.f32 %v7071_v16, %v1996_v48  ;;  %v7482_v53 = vmax.f32 %v1963_v17, %v7472_v6  ;;  %v2259_v1 = vmul.f32 1.442695, %v2217_v10  ;;  %v7501_v10 = vpop.f32.mrf.mxu0 }
 0x25c   : > { %9228 = vst [vmem:[#allocation83_spill] sm:$0xff] %v7462_v36  ;;  %v7468_v39 = vpop.eup %5849  ;;  %v2437_v13 = vadd.f32 %v7462_v36, %v2405_v2  ;;  %5875 = vpow2.f32 %v2165_v46  ;;  %v9235_v46 = vld [vmem:[#allocation56_spill] sm:$0xff]  ;;  %v2220_v16 = vsub.f32 %v7388_v55, %v1996_v48  ;;  %v2316_v17 = vsub.f32 %v7440_v0, %v1996_v48 }
 0x25d   : > { %9231 = vst [vmem:[#allocation84_spill] sm:$0xff] %v7468_v39  ;;  %v7478_v62 = vpop.eup %5851  ;;  %5877 = vpow2.f32 %v2261_v21  ;;  %v2355_v21 = vmul.f32 1.442695, %v2313_v11  ;;  %v2027_v55 = vsub.f32 %v7073_v19, %v7482_v53  ;;  %v1998_v0 = vmax.f32 %v1966_v3, %v7501_v10 }
 0x25e   : > { %9233 = vst [vmem:[#allocation85_spill] sm:$0xff] %v7478_v62  ;;  %v7484_v27 = vpop.eup %5853  ;;  %v2469_v36 = vadd.f32 %v7468_v39, %v2437_v13  ;;  %5879 = vpow2.f32 %v2357_v42  ;;  %v2073_v42 = vmul.f32 1.442695, %v2028_v33  ;;  %v9243_v33 = vmax.f32 %v7081_v56, %v7083_v7 }
 0x25f   : > { %9234 = vst [vmem:[#allocation86_spill] sm:$0xff] %v7484_v27  ;;  %v7491_v51 = vpop.eup %5855  ;;  %5881 = vpow2.f32 %v2067_v31  ;;  %v2169_v31 = vmul.f32 1.442695, %v2124_v52 }
 0x260   : > { %9237 = vst [vmem:[#allocation56_spill] sm:$0xff] %v7491_v51  ;;  %v7495_v9 = vpop.eup %5857  ;;  %5883 = vrcp.f32 %v2469_v36  ;;  %v2408_v13 = vadd.f32 %v7491_v51, %v7478_v62  ;;  %v2123_v36 = vsub.f32 %v7075_v4, %v7482_v53  ;;  %v1965_v28 = vmax.f32 %v9243_v33, %v7489_v40 }
 0x261   : > { %9238 = vst [vmem:[#allocation55_spill] sm:$0xff] %v7495_v9  ;;  %v7503_v2 = vpop.eup %5859  ;;  %5885 = vpow2.f32 %v2163_v18  ;;  %v7517_v18 = vpop.f32.mrf.mxu1  ;;  %v2265_v62 = vmul.f32 1.442695, %v2220_v16  ;;  %v2361_v51 = vmul.f32 1.442695, %v2316_v17  ;;  %v2219_v4 = vsub.f32 %v7425_v34, %v7482_v53 }
 0x262   : > { %9241 = vst [vmem:[#allocation57_spill] sm:$0xff] %v7503_v2  ;;  %v7508_v48 = vpop.eup %5861  ;;  %v2440_v11 = vadd.f32 %v7495_v9, %v2408_v13  ;;  %5887 = vpow2.f32 %v2259_v1  ;;  %v2315_v33 = vsub.f32 %v7472_v6, %v7482_v53  ;;  %v7530_v9 = vpop.f32.mrf.mxu0  ;;  %v2071_v16 = vmul.f32 1.442695, %v2027_v55 }
 0x263   : > { %9242 = vst [vmem:[#allocation87_spill] sm:$0xff] %v7508_v48  ;;  %v7519_v52 = vpop.eup %5863  ;;  %5889 = vpow2.f32 %v2355_v21  ;;  %v9249_v17 = vmax.f32 %v7085_v63, %v7087_v57  ;;  %v2167_v34 = vmul.f32 1.442695, %v2123_v36  ;;  %v2030_v6 = vsub.f32 %v7077_v22, %v1998_v0  ;;  %v9254_v36 = vld [vmem:[#allocation61_spill] sm:$0xff] }
 0x264   : > { %9244 = vst [vmem:[#allocation88_spill] sm:$0xff] %v7519_v52  ;;  %v7523_v13 = vpop.eup %5865  ;;  %v2472_v1 = vadd.f32 %v7503_v2, %v2440_v11  ;;  %5891 = vpow2.f32 %v2073_v42  ;;  %v7544_v53 = vmax.f32 %v1965_v28, %v7530_v9  ;;  %v2222_v55 = vsub.f32 %v7454_v8, %v1998_v0  ;;  %v7558_v19 = vpop.f32.mrf.mxu0 }
 0x265   : > { %9247 = vst [vmem:[#allocation89_spill] sm:$0xff] %v7523_v13  ;;  %v7532_v27 = vpop.eup %5867  ;;  %v2407_v21 = vadd.f32 %v7523_v13, %v7508_v48  ;;  %5893 = vpow2.f32 %v2169_v31  ;;  %v1968_v42 = vmax.f32 %v9249_v17, %v7517_v18  ;;  %v2126_v31 = vsub.f32 %v7079_v45, %v1998_v0  ;;  %v7551_v48 = vpop.f32.mrf.mxu1 }
 0x266   : > { %9248 = vst [vmem:[#allocation90_spill] sm:$0xff] %v7532_v27  ;;  %v7540_v11 = vpop.eup %5869  ;;  %5895 = vrcp.f32 %v2472_v1  ;;  %v2263_v22 = vmul.f32 1.442695, %v2219_v4  ;;  %v2318_v28 = vsub.f32 %v7501_v10, %v1998_v0  ;;  %v2359_v45 = vmul.f32 1.442695, %v2315_v33 }
 0x267   : > { %9250 = vst [vmem:[#allocation91_spill] sm:$0xff] %v7540_v11  ;;  %v7546_v3 = vpop.eup %5871  ;;  %v2439_v2 = vadd.f32 %v7532_v27, %v2407_v21  ;;  %5897 = vpow2.f32 %v2265_v62  ;;  %v2000_v8 = vmax.f32 %v1968_v42, %v7558_v19  ;;  %v2029_v10 = vsub.f32 %v7081_v56, %v7544_v53  ;;  %v7574_v33 = vpop.f32.mrf.mxu1 }
 0x268   : > { %9251 = vst [vmem:[#allocation92_spill] sm:$0xff] %v7546_v3  ;;  %v7553_v17 = vpop.eup %5873  ;;  %5899 = vpow2.f32 %v2361_v51  ;;  %v2077_v51 = vmul.f32 1.442695, %v2030_v6  ;;  %v2173_v4 = vmul.f32 1.442695, %v2126_v31  ;;  %v9259_v56 = vmax.f32 %v7089_v50, %v7091_v43 }
 0x269   : > { %9252 = vst [vmem:[#allocation93_spill] sm:$0xff] %v7553_v17  ;;  %v7560_v39 = vpop.eup %5875  ;;  %v2471_v62 = vadd.f32 %v7540_v11, %v2439_v2  ;;  %5901 = vpow2.f32 %v2071_v16  ;;  %v2269_v13 = vmul.f32 1.442695, %v2222_v55  ;;  %v2125_v2 = vsub.f32 %v7083_v7, %v7544_v53 }
 0x26a   : > { %9255 = vst [vmem:[#allocation61_spill] sm:$0xff] %v7560_v39  ;;  %v7564_v21 = vpop.eup %5877  ;;  %v2410_v27 = vadd.f32 %v7560_v39, %v7546_v3  ;;  %5903 = vpow2.f32 %v2167_v34  ;;  %v2365_v34 = vmul.f32 1.442695, %v2318_v28  ;;  %v1967_v6 = vmax.f32 %v9259_v56, %v7551_v48  ;;  %v9267_v39 = vld [vmem:[#allocation63_spill] sm:$0xff] }
 0x26b   : > { %9256 = vst [vmem:[#allocation94_spill] sm:$0xff] %v7564_v21  ;;  %v7570_v0 = vpop.eup %5879  ;;  %5905 = vrcp.f32 %v2471_v62  ;;  %v2221_v31 = vsub.f32 %v7489_v40, %v7544_v53  ;;  %v2317_v7 = vsub.f32 %v7530_v9, %v7544_v53  ;;  %v2032_v55 = vsub.f32 %v7085_v63, %v2000_v8  ;;  %v7590_v62 = vpop.f32.mrf.mxu0 }
 0x26c   : > { %9257 = vst [vmem:[#allocation95_spill] sm:$0xff] %v7570_v0  ;;  %v7576_v16 = vpop.eup %5881  ;;  %v2442_v42 = vadd.f32 %v7564_v21, %v2410_v27  ;;  %5907 = vpow2.f32 %v2263_v22  ;;  %v2075_v28 = vmul.f32 1.442695, %v2029_v10  ;;  %v2171_v63 = vmul.f32 1.442695, %v2125_v2 }
 0x26d   : > { %9258 = vst [vmem:[#allocation96_spill] sm:$0xff] %v7576_v16  ;;  %v7583_v11 = vpop.eup %5883  ;;  %5909 = vpow2.f32 %v2359_v45  ;;  %v9262_v45 = vmax.f32 %v9189_v58, %v7095_v30  ;;  %v2128_v9 = vsub.f32 %v7087_v57, %v2000_v8  ;;  %v2320_v10 = vsub.f32 %v7558_v19, %v2000_v8  ;;  %v5438_v2 = vpop.f32.mrf.mxu0 }
 0x26e   : > { %9260 = vst [vmem:[#allocation97_spill] sm:$0xff] %v7583_v11  ;;  %v7592_v27 = vpop.eup %5885  ;;  %v2474_v22 = vadd.f32 %v7570_v0, %v2442_v42  ;;  %5911 = vpow2.f32 %v2077_v51  ;;  %v2224_v51 = vsub.f32 %v7517_v18, %v2000_v8  ;;  %v1999_v42 = vmax.f32 %v1967_v6, %v7590_v62  ;;  %v7609_v0 = vpop.f32.mrf.mxu1 }
 0x26f   : > { %9261 = vst [vmem:[#allocation98_spill] sm:$0xff] %v7592_v27  ;;  %v1970_v56 = vmax.f32 %v9262_v45, %v7574_v33  ;;  %v7599_v21 = vpop.eup %5887  ;;  %v2409_v40 = vadd.f32 %v7592_v27, %v7576_v16  ;;  %5913 = vpow2.f32 %v2173_v4  ;;  %v2267_v57 = vmul.f32 1.442695, %v2221_v31 }
 0x270   : > { %9263 = vst [vmem:[#allocation99_spill] sm:$0xff] %v7599_v21  ;;  %v7604_v53 = vpop.eup %5889  ;;  %5915 = vrcp.f32 %v2474_v22  ;;  %v2363_v18 = vmul.f32 1.442695, %v2317_v7  ;;  %v2081_v22 = vmul.f32 1.442695, %v2032_v55 }
 0x271   : > { %9264 = vst [vmem:[#allocation100_spill] sm:$0xff] %v7604_v53  ;;  %v7611_v45 = vpop.eup %5891  ;;  %v2441_v4 = vadd.f32 %v7599_v21, %v2409_v40  ;;  %5917 = vpow2.f32 %v2269_v13  ;;  %v2002_v19 = vmax.f32 %v1970_v56, %v5438_v2  ;;  %v2177_v16 = vmul.f32 1.442695, %v2128_v9 }
 0x272   : > { %9265 = vst [vmem:[#allocation101_spill] sm:$0xff] %v7611_v45  ;;  %v7616_v27 = vpop.eup %5893  ;;  %5919 = vpow2.f32 %v2365_v34  ;;  %v2273_v13 = vmul.f32 1.442695, %v2224_v51  ;;  %v2369_v31 = vmul.f32 1.442695, %v2320_v10  ;;  %v2031_v40 = vsub.f32 %v7089_v50, %v1999_v42  ;;  %v7626_v34 = vpop.f32.mrf.mxu1 }
 0x273   : > { %v7618_v8 = vpop.eup %5895  ;;  %v2473_v6 = vadd.f32 %v7604_v53, %v2441_v4  ;;  %v2412_v1 = vadd.f32 %v7616_v27, %v7611_v45  ;;  %5921 = vpow2.f32 %v2075_v28  ;;  %v2127_v56 = vsub.f32 %v7091_v43, %v1999_v42  ;;  %v7641_v10 = vpop.f32.mrf.mxu0 }
 0x274   : > { %9268 = vst [vmem:[#allocation63_spill] sm:$0xff] %v7618_v8  ;;  %v7623_v3 = vpop.eup %5897  ;;  %5923 = vpow2.f32 %v2171_v63  ;;  %v9271_v28 = vmax.f32 %v9193_v24, %v9192_v14  ;;  %v2223_v63 = vsub.f32 %v7551_v48, %v1999_v42  ;;  %v2319_v50 = vsub.f32 %v7590_v62, %v1999_v42 }
 0x275   : > { %9269 = vst [vmem:[#allocation102_spill] sm:$0xff] %v7623_v3  ;;  %v7628_v7 = vpop.eup %5899  ;;  %5925 = vrcp.f32 %v2473_v6  ;;  %v2444_v55 = vadd.f32 %v7623_v3, %v2412_v1  ;;  %v2034_v51 = vsub.f32 %v9189_v58, %v2002_v19  ;;  %v2130_v6 = vsub.f32 %v7095_v30, %v2002_v19 }
 0x276   : > { %9270 = vst [vmem:[#allocation103_spill] sm:$0xff] %v7628_v7  ;;  %v1969_v9 = vmax.f32 %v9271_v28, %v7609_v0  ;;  %v7636_v4 = vpop.eup %5901  ;;  %5927 = vpow2.f32 %v2267_v57  ;;  %v9272_v57 = vmax.f32 %v9200_v25, %v9199_v60  ;;  %v2226_v62 = vsub.f32 %v7574_v33, %v2002_v19 }
 0x277   : > { %v7643_v1 = vpop.eup %5903  ;;  %v2476_v43 = vadd.f32 %v7628_v7, %v2444_v55  ;;  %5929 = vpow2.f32 %v2363_v18  ;;  %v2322_v42 = vsub.f32 %v5438_v2, %v2002_v19  ;;  %v2079_v18 = vmul.f32 1.442695, %v2031_v40  ;;  %v7659_v7 = vpop.f32.mrf.mxu1 }
 0x278   : > { %v1972_v28 = vmax.f32 %v9272_v57, %v7626_v34  ;;  %v7651_v48 = vpop.eup %5905  ;;  %v2411_v58 = vadd.f32 %v7643_v1, %v7636_v4  ;;  %5931 = vpow2.f32 %v2081_v22  ;;  %v2175_v55 = vmul.f32 1.442695, %v2127_v56  ;;  %v7664_v22 = vpop.f32.mrf.mxu0 }
 0x279   : > { %9273 = vst [vmem:[#allocation104_spill] sm:$0xff] %v7651_v48  ;;  %v7656_v3 = vpop.eup %5907  ;;  %5933 = vrcp.f32 %v2476_v43  ;;  %v2001_v30 = vmax.f32 %v1969_v9, %v7641_v10  ;;  %v2271_v21 = vmul.f32 1.442695, %v2223_v63  ;;  %v2367_v45 = vmul.f32 1.442695, %v2319_v50 }
 0x27a   : > { %9274 = vst [vmem:[#allocation105_spill] sm:$0xff] %v7656_v3  ;;  %v7661_v53 = vpop.eup %5909  ;;  %v2443_v57 = vadd.f32 %v7656_v3, %v2411_v58  ;;  %5935 = vpow2.f32 %v2177_v16  ;;  %v2085_v2 = vmul.f32 1.442695, %v2034_v51  ;;  %v2181_v19 = vmul.f32 1.442695, %v2130_v6  ;;  %v7683_v6 = vpop.f32.mrf.mxu1 }
 0x27b   : > { %9275 = vst [vmem:[#allocation106_spill] sm:$0xff] %v7661_v53  ;;  %v7666_v33 = vpop.eup %5911  ;;  %5937 = vpow2.f32 %v2273_v13  ;;  %v7669_v40 = vmax.f32 %v1972_v28, %v7664_v22  ;;  %v2277_v43 = vmul.f32 1.442695, %v2226_v62  ;;  %v2373_v58 = vmul.f32 1.442695, %v2322_v42 }
 0x27c   : > { %9276 = vst [vmem:[#allocation107_spill] sm:$0xff] %v7666_v33  ;;  %v7671_v56 = vpop.eup %5913  ;;  %v2475_v9 = vadd.f32 %v7661_v53, %v2443_v57  ;;  %5939 = vpow2.f32 %v2369_v31  ;;  %v2033_v13 = vsub.f32 %v9193_v24, %v2001_v30  ;;  %v9277_v50 = vmax.f32 %v9203_v61, %v9202_v41 }
 0x27d   : > { %v7674_v16 = vpop.eup %5915  ;;  %v2414_v63 = vadd.f32 %v7671_v56, %v7666_v33  ;;  %5941 = vpow2.f32 %v2079_v18  ;;  %v2129_v31 = vsub.f32 %v9192_v14, %v2001_v30  ;;  %v2225_v62 = vsub.f32 %v7609_v0, %v2001_v30 }
 0x27e   : > { %v1971_v51 = vmax.f32 %v9277_v50, %v7659_v7  ;;  %v7685_v28 = vpop.eup %5917  ;;  %5943 = vrcp.f32 %v2475_v9  ;;  %v2321_v42 = vsub.f32 %v7641_v10, %v2001_v30  ;;  %v2036_v18 = vsub.f32 %v9200_v25, %v7669_v40  ;;  %v7703_v10 = vpop.f32.mrf.mxu0 }
 0x27f   : > { %9278 = vst [vmem:[#allocation108_spill] sm:$0xff] %v7685_v28  ;;  %v7690_v57 = vpop.eup %5919  ;;  %v2446_v24 = vadd.f32 %v7685_v28, %v2414_v63  ;;  %5945 = vpow2.f32 %v2175_v55  ;;  %v2560_v50 = vmul.f32 %v7396_v26, %v7252_v37  ;;  %v2132_v14 = vsub.f32 %v9199_v60, %v7669_v40 }
 0x280   : > { %9279 = vst [vmem:[#allocation109_spill] sm:$0xff] %v7690_v57  ;;  %v7697_v53 = vpop.eup %5921  ;;  %5947 = vpow2.f32 %v2271_v21  ;;  %v2228_v0 = vsub.f32 %v7626_v34, %v7669_v40  ;;  %v9280_v55 = vmax.f32 %v9210_v38, %v9209_v20  ;;  %v2083_v9 = vmul.f32 1.442695, %v2033_v13  ;;  %v7722_v13 = vpop.f32.mrf.mxu1 }
 0x281   : > { %v7709_v25 = vpop.eup %5923  ;;  %v2478_v37 = vadd.f32 %v7690_v57, %v2446_v24  ;;  %5949 = vpow2.f32 %v2367_v45  ;;  %v2003_v21 = vmax.f32 %v1971_v51, %v7703_v10  ;;  %5459 = vmatprep.mubr.msk.f32.mxu1 %vm2594_vm2, %v2560_v50  ;;  %v2179_v63 = vmul.f32 1.442695, %v2129_v31 }
 0x282   : > { %v1974_v30 = vmax.f32 %v9280_v55, %v7683_v6  ;;  %v7714_v60 = vpop.eup %5925  ;;  %v2413_v34 = vadd.f32 %v7709_v25, %v7697_v53  ;;  %5951 = vpow2.f32 %v2085_v2  ;;  %v2275_v28 = vmul.f32 1.442695, %v2225_v62 }
 0x283   : > { %9281 = vst [vmem:[#allocation110_spill] sm:$0xff] %v7714_v60  ;;  %v7718_v3 = vpop.eup %5927  ;;  %5953 = vrcp.f32 %v2478_v37  ;;  %v2371_v55 = vmul.f32 1.442695, %v2321_v42  ;;  %v2089_v33 = vmul.f32 1.442695, %v2036_v18  ;;  %v2324_v45 = vsub.f32 %v7664_v22, %v7669_v40  ;;  %v7733_v42 = vpop.f32.mrf.mxu0 }
 0x284   : > { %9282 = vst [vmem:[#allocation111_spill] sm:$0xff] %v7718_v3  ;;  %v7724_v51 = vpop.eup %5929  ;;  %v2445_v24 = vadd.f32 %v7718_v3, %v2413_v34  ;;  %5955 = vpow2.f32 %v2181_v19  ;;  %v2185_v50 = vmul.f32 1.442695, %v2132_v14  ;;  %v7727_v57 = vmul.f32 1.442695, %v2228_v0  ;;  %v7758_v34 = vpop.f32.mrf.mxu1  ;;  %v9299_v3 = vld [vmem:[#allocation79_spill] sm:$0xff] }
 0x285   : > { %9283 = vst [vmem:[#allocation112_spill] sm:$0xff] %v7724_v51  ;;  %v7729_v2 = vpop.eup %5931  ;;  %5957 = vpow2.f32 %v2277_v43  ;;  %v2035_v31 = vsub.f32 %v9203_v61, %v2003_v21  ;;  %v2131_v62 = vsub.f32 %v9202_v41, %v2003_v21  ;;  %v2527_v22 = vmul.f32 %v7396_v26, %v7242_v35 }
 0x286   : > { %9284 = vst [vmem:[#allocation113_spill] sm:$0xff] %v7729_v2  ;;  %v7737_v40 = vpop.eup %5933  ;;  %v2477_v18 = vadd.f32 %v7724_v51, %v2445_v24  ;;  %5959 = vpow2.f32 %v2373_v58  ;;  %v7741_v19 = vmax.f32 %v1974_v30, %v7733_v42  ;;  %v9285_v43 = vmax.f32 %v9213_v59, %v9212_v49  ;;  %v9298_v51 = vld [vmem:[#allocation72_spill] sm:$0xff] }
 0x287   : > { %v7747_v14 = vpop.eup %5935  ;;  %5961 = vpow2.f32 %v2083_v9  ;;  %v2227_v41 = vsub.f32 %v7659_v7, %v2003_v21  ;;  %v2323_v35 = vsub.f32 %v7703_v10, %v2003_v21  ;;  %5509 = vmatprep.mubr.msk.f32.mxu0 %vm2594_vm2, %v2527_v22  ;;  %v2561_v58 = vmul.f32 %v7368_v44, %v7225_v15  ;;  %v7764_v21 = vpop.f32.mrf.mxu0 }
 0x288   : > { %v1973_v61 = vmax.f32 %v9285_v43, %v7722_v13  ;;  %v7754_v0 = vpop.eup %5937  ;;  %5963 = vrcp.f32 %v2477_v18  ;;  %v2416_v30 = vadd.f32 %v7747_v14, %v7729_v2  ;;  %v2377_v37 = vmul.f32 1.442695, %v2324_v45 }
 0x289   : > { %9286 = vst [vmem:[#allocation114_spill] sm:$0xff] %v7754_v0  ;;  %v2528_v9 = vmul.f32 %v7368_v44, %v7219_v32  ;;  %v7762_v7 = vpop.eup %5939  ;;  %5965 = vpow2.f32 %v2179_v63  ;;  %v2087_v10 = vmul.f32 1.442695, %v2035_v31  ;;  %5460 = vmatmul.mubr.msk.f32.vlgmr.msra.gmra.mxu1 %vm2594_vm2, %v2561_v58  ;;  %v2562_v15 = vmul.f32 %v7456_v5, %v7309_v23  ;;  %v9288_v31 = vld [vmem:[#allocation65_spill] sm:$0xff]  ;;  %v9289_v58 = vld [vmem:[#allocation66_spill] sm:$0xff] }
 0x28a   : > { %9287 = vst [vmem:[#allocation115_spill] sm:$0xff] %v7762_v7  ;;  %v2529_v24 = vmul.f32 %v7456_v5, %v7300_v54  ;;  %v7771_v45 = vpop.eup %5941  ;;  %v2448_v22 = vadd.f32 %v7754_v0, %v2416_v30  ;;  %5967 = vpow2.f32 %v2275_v28  ;;  %v2038_v32 = vsub.f32 %v9210_v38, %v7741_v19  ;;  %5558 = vmatpush3.msk.msra.mxu1 %vm2691_vm1, %v9288_v31  ;;  %v7813_v31 = vpop.f32.mrf.mxu0 }
 0x28b   : > { %v7777_v63 = vmax.f32 %v1973_v61, %v7764_v21  ;;  %5510 = vmatmul.mubr.msk.f32.vlgmr.msra.gmra.mxu0 %vm2594_vm2, %v2528_v9  ;;  %v7782_v23 = vpop.eup %5943  ;;  %5969 = vpow2.f32 %v2371_v55  ;;  %v2183_v54 = vmul.f32 1.442695, %v2131_v62  ;;  %v2279_v18 = vmul.f32 1.442695, %v2227_v41  ;;  %5462 = vmatprep.mubr.msk.f32.mxu1 %vm2594_vm2, %v2562_v15  ;;  %v7794_v55 = vpop.f32.mrf.mxu1 }
 0x28c   : > { %v2375_v43 = vmul.f32 1.442695, %v2323_v35  ;;  %5608 = vmatpush3.msk.msra.mxu0 %vm2691_vm1, %v9289_v58  ;;  %v7787_v38 = vpop.eup %5945  ;;  %v2480_v28 = vadd.f32 %v7762_v7, %v2448_v22  ;;  %5971 = vpow2.f32 %v2089_v33  ;;  %v2134_v61 = vsub.f32 %v9209_v20, %v7741_v19  ;;  %5512 = vmatprep.mubr.msk.f32.mxu0 %vm2594_vm2, %v2529_v24  ;;  %v9291_v33 = vld [vmem:[#allocation50_spill] sm:$0xff]  ;;  %v9295_v58 = vld [vmem:[#allocation51_spill] sm:$0xff] }
 0x28d   : > { %v2230_v30 = vsub.f32 %v7683_v6, %v7741_v19  ;;  %v7797_v62 = vpop.eup %5947  ;;  %v2415_v41 = vadd.f32 %v7787_v38, %v7771_v45  ;;  %5973 = vpow2.f32 %v2185_v50  ;;  %v2326_v35 = vsub.f32 %v7733_v42, %v7741_v19  ;;  %v7833_v26 = vpop.f32.mrf.mxu1 }
 0x28e   : > { %9290 = vst [vmem:[#allocation65_spill] sm:$0xff] %v7797_v62  ;;  %v9292_v20 = vmax.f32 %v9220_v29, %v9291_v33  ;;  %v7807_v15 = vpop.eup %5949  ;;  %5975 = vrcp.f32 %v2480_v28  ;;  %v2093_v6 = vmul.f32 1.442695, %v2038_v32  ;;  %v2037_v24 = vsub.f32 %v9213_v59, %v7777_v63  ;;  %v9296_v32 = vld [vmem:[#allocation52_spill] sm:$0xff] }
 0x28f   : > { %9293 = vst [vmem:[#allocation66_spill] sm:$0xff] %v7807_v15  ;;  %v2133_v22 = vsub.f32 %v9212_v49, %v7777_v63  ;;  %v7815_v50 = vpop.eup %5951  ;;  %v2447_v42 = vadd.f32 %v7797_v62, %v2415_v41  ;;  %5977 = vpow2.f32 %v7727_v57  ;;  %v2229_v19 = vsub.f32 %v7722_v13, %v7777_v63  ;;  %v9306_v62 = vld [vmem:[#allocation71_spill] sm:$0xff] }
 0x290   : > { %v1976_v9 = vmax.f32 %v9292_v20, %v7758_v34  ;;  %9294 = vst [vmem:[#allocation50_spill] sm:$0xff] %v7815_v50  ;;  %v9297_v28 = vmax.f32 %v9295_v58, %v9296_v32  ;;  %v7825_v59 = vpop.eup %5953  ;;  %5979 = vpow2.f32 %v2377_v37  ;;  %v2189_v49 = vmul.f32 1.442695, %v2134_v61 }
 0x291   : > { %v2285_v0 = vmul.f32 1.442695, %v2230_v30  ;;  %v2563_v5 = vmul.f32 %v9299_v3, %v9298_v51  ;;  %v7829_v44 = vpop.eup %5955  ;;  %v2479_v57 = vadd.f32 %v7807_v15, %v2447_v42  ;;  %5981 = vpow2.f32 %v2087_v10  ;;  %v7841_v30 = vpop.f32.mrf.mxu0 }
 0x292   : > { %v1975_v20 = vmax.f32 %v9297_v28, %v7794_v55  ;;  %9300 = vst [vmem:[#allocation51_spill] sm:$0xff] %v7829_v44  ;;  %v2381_v41 = vmul.f32 1.442695, %v2326_v35  ;;  %v2008_v13 = vmax.f32 %v1976_v9, %v7813_v31  ;;  %v7835_v7 = vpop.eup %5957  ;;  %v2418_v37 = vadd.f32 %v7829_v44, %v7815_v50 }
 0x293   : > { %9301 = vst [vmem:[#allocation52_spill] sm:$0xff] %v7835_v7  ;;  %5983 = vpow2.f32 %v2183_v54  ;;  %v2091_v61 = vmul.f32 1.442695, %v2037_v24  ;;  %v2325_v51 = vsub.f32 %v7764_v21, %v7777_v63  ;;  %5463 = vmatmul.mubr.msk.f32.gmra.mxu1 %vm2594_vm2, %v2563_v5  ;;  %v7844_v10 = vpop.eup %5959  ;;  %v2187_v35 = vmul.f32 1.442695, %v2133_v22  ;;  %v9303_v24 = vld [vmem:[#allocation53_spill] sm:$0xff] }
 0x294   : > { %9302 = vst [vmem:[#allocation72_spill] sm:$0xff] %v7844_v10  ;;  %5985 = vrcp.f32 %v2479_v57  ;;  %v2283_v9 = vmul.f32 1.442695, %v2229_v19  ;;  %v7847_v42 = vmax.f32 %v1975_v20, %v7841_v30  ;;  %v7849_v28 = vpop.eup %5961  ;;  %v2450_v54 = vadd.f32 %v7835_v7, %v2418_v37  ;;  %v9304_v21 = vld [vmem:[#allocation54_spill] sm:$0xff] }
 0x295   : > { %5987 = vpow2.f32 %v2279_v18  ;;  %v9305_v63 = vmax.f32 %v9303_v24, %v9304_v21  ;;  %v2530_v5 = vmul.f32 %v9299_v3, %v9306_v62  ;;  %v7858_v50 = vpop.eup %5963  ;;  %v2040_v22 = vsub.f32 %v9220_v29, %v2008_v13 }
 0x296   : > { %5989 = vpow2.f32 %v2375_v43  ;;  %v2136_v19 = vsub.f32 %v9291_v33, %v2008_v13  ;;  %v2232_v20 = vsub.f32 %v7758_v34, %v2008_v13  ;;  %v7863_v57 = vpop.eup %5965  ;;  %v2482_v18 = vadd.f32 %v7844_v10, %v2450_v54  ;;  %v9309_v34 = vld [vmem:[#allocation42_spill] sm:$0xff]  ;;  %v9311_v54 = vld [vmem:[#allocation39_spill] sm:$0xff]  ;;  %v9313_v10 = vld [vmem:[#allocation40_spill] sm:$0xff] }
 0x297   : > { %v1978_v15 = vmax.f32 %v9305_v63, %v7833_v26  ;;  %5991 = vpow2.f32 %v2093_v6  ;;  %v2328_v37 = vsub.f32 %v7813_v31, %v2008_v13  ;;  %5513 = vmatmul.mubr.msk.f32.gmra.mxu0 %vm2594_vm2, %v2530_v5  ;;  %v9307_v63 = vld [vmem:[#allocation44_spill] sm:$0xff]  ;;  %v7870_v3 = vpop.eup %5967  ;;  %v2417_v29 = vadd.f32 %v7863_v57, %v7849_v28  ;;  %v5450_v31 = vpop.f32.mrf.mxu0  ;;  %v9312_v5 = vld [vmem:[#allocation86_spill] sm:$0xff] }
 0x298   : > { %v2564_v62 = vmul.f32 %v7519_v52, %v9307_v63  ;;  %9308 = vst [vmem:[#allocation53_spill] sm:$0xff] %v7870_v3  ;;  %5993 = vpow2.f32 %v2189_v49  ;;  %v2379_v43 = vmul.f32 1.442695, %v2325_v51  ;;  %v2531_v33 = vmul.f32 %v7519_v52, %v9309_v34  ;;  %v7876_v7 = vpop.eup %5969  ;;  %v7880_v13 = vpop.f32.mrf.mxu1 }
 0x299   : > { %9310 = vst [vmem:[#allocation54_spill] sm:$0xff] %v7876_v7  ;;  %5995 = vrcp.f32 %v2482_v18  ;;  %v2039_v6 = vsub.f32 %v9295_v58, %v7847_v42  ;;  %v2565_v63 = vmul.f32 %v9312_v5, %v9311_v54  ;;  %v2532_v49 = vmul.f32 %v9312_v5, %v9313_v10  ;;  %v7887_v51 = vpop.eup %5971 }
 0x29a   : > { %5465 = vmatprep.mubr.msk.f32.mxu1 %vm2594_vm2, %v2564_v62  ;;  %9314 = vst [vmem:[#allocation71_spill] sm:$0xff] %v7887_v51  ;;  %v2449_v34 = vadd.f32 %v7870_v3, %v2417_v29  ;;  %5997 = vpow2.f32 %v2285_v0  ;;  %v2097_v18 = vmul.f32 1.442695, %v2040_v22  ;;  %v2010_v52 = vmax.f32 %v1978_v15, %v5450_v31  ;;  %5515 = vmatprep.mubr.msk.f32.mxu0 %vm2594_vm2, %v2531_v33  ;;  %v7891_v58 = vpop.eup %5973  ;;  %v7912_v29 = vpop.f32.mrf.mxu1 }
 0x29b   : > { %5999 = vpow2.f32 %v2381_v41  ;;  %v2193_v44 = vmul.f32 1.442695, %v2136_v19  ;;  %v2289_v62 = vmul.f32 1.442695, %v2232_v20  ;;  %v2385_v2 = vmul.f32 1.442695, %v2328_v37  ;;  %5466 = vmatmul.mubr.msk.f32.gmra.mxu1 %vm2594_vm2, %v2565_v63  ;;  %5516 = vmatmul.mubr.msk.f32.gmra.mxu0 %vm2594_vm2, %v2532_v49  ;;  %v7895_v10 = vpop.eup %5975 }
 0x29c   : > { %v2481_v54 = vadd.f32 %v7876_v7, %v2449_v34  ;;  %v2420_v0 = vadd.f32 %v7891_v58, %v7887_v51  ;;  %6001 = vpow2.f32 %v2091_v61  ;;  %v9315_v15 = vmax.f32 %v9236_v12, %v9235_v46  ;;  %v7904_v22 = vpop.eup %5977  ;;  %v7942_v5 = vpop.f32.mrf.mxu1  ;;  %v9330_v51 = vld [vmem:[#allocation45_spill] sm:$0xff] }
 0x29d   : > { %9316 = vst [vmem:[#allocation44_spill] sm:$0xff] %v7904_v22  ;;  %6003 = vpow2.f32 %v2187_v35  ;;  %v2135_v19 = vsub.f32 %v9296_v32, %v7847_v42  ;;  %v2231_v20 = vsub.f32 %v7794_v55, %v7847_v42  ;;  %v2327_v37 = vsub.f32 %v7841_v30, %v7847_v42  ;;  %v7914_v61 = vpop.eup %5979 }
 0x29e   : > { %v1977_v41 = vmax.f32 %v9315_v15, %v7880_v13  ;;  %9317 = vst [vmem:[#allocation42_spill] sm:$0xff] %v7914_v61  ;;  %6005 = vrcp.f32 %v2481_v54  ;;  %v2452_v33 = vadd.f32 %v7904_v22, %v2420_v0  ;;  %v2042_v63 = vsub.f32 %v9303_v24, %v2010_v52  ;;  %v7919_v49 = vpop.eup %5981  ;;  %v7922_v15 = vpop.f32.mrf.mxu0  ;;  %v9318_v24 = vld [vmem:[#allocation58_spill] sm:$0xff] }
 0x29f   : > { %v2138_v35 = vsub.f32 %v9304_v21, %v2010_v52  ;;  %6007 = vpow2.f32 %v2283_v9  ;;  %v2095_v32 = vmul.f32 1.442695, %v2039_v6  ;;  %v2234_v55 = vsub.f32 %v7833_v26, %v2010_v52 }
 0x2a0   : > { %v2330_v34 = vsub.f32 %v5450_v31, %v2010_v52  ;;  %v7924_v30 = vpop.eup %5983  ;;  %v2484_v42 = vadd.f32 %v7914_v61, %v2452_v33  ;;  %6009 = vpow2.f32 %v2379_v43  ;;  %v7928_v54 = vmax.f32 %v1977_v41, %v7922_v15 }
 0x2a1   : > { %v9319_v21 = vmax.f32 %v9240_v47, %v9318_v24  ;;  %v7934_v9 = vpop.eup %5985  ;;  %v2419_v26 = vadd.f32 %v7924_v30, %v7919_v49  ;;  %6011 = vpow2.f32 %v2097_v18  ;;  %v2191_v52 = vmul.f32 1.442695, %v2135_v19  ;;  %v7949_v18 = vpop.f32.mrf.mxu0 }
 0x2a2   : > { %v2287_v6 = vmul.f32 1.442695, %v2231_v20  ;;  %v7938_v31 = vpop.eup %5987  ;;  %6013 = vrcp.f32 %v2484_v42  ;;  %v2383_v43 = vmul.f32 1.442695, %v2327_v37  ;;  %v2101_v33 = vmul.f32 1.442695, %v2042_v63 }
 0x2a3   : > { %v1980_v0 = vmax.f32 %v9319_v21, %v7912_v29  ;;  %9320 = vst [vmem:[#allocation39_spill] sm:$0xff] %v7938_v31  ;;  %v7940_v41 = vmul.f32 1.442695, %v2138_v35  ;;  %v7944_v61 = vpop.eup %5989  ;;  %v2451_v21 = vadd.f32 %v7938_v31, %v2419_v26  ;;  %6015 = vpow2.f32 %v2193_v44  ;;  %v9323_v63 = vld [vmem:[#allocation81_spill] sm:$0xff]  ;;  %v9325_v26 = vld [vmem:[#allocation60_spill] sm:$0xff] }
 0x2a4   : > { %9321 = vst [vmem:[#allocation40_spill] sm:$0xff] %v7944_v61  ;;  %v2293_v22 = vmul.f32 1.442695, %v2234_v55  ;;  %v7947_v7 = vmul.f32 1.442695, %v2330_v34  ;;  %v7951_v19 = vpop.eup %5991  ;;  %6017 = vpow2.f32 %v2289_v62  ;;  %v2041_v20 = vsub.f32 %v9236_v12, %v7928_v54  ;;  %v9324_v34 = vld [vmem:[#allocation59_spill] sm:$0xff] }
 0x2a5   : > { %9322 = vst [vmem:[#allocation58_spill] sm:$0xff] %v7951_v19  ;;  %v2012_v37 = vmax.f32 %v1980_v0, %v7949_v18  ;;  %v2566_v35 = vmul.f32 %v7583_v11, %v9323_v63  ;;  %v7958_v42 = vpop.eup %5993  ;;  %v2483_v44 = vadd.f32 %v7944_v61, %v2451_v21  ;;  %6019 = vpow2.f32 %v2385_v2  ;;  %v9327_v2 = vld [vmem:[#allocation80_spill] sm:$0xff] }
 0x2a6   : > { %v2137_v55 = vsub.f32 %v9235_v46, %v7928_v54  ;;  %v9326_v62 = vmax.f32 %v9324_v34, %v9325_v26  ;;  %v7967_v3 = vpop.eup %5995  ;;  %v2422_v12 = vadd.f32 %v7958_v42, %v7951_v19  ;;  %6021 = vpow2.f32 %v2095_v32 }
 0x2a7   : > { %v2233_v0 = vsub.f32 %v7880_v13, %v7928_v54  ;;  %5468 = vmatprep.mubr.msk.f32.mxu1 %vm2594_vm2, %v2566_v35  ;;  %v2533_v21 = vmul.f32 %v7583_v11, %v9327_v2  ;;  %v7976_v46 = vpop.eup %5997  ;;  %6023 = vrcp.f32 %v2483_v44  ;;  %v2329_v63 = vsub.f32 %v7922_v15, %v7928_v54  ;;  %v9332_v2 = vld [vmem:[#allocation89_spill] sm:$0xff] }
 0x2a8   : > { %v1979_v31 = vmax.f32 %v9326_v62, %v7942_v5  ;;  %9328 = vst [vmem:[#allocation81_spill] sm:$0xff] %v7976_v46  ;;  %v9329_v62 = vld [vmem:[#allocation48_spill] sm:$0xff]  ;;  %v2534_v32 = vmul.f32 %v7553_v17, %v9330_v51  ;;  %v7984_v19 = vpop.eup %5999  ;;  %v2454_v13 = vadd.f32 %v7976_v46, %v2422_v12  ;;  %6025 = vpow2.f32 %v2191_v52  ;;  %v9333_v51 = vld [vmem:[#allocation87_spill] sm:$0xff] }
 0x2a9   : > { %v2567_v61 = vmul.f32 %v7553_v17, %v9329_v62  ;;  %9331 = vst [vmem:[#allocation59_spill] sm:$0xff] %v7984_v19  ;;  %v2099_v35 = vmul.f32 1.442695, %v2041_v20  ;;  %5518 = vmatprep.mubr.msk.f32.mxu0 %vm2594_vm2, %v2533_v21  ;;  %v2568_v44 = vmul.f32 %v7651_v48, %v9332_v2  ;;  %v7990_v11 = vpop.eup %6001  ;;  %6027 = vpow2.f32 %v2287_v6  ;;  %v8003_v62 = vpop.f32.mrf.mxu0 }
 0x2aa   : > { %v2044_v15 = vsub.f32 %v9240_v47, %v2012_v37  ;;  %v2140_v54 = vsub.f32 %v9318_v24, %v2012_v37  ;;  %5519 = vmatmul.mubr.msk.f32.gmra.mxu0 %vm2594_vm2, %v2534_v32  ;;  %v2535_v52 = vmul.f32 %v7651_v48, %v9333_v51  ;;  %v7998_v20 = vpop.eup %6003  ;;  %v2486_v12 = vadd.f32 %v7984_v19, %v2454_v13  ;;  %v8005_v47 = vpop.f32.mrf.mxu1 }
 0x2ab   : > { %5469 = vmatmul.mubr.msk.f32.gmra.mxu1 %vm2594_vm2, %v2567_v61  ;;  %6029 = vpow2.f32 %v2383_v43  ;;  %v2236_v21 = vsub.f32 %v7912_v29, %v2012_v37  ;;  %v2332_v6 = vsub.f32 %v7949_v18, %v2012_v37  ;;  %v8008_v61 = vpop.eup %6005  ;;  %v2421_v24 = vadd.f32 %v7998_v20, %v7990_v11  ;;  %v9334_v29 = vld [vmem:[#allocation56_spill] sm:$0xff] }
 0x2ac   : > { %5471 = vmatprep.mubr.msk.f32.mxu1 %vm2594_vm2, %v2568_v44  ;;  %6031 = vpow2.f32 %v2101_v33  ;;  %v8013_v32 = vmax.f32 %v1979_v31, %v8003_v62  ;;  %5521 = vmatprep.mubr.msk.f32.mxu0 %vm2594_vm2, %v2535_v52  ;;  %v2569_v43 = vmul.f32 %v7618_v8, %v9334_v29  ;;  %v8018_v18 = vpop.eup %6007  ;;  %v2195_v37 = vmul.f32 1.442695, %v2137_v55  ;;  %v9336_v55 = vld [vmem:[#allocation62_spill] sm:$0xff] }
 0x2ad   : > { %6033 = vrcp.f32 %v2486_v12  ;;  %v2291_v13 = vmul.f32 1.442695, %v2233_v0  ;;  %v2387_v2 = vmul.f32 1.442695, %v2329_v63  ;;  %v8020_v44 = vpop.eup %6009  ;;  %v2453_v51 = vadd.f32 %v8018_v18, %v2421_v24  ;;  %v8033_v12 = vpop.f32.mrf.mxu1 }
 0x2ae   : > { %9335 = vst [vmem:[#allocation60_spill] sm:$0xff] %v8020_v44  ;;  %6035 = vpow2.f32 %v7940_v41  ;;  %v2105_v33 = vmul.f32 1.442695, %v2044_v15  ;;  %v2201_v31 = vmul.f32 1.442695, %v2140_v54  ;;  %v8025_v52 = vpop.eup %6011  ;;  %v9337_v0 = vmax.f32 %v9254_v36, %v9336_v55 }
 0x2af   : > { %5472 = vmatmul.mubr.msk.f32.gmra.mxu1 %vm2594_vm2, %v2569_v43  ;;  %6037 = vpow2.f32 %v2293_v22  ;;  %v2297_v29 = vmul.f32 1.442695, %v2236_v21  ;;  %v8027_v48 = vmul.f32 1.442695, %v2332_v6  ;;  %v8035_v24 = vpop.eup %6013  ;;  %v2485_v41 = vadd.f32 %v8020_v44, %v2453_v51  ;;  %v9338_v22 = vld [vmem:[#allocation85_spill] sm:$0xff] }
 0x2b0   : > { %v1982_v63 = vmax.f32 %v9337_v0, %v8005_v47  ;;  %6039 = vpow2.f32 %v7947_v7  ;;  %v2043_v15 = vsub.f32 %v9324_v34, %v8013_v32  ;;  %v2536_v54 = vmul.f32 %v7618_v8, %v9338_v22  ;;  %v8043_v21 = vpop.eup %6015  ;;  %v9339_v0 = vld [vmem:[#allocation98_spill] sm:$0xff]  ;;  %v8055_v34 = vpop.f32.mrf.mxu0 }
 0x2b1   : > { %6041 = vpow2.f32 %v2099_v35  ;;  %v2139_v6 = vsub.f32 %v9325_v26, %v8013_v32  ;;  %v2235_v43 = vsub.f32 %v7942_v5, %v8013_v32  ;;  %v2570_v51 = vmul.f32 %v7714_v60, %v9339_v0  ;;  %v8051_v17 = vpop.eup %6017  ;;  %v9340_v35 = vld [vmem:[#allocation64_spill] sm:$0xff]  ;;  %v9343_v0 = vld [vmem:[#allocation61_spill] sm:$0xff] }
 0x2b2   : > { %6043 = vrcp.f32 %v2485_v41  ;;  %v2424_v7 = vadd.f32 %v8043_v21, %v8025_v52  ;;  %v9341_v22 = vmax.f32 %v9267_v39, %v9340_v35  ;;  %5522 = vmatmul.mubr.msk.f32.gmra.mxu0 %vm2594_vm2, %v2536_v54  ;;  %v9342_v26 = vld [vmem:[#allocation96_spill] sm:$0xff]  ;;  %v8064_v19 = vpop.eup %6019  ;;  %v8067_v41 = vmax.f32 %v1982_v63, %v8055_v34 }
 0x2b3   : > { %v2537_v5 = vmul.f32 %v7714_v60, %v9342_v26  ;;  %6045 = vpow2.f32 %v2195_v37  ;;  %5474 = vmatprep.mubr.msk.f32.mxu1 %vm2594_vm2, %v2570_v51  ;;  %v2571_v46 = vmul.f32 %v7674_v16, %v9343_v0  ;;  %v2572_v44 = vmul.f32 %v7782_v23, %v7643_v1  ;;  %v9344_v26 = vld [vmem:[#allocation92_spill] sm:$0xff] }
 0x2b4   : > { %v1981_v8 = vmax.f32 %v9341_v22, %v8033_v12  ;;  %v8074_v22 = vpop.eup %6021  ;;  %v2456_v54 = vadd.f32 %v8051_v17, %v2424_v7  ;;  %6047 = vpow2.f32 %v2291_v13  ;;  %v2538_v37 = vmul.f32 %v7674_v16, %v9344_v26 }
 0x2b5   : > { %5524 = vmatprep.mubr.msk.f32.mxu0 %vm2594_vm2, %v2537_v5  ;;  %v2539_v63 = vmul.f32 %v7782_v23, %v7636_v4  ;;  %v8082_v51 = vpop.eup %6023  ;;  %6049 = vpow2.f32 %v2387_v2  ;;  %v2103_v0 = vmul.f32 1.442695, %v2043_v15  ;;  %v2199_v60 = vmul.f32 1.442695, %v2139_v6  ;;  %5475 = vmatmul.mubr.msk.f32.gmra.mxu1 %vm2594_vm2, %v2571_v46  ;;  %v8098_v46 = vpop.f32.mrf.mxu0 }
 0x2b6   : > { %v2331_v1 = vsub.f32 %v8003_v62, %v8013_v32  ;;  %v8087_v7 = vpop.eup %6025  ;;  %v2488_v13 = vadd.f32 %v8064_v19, %v2456_v54  ;;  %6051 = vpow2.f32 %v2105_v33  ;;  %v2295_v5 = vmul.f32 1.442695, %v2235_v43  ;;  %5525 = vmatmul.mubr.msk.f32.gmra.mxu0 %vm2594_vm2, %v2538_v37  ;;  %5477 = vmatprep.mubr.msk.f32.mxu1 %vm2594_vm2, %v2572_v44 }
 0x2b7   : > { %v2574_v4 = vmul.f32 %v7858_v50, %v7709_v25  ;;  %v8094_v2 = vpop.eup %6027  ;;  %v2423_v62 = vadd.f32 %v8087_v7, %v8074_v22  ;;  %6053 = vpow2.f32 %v2201_v31  ;;  %5527 = vmatprep.mubr.msk.f32.mxu0 %vm2594_vm2, %v2539_v63  ;;  %v2573_v32 = vmul.f32 %v7737_v40, %v7616_v27  ;;  %v9345_v31 = vld [vmem:[#allocation101_spill] sm:$0xff]  ;;  %v9346_v63 = vld [vmem:[#allocation107_spill] sm:$0xff] }
 0x2b8   : > { %v2541_v33 = vmul.f32 %v7858_v50, %v7697_v53  ;;  %v8105_v44 = vpop.eup %6029  ;;  %6055 = vrcp.f32 %v2488_v13  ;;  %v2046_v25 = vsub.f32 %v9254_v36, %v8067_v41  ;;  %v8110_v15 = vmax.f32 %v1981_v8, %v8098_v46 }
 0x2b9   : > { %v2540_v6 = vmul.f32 %v7737_v40, %v9345_v31  ;;  %v8114_v43 = vpop.eup %6031  ;;  %v2455_v54 = vadd.f32 %v8094_v2, %v2423_v62  ;;  %6057 = vpow2.f32 %v2297_v29  ;;  %v2142_v27 = vsub.f32 %v9336_v55, %v8067_v41  ;;  %5478 = vmatmul.mubr.msk.f32.gmra.mxu1 %vm2594_vm2, %v2573_v32 }
 0x2ba   : > { %v2238_v53 = vsub.f32 %v8005_v47, %v8067_v41  ;;  %v8122_v36 = vpop.eup %6033  ;;  %6059 = vpow2.f32 %v8027_v48  ;;  %v2391_v8 = vmul.f32 1.442695, %v2331_v1  ;;  %v2334_v26 = vsub.f32 %v8055_v34, %v8067_v41  ;;  %5480 = vmatprep.mubr.msk.f32.mxu1 %vm2594_vm2, %v2574_v4 }
 0x2bb   : > { %5528 = vmatmul.mubr.msk.f32.gmra.mxu0 %vm2594_vm2, %v2540_v6  ;;  %v2576_v29 = vmul.f32 %v7934_v9, %v7787_v38  ;;  %v8131_v55 = vpop.eup %6035  ;;  %v2487_v47 = vadd.f32 %v8105_v44, %v2455_v54  ;;  %6061 = vpow2.f32 %v2103_v0  ;;  %v2575_v48 = vmul.f32 %v7825_v59, %v7671_v56  ;;  %v9347_v6 = vld [vmem:[#allocation113_spill] sm:$0xff] }
 0x2bc   : > { %5530 = vmatprep.mubr.msk.f32.mxu0 %vm2594_vm2, %v2541_v33  ;;  %v2543_v34 = vmul.f32 %v7934_v9, %v7771_v45  ;;  %v8139_v41 = vpop.eup %6037  ;;  %v2426_v37 = vadd.f32 %v8131_v55, %v8114_v43  ;;  %6063 = vpow2.f32 %v2199_v60  ;;  %v2109_v38 = vmul.f32 1.442695, %v2046_v25 }
 0x2bd   : > { %v2542_v1 = vmul.f32 %v7825_v59, %v9346_v63  ;;  %v8145_v13 = vpop.eup %6039  ;;  %6065 = vrcp.f32 %v2487_v47  ;;  %v2205_v0 = vmul.f32 1.442695, %v2142_v27  ;;  %v2301_v4 = vmul.f32 1.442695, %v2238_v53  ;;  %5481 = vmatmul.mubr.msk.f32.gmra.mxu1 %vm2594_vm2, %v2575_v48  ;;  %v9348_v48 = vld [vmem:[#allocation51_spill] sm:$0xff] }
 0x2be   : > { %v2045_v56 = vsub.f32 %v9267_v39, %v8110_v15  ;;  %v8150_v45 = vpop.eup %6041  ;;  %v2458_v62 = vadd.f32 %v8139_v41, %v2426_v37  ;;  %6067 = vpow2.f32 %v2295_v5  ;;  %v2141_v60 = vsub.f32 %v9340_v35, %v8110_v15  ;;  %5483 = vmatprep.mubr.msk.f32.mxu1 %vm2594_vm2, %v2576_v29 }
 0x2bf   : > { %5531 = vmatmul.mubr.msk.f32.gmra.mxu0 %vm2594_vm2, %v2542_v1  ;;  %v2578_v32 = vmul.f32 %v8008_v61, %v7863_v57  ;;  %v8159_v33 = vpop.eup %6043  ;;  %6069 = vpow2.f32 %v2391_v8  ;;  %v2397_v39 = vmul.f32 1.442695, %v2334_v26  ;;  %v2577_v25 = vmul.f32 %v7895_v10, %v7747_v14 }
 0x2c0   : > { %5533 = vmatprep.mubr.msk.f32.mxu0 %vm2594_vm2, %v2543_v34  ;;  %v2545_v5 = vmul.f32 %v8008_v61, %v7849_v28  ;;  %v8166_v35 = vpop.eup %6045  ;;  %v2490_v31 = vadd.f32 %v8145_v13, %v2458_v62  ;;  %6071 = vpow2.f32 %v2109_v38  ;;  %v2237_v57 = vsub.f32 %v8033_v12, %v8110_v15  ;;  %v9349_v38 = vld [vmem:[#allocation50_spill] sm:$0xff] }
 0x2c1   : > { %v2544_v54 = vmul.f32 %v7895_v10, %v9347_v6  ;;  %v8173_v27 = vpop.eup %6047  ;;  %v2425_v53 = vadd.f32 %v8166_v35, %v8150_v45  ;;  %6073 = vpow2.f32 %v2205_v0  ;;  %v2107_v14 = vmul.f32 1.442695, %v2045_v56  ;;  %5484 = vmatmul.mubr.msk.f32.gmra.mxu1 %vm2594_vm2, %v2577_v25 }
 0x2c2   : > { %v8178_v28 = vpop.eup %6049  ;;  %6075 = vrcp.f32 %v2490_v31  ;;  %v2203_v8 = vmul.f32 1.442695, %v2141_v60  ;;  %v2333_v26 = vsub.f32 %v8098_v46, %v8110_v15  ;;  %5486 = vmatprep.mubr.msk.f32.mxu1 %vm2594_vm2, %v2578_v32  ;;  %v2580_v12 = vmul.f32 %v8082_v51, %v7924_v30 }
 0x2c3   : > { %5534 = vmatmul.mubr.msk.f32.gmra.mxu0 %vm2594_vm2, %v2544_v54  ;;  %v8186_v29 = vpop.eup %6051  ;;  %v2457_v47 = vadd.f32 %v8173_v27, %v2425_v53  ;;  %6077 = vpow2.f32 %v2301_v4  ;;  %v2579_v34 = vmul.f32 %v7967_v3, %v9348_v48  ;;  %v2547_v46 = vmul.f32 %v8082_v51, %v7919_v49  ;;  %v9352_v48 = vld [vmem:[#allocation65_spill] sm:$0xff] }
 0x2c4   : > { %5536 = vmatprep.mubr.msk.f32.mxu0 %vm2594_vm2, %v2545_v5  ;;  %v8194_v15 = vpop.eup %6053  ;;  %6079 = vpow2.f32 %v2397_v39  ;;  %v2299_v37 = vmul.f32 1.442695, %v2237_v57  ;;  %v2546_v30 = vmul.f32 %v7967_v3, %v9349_v38  ;;  %v2395_v49 = vmul.f32 1.442695, %v2333_v26  ;;  %v9350_v5 = vld [vmem:[#allocation71_spill] sm:$0xff] }
 0x2c5   : > { %v8198_v63 = vpop.eup %6055  ;;  %v2489_v1 = vadd.f32 %v8178_v28, %v2457_v47  ;;  %v2428_v0 = vadd.f32 %v8194_v15, %v8186_v29  ;;  %6081 = vpow2.f32 %v2107_v14  ;;  %5487 = vmatmul.mubr.msk.f32.gmra.mxu1 %vm2594_vm2, %v2579_v34  ;;  %v2582_v56 = vmul.f32 %v8159_v33, %v7998_v20 }
 0x2c6   : > { %v8204_v4 = vpop.eup %6057  ;;  %6083 = vpow2.f32 %v2203_v8  ;;  %5489 = vmatprep.mubr.msk.f32.mxu1 %vm2594_vm2, %v2580_v12  ;;  %v2581_v32 = vmul.f32 %v8035_v24, %v7891_v58  ;;  %v2549_v39 = vmul.f32 %v8159_v33, %v7990_v11  ;;  %v2548_v31 = vmul.f32 %v8035_v24, %v9350_v5  ;;  %v9351_v12 = vld [vmem:[#allocation58_spill] sm:$0xff] }
 0x2c7   : > { %5537 = vmatmul.mubr.msk.f32.gmra.mxu0 %vm2594_vm2, %v2546_v30  ;;  %v8210_v62 = vpop.eup %6059  ;;  %6085 = vrcp.f32 %v2489_v1  ;;  %v2460_v60 = vadd.f32 %v8204_v4, %v2428_v0  ;;  %v2583_v58 = vmul.f32 %v8122_v36, %v7958_v42  ;;  %v2550_v47 = vmul.f32 %v8122_v36, %v9351_v12  ;;  %v9355_v30 = vld [vmem:[#allocation53_spill] sm:$0xff]  ;;  %v9356_v0 = vld [vmem:[#allocation54_spill] sm:$0xff] }
 0x2c8   : > { %5539 = vmatprep.mubr.msk.f32.mxu0 %vm2594_vm2, %v2547_v46  ;;  %v8218_v25 = vpop.eup %6061  ;;  %6087 = vpow2.f32 %v2299_v37  ;;  %v8244_v34 = vmul.f32 %v7934_v9, %v9352_v48  ;;  %v9353_v46 = vld [vmem:[#allocation66_spill] sm:$0xff]  ;;  %v8261_v1 = vmul.f32 %v8008_v61, %v9355_v30  ;;  %v2552_v12 = vmul.f32 %v8198_v63, %v8025_v52 }
 0x2c9   : > { %v8222_v20 = vpop.eup %6063  ;;  %v2492_v57 = vadd.f32 %v8210_v62, %v2460_v60  ;;  %5490 = vmatmul.mubr.msk.f32.gmra.mxu1 %vm2594_vm2, %v2581_v32  ;;  %6089 = vpow2.f32 %v2395_v49  ;;  %v8248_v37 = vmul.f32 %v7934_v9, %v9353_v46  ;;  %v8265_v49 = vmul.f32 %v8008_v61, %v9356_v0  ;;  %v9358_v32 = vld [vmem:[#allocation72_spill] sm:$0xff]  ;;  %v9364_v0 = vld [vmem:[#allocation81_spill] sm:$0xff] }
 0x2ca   : > { %v6066_v6 = vpop.eup %6065  ;;  %v2427_v54 = vadd.f32 %v8222_v20, %v8218_v25  ;;  %5492 = vmatprep.mubr.msk.f32.mxu1 %vm2594_vm2, %v2582_v56 }
 0x2cb   : > { %5540 = vmatmul.mubr.msk.f32.gmra.mxu0 %vm2594_vm2, %v2548_v31  ;;  %v8230_v11 = vpop.eup %6067  ;;  %6091 = vrcp.f32 %v2492_v57  ;;  %v2584_v53 = vmul.f32 %v6066_v6, %v8087_v7  ;;  %v2551_v14 = vmul.f32 %v6066_v6, %v8074_v22  ;;  %v2585_v22 = vmul.f32 %v8198_v63, %v8043_v21  ;;  %v9354_v7 = vld [vmem:[#allocation115_spill] sm:$0xff]  ;;  %v9357_v21 = vld [vmem:[#allocation52_spill] sm:$0xff] }
 0x2cc   : > { %5542 = vmatprep.mubr.msk.f32.mxu0 %vm2594_vm2, %v2549_v39  ;;  %v8237_v8 = vpop.eup %6069  ;;  %v2459_v26 = vadd.f32 %v8230_v11, %v2427_v54  ;;  %v8257_v38 = vmul.f32 %v7895_v10, %v9354_v7  ;;  %v8274_v60 = vmul.f32 %v7967_v3, %v9357_v21  ;;  %v8278_v39 = vmul.f32 %v7967_v3, %v9358_v32  ;;  %v9359_v31 = vld [vmem:[#allocation39_spill] sm:$0xff]  ;;  %v9360_v54 = vld [vmem:[#allocation40_spill] sm:$0xff] }
 0x2cd   : > { %v8250_v42 = vpop.eup %6071  ;;  %5493 = vmatmul.mubr.msk.f32.gmra.mxu1 %vm2594_vm2, %v2583_v58  ;;  %v8285_v57 = vmul.f32 %v8082_v51, %v9359_v31  ;;  %v8289_v58 = vmul.f32 %v8082_v51, %v9360_v54  ;;  %v8304_v51 = vmul.f32 %v8159_v33, %v8018_v18  ;;  %v9363_v7 = vld [vmem:[#allocation60_spill] sm:$0xff]  ;;  %v8323_v18 = vmul.f32 %v6066_v6, %v8105_v44 }
 0x2ce   : > { %v8267_v9 = vpop.eup %6073  ;;  %v2491_v56 = vadd.f32 %v8237_v8, %v2459_v26  ;;  %5495 = vmatprep.mubr.msk.f32.mxu1 %vm2594_vm2, %v2584_v53  ;;  %v9361_v53 = vld [vmem:[#allocation44_spill] sm:$0xff]  ;;  %v8308_v30 = vmul.f32 %v8159_v33, %v9363_v7  ;;  %v8327_v33 = vmul.f32 %v8198_v63, %v8051_v17  ;;  %v8331_v31 = vmul.f32 %v8198_v63, %v8064_v19 }
 0x2cf   : > { %5543 = vmatmul.mubr.msk.f32.gmra.mxu0 %vm2594_vm2, %v2550_v47  ;;  %v6076_v5 = vpop.eup %6075  ;;  %v2430_v61 = vadd.f32 %v8267_v9, %v8250_v42  ;;  %v8293_v26 = vmul.f32 %v8035_v24, %v9361_v53  ;;  %v9362_v47 = vld [vmem:[#allocation42_spill] sm:$0xff] }
 0x2d0   : > { %5545 = vmatprep.mubr.msk.f32.mxu0 %vm2594_vm2, %v2551_v14  ;;  %v6078_v3 = vpop.eup %6077  ;;  %6093 = vrcp.f32 %v2491_v56  ;;  %v8299_v14 = vmul.f32 %v8035_v24, %v9362_v47  ;;  %v8312_v56 = vmul.f32 %v8122_v36, %v9364_v0  ;;  %v9365_v24 = vld [vmem:[#allocation59_spill] sm:$0xff]  ;;  %v8334_v54 = vmul.f32 %v6076_v5, %v8139_v41 }
 0x2d1   : > { %v6080_v48 = vpop.eup %6079  ;;  %v2462_v46 = vadd.f32 %v6078_v3, %v2430_v61  ;;  %5496 = vmatmul.mubr.msk.f32.gmra.mxu1 %vm2594_vm2, %v2585_v22  ;;  %v8317_v21 = vmul.f32 %v8122_v36, %v9365_v24  ;;  %v8320_v22 = vmul.f32 %v6066_v6, %v8094_v2  ;;  %v8337_v36 = vmul.f32 %v6076_v5, %v8145_v13 }
 0x2d2   : > { %v6082_v52 = vpop.eup %6081  ;;  %v2587_v19 = vmul.f32 %v6076_v5, %v8131_v55  ;;  %v2554_v41 = vmul.f32 %v6076_v5, %v8114_v43 }
 0x2d3   : > { %5546 = vmatmul.mubr.msk.f32.gmra.mxu0 %vm2594_vm2, %v2552_v12  ;;  %v6084_v32 = vpop.eup %6083  ;;  %v2494_v61 = vadd.f32 %v6080_v48, %v2462_v46 }
 0x2d4   : > { %v6086_v2 = vpop.eup %6085  ;;  %v2429_v53 = vadd.f32 %v6084_v32, %v6082_v52 }
 0x2d5   : > { %v6088_v44 = vpop.eup %6087  ;;  %6095 = vrcp.f32 %v2494_v61  ;;  %v2586_v6 = vmul.f32 %v6086_v2, %v8166_v35  ;;  %v2553_v17 = vmul.f32 %v6086_v2, %v8150_v45  ;;  %v8342_v12 = vmul.f32 %v6086_v2, %v8173_v27  ;;  %v4071_v27 = vld [vmem:[%s8988_s5 + $0x78] sm:$0xff] }
 0x2d6   : > { %v2461_v47 = vadd.f32 %v6088_v44, %v2429_v53  ;;  %v8347_v63 = vmul.f32 %v6086_v2, %v8178_v28  ;;  %v6090_v13 = vpop.eup %6089  ;;  %5657 = vmatprep.subr.mxu1 %v4071_v27 }
 0x2d7   : > { %5498 = vmatprep.mubr.msk.f32.mxu1 %vm2594_vm2, %v2586_v6  ;;  %5548 = vmatprep.mubr.msk.f32.mxu0 %vm2594_vm2, %v2553_v17  ;;  %v9366_v6 = vld [vmem:[#allocation69_spill] sm:$0xff] }
 0x2d8   : > { %v6092_v46 = vpop.eup %6091  ;;  %v2493_v35 = vadd.f32 %v6090_v13, %v2461_v47  ;;  %5499 = vmatmul.mubr.msk.f32.gmra.mxu1 %vm2594_vm2, %v2587_v19  ;;  %5549 = vmatmul.mubr.msk.f32.gmra.mxu0 %vm2594_vm2, %v2554_v41  ;;  %v9372_v19 = vld [vmem:[#allocation38_spill] sm:$0xff] }
 0x2d9   : > { %v8354_v45 = vmul.f32 %v6092_v46, %v8204_v4  ;;  %v8357_v55 = vmul.f32 %v6092_v46, %v8210_v62  ;;  %v2589_v4 = vmul.f32 %v6092_v46, %v8194_v15  ;;  %v2556_v62 = vmul.f32 %v6092_v46, %v8186_v29  ;;  %v9373_v41 = vld [vmem:[#allocation82_spill] sm:$0xff]  ;;  %v9374_v46 = vld [vmem:[#allocation75_spill] sm:$0xff] }
 0x2da   : > { %6097 = vrcp.f32 %v2493_v35  ;;  %v3636_v35 = vmul.f32 %v9373_v41, %v9374_v46 }
 0x2dd   : > { %v6094_v43 = vpop.eup %6093 }
 0x2de   : > { %v2588_v28 = vmul.f32 %v6094_v43, %v8222_v20  ;;  %v2555_v5 = vmul.f32 %v6094_v43, %v8218_v25  ;;  %v8365_v7 = vmul.f32 %v6094_v43, %v8230_v11  ;;  %v8368_v0 = vmul.f32 %v6094_v43, %v8237_v8  ;;  %v4070_v43 = vld [vmem:[%s8988_s5 + $0x70] sm:$0xff] }
 0x2e0   : > { %5501 = vmatprep.mubr.msk.f32.mxu1 %vm2594_vm2, %v2588_v28  ;;  %5551 = vmatprep.mubr.msk.f32.mxu0 %vm2594_vm2, %v2555_v5  ;;  %v9375_v28 = vld [vmem:[#allocation73_spill] sm:$0xff]  ;;  %v9376_v5 = vld [vmem:[#allocation79_spill] sm:$0xff] }
 0x2e1   : > { %5502 = vmatmul.mubr.msk.f32.gmra.mxu1 %vm2594_vm2, %v2589_v4  ;;  %5552 = vmatmul.mubr.msk.f32.gmra.mxu0 %vm2594_vm2, %v2556_v62  ;;  %v3247_v4 = vmul.f32 %v9376_v5, %v9375_v28  ;;  %v9377_v62 = vld [vmem:[#allocation74_spill] sm:$0xff] }
 0x2e2   : > { %v6096_v25 = vpop.eup %6095  ;;  %v9390_v28 = vld [vmem:[#allocation90_spill] sm:$0xff] }
 0x2e3   : > { %v8376_v20 = vmul.f32 %v6096_v25, %v6078_v3  ;;  %v8378_v11 = vmul.f32 %v6096_v25, %v6080_v48  ;;  %v2591_v29 = vmul.f32 %v6096_v25, %v8267_v9  ;;  %v2558_v53 = vmul.f32 %v6096_v25, %v8250_v42  ;;  %v9367_v3 = vld [vmem:[#allocation46_spill] sm:$0xff]  ;;  %v9369_v9 = vld [vmem:[#allocation68_spill] sm:$0xff]  ;;  %v9370_v42 = vld [vmem:[#allocation41_spill] sm:$0xff] }
 0x2e4   : > { %v3244_v17 = vmul.f32 %v9367_v3, %v9366_v6  ;;  %v9368_v48 = vld [vmem:[#allocation70_spill] sm:$0xff]  ;;  %v3637_v25 = vmul.f32 %v9376_v5, %v9377_v62  ;;  %v9391_v5 = vld [vmem:[#allocation104_spill] sm:$0xff]  ;;  %v9392_v62 = vld [vmem:[#allocation91_spill] sm:$0xff] }
 0x2e5   : > { %v3634_v47 = vmul.f32 %v9367_v3, %v9368_v48  ;;  %v4069_v6 = vld [vmem:[%s8988_s5 + $0x68] sm:$0xff]  ;;  %v9383_v48 = vld [vmem:[#allocation77_spill] sm:$0xff] }
 0x2e6   : > { %v9382_v3 = vld [vmem:[#allocation86_spill] sm:$0xff] }
 0x2e7   : > { %v6098_v8 = vpop.eup %6097 }
 0x2e8   : > { %v2590_v24 = vmul.f32 %v6098_v8, %v6084_v32  ;;  %v2557_v61 = vmul.f32 %v6098_v8, %v6082_v52  ;;  %v8380_v2 = vmul.f32 %v6098_v8, %v6088_v44  ;;  %v8382_v15 = vmul.f32 %v6098_v8, %v6090_v13  ;;  %v9371_v32 = vld [vmem:[#allocation67_spill] sm:$0xff] }
 0x2e9   : > { %v3635_v52 = vmul.f32 %v9370_v42, %v9369_v9  ;;  %v3245_v44 = vmul.f32 %v9370_v42, %v9371_v32  ;;  %v3246_v13 = vmul.f32 %v9373_v41, %v9372_v19  ;;  %v9378_v8 = vld [vmem:[#allocation43_spill] sm:$0xff]  ;;  %v9385_v42 = vld [vmem:[#allocation97_spill] sm:$0xff]  ;;  %v9386_v32 = vld [vmem:[#allocation84_spill] sm:$0xff] }
 0x2ea   : > { %5504 = vmatprep.mubr.msk.f32.mxu1 %vm2594_vm2, %v2590_v24  ;;  %5554 = vmatprep.mubr.msk.f32.mxu0 %vm2594_vm2, %v2557_v61  ;;  %v9379_v24 = vld [vmem:[#allocation88_spill] sm:$0xff]  ;;  %v9384_v9 = vld [vmem:[#allocation83_spill] sm:$0xff]  ;;  %v4068_v19 = vld [vmem:[%s8988_s5 + $0x60] sm:$0xff] }
 0x2eb   : > { %5505 = vmatmul.mubr.msk.f32.gmra.mxu1 %vm2594_vm2, %v2591_v29  ;;  %5555 = vmatmul.mubr.msk.f32.gmra.mxu0 %vm2594_vm2, %v2558_v53  ;;  %v3248_v61 = vmul.f32 %v9379_v24, %v9378_v8  ;;  %v9380_v29 = vld [vmem:[#allocation78_spill] sm:$0xff]  ;;  %v9387_v41 = vld [vmem:[#allocation47_spill] sm:$0xff]  ;;  %v4067_v8 = vld [vmem:[%s8988_s5 + $0x58] sm:$0xff] }
 0x2ec   : > { %5559 = vmatprep.mubr.msk.f32.mxu1 %vm2594_vm2, %v3244_v17  ;;  %5609 = vmatprep.mubr.msk.f32.mxu0 %vm2594_vm2, %v3634_v47  ;;  %v3638_v53 = vmul.f32 %v9379_v24, %v9380_v29  ;;  %v3639_v47 = vmul.f32 %v9382_v3, %v9383_v48  ;;  %v9393_v24 = vld [vmem:[#allocation55_spill] sm:$0xff]  ;;  %v9398_v48 = vld [vmem:[#allocation100_spill] sm:$0xff] }
 0x2ef   : > { %5560 = vmatmul.mubr.msk.f32.vlgmr.msra.gmra.mxu1 %vm2594_vm2, %v3245_v44  ;;  %5610 = vmatmul.mubr.msk.f32.vlgmr.msra.gmra.mxu0 %vm2594_vm2, %v3635_v52  ;;  %v3250_v52 = vmul.f32 %v9385_v42, %v9384_v9  ;;  %v3640_v44 = vmul.f32 %v9385_v42, %v9386_v32  ;;  %v4066_v9 = vld [vmem:[%s8988_s5 + $0x50] sm:$0xff]  ;;  %v9399_v42 = vld [vmem:[#allocation94_spill] sm:$0xff] }
 0x2f0   : > { %5562 = vmatprep.mubr.msk.f32.mxu1 %vm2594_vm2, %v3246_v13  ;;  %5612 = vmatprep.mubr.msk.f32.mxu0 %vm2594_vm2, %v3636_v35  ;;  %v9388_v13 = vld [vmem:[#allocation93_spill] sm:$0xff]  ;;  %v9400_v32 = vld [vmem:[#allocation95_spill] sm:$0xff] }
 0x2f1   : > { %5658 = vmatpush3.msra.mxu1 %v4071_v27  ;;  %v9381_v27 = vld [vmem:[#allocation76_spill] sm:$0xff]  ;;  %v3251_v46 = vmul.f32 %v9388_v13, %v9387_v41  ;;  %v9389_v35 = vld [vmem:[#allocation49_spill] sm:$0xff] }
 0x2f2   : > { %5659 = vmatprep.subr.mxu1 %v4070_v43  ;;  %v3249_v17 = vmul.f32 %v9382_v3, %v9381_v27  ;;  %v9396_v27 = vld [vmem:[#allocation99_spill] sm:$0xff]  ;;  %v9397_v3 = vld [vmem:[#allocation110_spill] sm:$0xff] }
 0x2f3   : > { %5563 = vmatmul.mubr.msk.f32.gmra.mxu1 %vm2594_vm2, %v3247_v4  ;;  %5613 = vmatmul.mubr.msk.f32.gmra.mxu0 %vm2594_vm2, %v3637_v25  ;;  %v3252_v4 = vmul.f32 %v9391_v5, %v9390_v28  ;;  %v3642_v25 = vmul.f32 %v9391_v5, %v9392_v62  ;;  %v9404_v28 = vld [vmem:[#allocation103_spill] sm:$0xff]  ;;  %v9406_v62 = vld [vmem:[#allocation112_spill] sm:$0xff] }
 0x2f4   : > { %5565 = vmatprep.mubr.msk.f32.mxu1 %vm2594_vm2, %v3248_v61  ;;  %5615 = vmatprep.mubr.msk.f32.mxu0 %vm2594_vm2, %v3638_v53  ;;  %v9394_v61 = vld [vmem:[#allocation63_spill] sm:$0xff]  ;;  %v9395_v53 = vld [vmem:[#allocation57_spill] sm:$0xff]  ;;  %v3647_v5 = vmul.f32 %v7737_v40, %v9404_v28 }
 0x2f5   : > { %5660 = vmatpush3.msra.mxu1 %v4070_v43  ;;  %v3641_v43 = vmul.f32 %v9388_v13, %v9389_v35  ;;  %v3253_v29 = vmul.f32 %v9394_v61, %v9393_v24  ;;  %v9402_v13 = vld [vmem:[#allocation106_spill] sm:$0xff] }
 0x2f6   : > { %5661 = vmatprep.subr.mxu1 %v4069_v6  ;;  %v4065_v35 = vld [vmem:[%s8988_s5 + $0x48] sm:$0xff] }
 0x2f7   : > { %5566 = vmatmul.mubr.msk.f32.gmra.mxu1 %vm2594_vm2, %v3249_v17  ;;  %5616 = vmatmul.mubr.msk.f32.gmra.mxu0 %vm2594_vm2, %v3639_v47  ;;  %v3254_v17 = vmul.f32 %v9397_v3, %v9396_v27  ;;  %v3644_v47 = vmul.f32 %v9397_v3, %v9398_v48 }
 0x2f8   : > { %5568 = vmatprep.mubr.msk.f32.mxu1 %vm2594_vm2, %v3250_v52  ;;  %5618 = vmatprep.mubr.msk.f32.mxu0 %vm2594_vm2, %v3640_v44  ;;  %v3255_v52 = vmul.f32 %v7674_v16, %v9399_v42  ;;  %v3645_v44 = vmul.f32 %v7674_v16, %v9400_v32  ;;  %v9403_v16 = vld [vmem:[#allocation102_spill] sm:$0xff] }
 0x2f9   : > { %5662 = vmatpush3.msra.mxu1 %v4069_v6  ;;  %v3643_v6 = vmul.f32 %v9394_v61, %v9395_v53  ;;  %v9408_v61 = vld [vmem:[#allocation109_spill] sm:$0xff]  ;;  %v9409_v53 = vld [vmem:[#allocation114_spill] sm:$0xff] }
 0x2fa   : > { %5663 = vmatprep.subr.mxu1 %v4068_v19 }
 0x2fb   : > { %5569 = vmatmul.mubr.msk.f32.gmra.mxu1 %vm2594_vm2, %v3251_v46  ;;  %5619 = vmatmul.mubr.msk.f32.gmra.mxu0 %vm2594_vm2, %v3641_v43  ;;  %v3646_v46 = vmul.f32 %v7782_v23, %v9402_v13  ;;  %v3257_v43 = vmul.f32 %v7737_v40, %v9403_v16  ;;  %v9407_v40 = vld [vmem:[#allocation108_spill] sm:$0xff] }
 0x2fc   : > { %5571 = vmatprep.mubr.msk.f32.mxu1 %vm2594_vm2, %v3252_v4  ;;  %5621 = vmatprep.mubr.msk.f32.mxu0 %vm2594_vm2, %v3642_v25  ;;  %v3648_v25 = vmul.f32 %v7858_v50, %v9406_v62  ;;  %v3259_v24 = vmul.f32 %v7825_v59, %v9407_v40 }
 0x2fd   : > { %5664 = vmatpush3.msra.mxu1 %v4068_v19  ;;  %v9401_v19 = vld [vmem:[#allocation105_spill] sm:$0xff] }
 0x2fe   : > { %5665 = vmatprep.subr.mxu1 %v4067_v8  ;;  %v3256_v41 = vmul.f32 %v7782_v23, %v9401_v19  ;;  %v9405_v23 = vld [vmem:[#allocation111_spill] sm:$0xff] }
 0x2ff   : > { %5572 = vmatmul.mubr.msk.f32.gmra.mxu1 %vm2594_vm2, %v3253_v29  ;;  %5622 = vmatmul.mubr.msk.f32.gmra.mxu0 %vm2594_vm2, %v3643_v6  ;;  %v3258_v4 = vmul.f32 %v7858_v50, %v9405_v23  ;;  %v3649_v29 = vmul.f32 %v7825_v59, %v9408_v61  ;;  %v4063_v50 = vld [vmem:[%s8988_s5 + $0x38] sm:$0xff]  ;;  %v3261_v6 = vmul.f32 %v7895_v10, %v9409_v53  ;;  %v4062_v59 = vld [vmem:[%s8988_s5 + $0x30] sm:$0xff]  ;;  %v4061_v10 = vld [vmem:[%s8988_s5 + $0x28] sm:$0xff] }
 0x300   : > { %5574 = vmatprep.mubr.msk.f32.mxu1 %vm2594_vm2, %v3254_v17  ;;  %5624 = vmatprep.mubr.msk.f32.mxu0 %vm2594_vm2, %v3644_v47 }
 0x301   : > { %5666 = vmatpush3.msra.mxu1 %v4067_v8  ;;  %v4064_v8 = vld [vmem:[%s8988_s5 + $0x40] sm:$0xff] }
 0x302   : > { %5667 = vmatprep.subr.mxu1 %v4066_v9 }
 0x303   : > { %5575 = vmatmul.mubr.msk.f32.gmra.mxu1 %vm2594_vm2, %v3255_v52  ;;  %5625 = vmatmul.mubr.msk.f32.gmra.mxu0 %vm2594_vm2, %v3645_v44 }
 0x304   : > { %5577 = vmatprep.mubr.msk.f32.mxu1 %vm2594_vm2, %v3256_v41  ;;  %5627 = vmatprep.mubr.msk.f32.mxu0 %vm2594_vm2, %v3646_v46 }
 0x305   : > { %5668 = vmatpush3.msra.mxu1 %v4066_v9 }
 0x306   : > { %5669 = vmatprep.subr.mxu1 %v4065_v35 }
 0x307   : > { %5578 = vmatmul.mubr.msk.f32.gmra.mxu1 %vm2594_vm2, %v3257_v43  ;;  %5628 = vmatmul.mubr.msk.f32.gmra.mxu0 %vm2594_vm2, %v3647_v5 }
 0x308   : > { %5580 = vmatprep.mubr.msk.f32.mxu1 %vm2594_vm2, %v3258_v4  ;;  %5630 = vmatprep.mubr.msk.f32.mxu0 %vm2594_vm2, %v3648_v25 }
 0x309   : > { %5670 = vmatpush3.msra.mxu1 %v4065_v35 }
 0x30a   : > { %5671 = vmatprep.subr.mxu1 %v4064_v8 }
 0x30b   : > { %5581 = vmatmul.mubr.msk.f32.gmra.mxu1 %vm2594_vm2, %v3259_v24  ;;  %5631 = vmatmul.mubr.msk.f32.gmra.mxu0 %vm2594_vm2, %v3649_v29 }
 0x30c   : > { %5583 = vmatprep.mubr.msk.f32.mxu1 %vm2594_vm2, %v8244_v34  ;;  %5633 = vmatprep.mubr.msk.f32.mxu0 %vm2594_vm2, %v8248_v37  ;;  %v4060_v34 = vld [vmem:[%s8988_s5 + $0x20] sm:$0xff]  ;;  %v4059_v37 = vld [vmem:[%s8988_s5 + $0x18] sm:$0xff] }
 0x30d   : > { %5672 = vmatpush3.msra.mxu1 %v4064_v8 }
 0x30e   : > { %5673 = vmatprep.subr.mxu1 %v4063_v50 }
 0x30f   : > { %5584 = vmatmul.mubr.msk.f32.gmra.mxu1 %vm2594_vm2, %v3261_v6  ;;  %5634 = vmatmul.mubr.msk.f32.gmra.mxu0 %vm2594_vm2, %v8257_v38  ;;  %v4058_v38 = vld [vmem:[%s8988_s5 + $0x10] sm:$0xff] }
 0x310   : > { %5586 = vmatprep.mubr.msk.f32.mxu1 %vm2594_vm2, %v8261_v1  ;;  %5636 = vmatprep.mubr.msk.f32.mxu0 %vm2594_vm2, %v8265_v49  ;;  %v4057_v1 = vld [vmem:[%s8988_s5 + $0x8] sm:$0xff]  ;;  %v4056_v49 = vld [vmem:[%s8988_s5] sm:$0xff] }
 0x311   : > { %5674 = vmatpush3.msra.mxu1 %v4063_v50 }
 0x312   : > { %5675 = vmatprep.subr.mxu1 %v4062_v59 }
 0x313   : > { %5587 = vmatmul.mubr.msk.f32.gmra.mxu1 %vm2594_vm2, %v8274_v60  ;;  %5637 = vmatmul.mubr.msk.f32.gmra.mxu0 %vm2594_vm2, %v8278_v39 }
 0x314   : > { %5589 = vmatprep.mubr.msk.f32.mxu1 %vm2594_vm2, %v8285_v57  ;;  %5639 = vmatprep.mubr.msk.f32.mxu0 %vm2594_vm2, %v8289_v58 }
 0x315   : > { %5676 = vmatpush3.msra.mxu1 %v4062_v59 }
 0x316   : > { %5677 = vmatprep.subr.mxu1 %v4061_v10 }
 0x317   : > { %5590 = vmatmul.mubr.msk.f32.gmra.mxu1 %vm2594_vm2, %v8293_v26  ;;  %5640 = vmatmul.mubr.msk.f32.gmra.mxu0 %vm2594_vm2, %v8299_v14 }
 0x318   : > { %5592 = vmatprep.mubr.msk.f32.mxu1 %vm2594_vm2, %v8304_v51  ;;  %5642 = vmatprep.mubr.msk.f32.mxu0 %vm2594_vm2, %v8308_v30 }
 0x319   : > { %5678 = vmatpush3.msra.mxu1 %v4061_v10 }
 0x31a   : > { %5679 = vmatprep.subr.mxu1 %v4060_v34 }
 0x31b   : > { %5593 = vmatmul.mubr.msk.f32.gmra.mxu1 %vm2594_vm2, %v8312_v56  ;;  %5643 = vmatmul.mubr.msk.f32.gmra.mxu0 %vm2594_vm2, %v8317_v21 }
 0x31c   : > { %5595 = vmatprep.mubr.msk.f32.mxu1 %vm2594_vm2, %v8320_v22  ;;  %5645 = vmatprep.mubr.msk.f32.mxu0 %vm2594_vm2, %v8323_v18 }
 0x31d   : > { %5680 = vmatpush3.msra.mxu1 %v4060_v34 }
 0x31e   : > { %5681 = vmatprep.subr.mxu1 %v4059_v37 }
 0x31f   : > { %5596 = vmatmul.mubr.msk.f32.gmra.mxu1 %vm2594_vm2, %v8327_v33  ;;  %5646 = vmatmul.mubr.msk.f32.gmra.mxu0 %vm2594_vm2, %v8331_v31 }
 0x320   : > { %5598 = vmatprep.mubr.msk.f32.mxu1 %vm2594_vm2, %v8342_v12  ;;  %5648 = vmatprep.mubr.msk.f32.mxu0 %vm2594_vm2, %v8347_v63 }
 0x321   : > { %5682 = vmatpush3.msra.mxu1 %v4059_v37  ;;  %v9425_v37 = vld [vmem:[#allocation5_spill] sm:$0xff] }
 0x322   : > { %5683 = vmatprep.subr.mxu1 %v4058_v38 }
 0x323   : > { %5599 = vmatmul.mubr.msk.f32.gmra.mxu1 %vm2594_vm2, %v8334_v54  ;;  %5649 = vmatmul.mubr.msk.f32.gmra.mxu0 %vm2594_vm2, %v8337_v36 }
 0x324   : > { %5601 = vmatprep.mubr.msk.f32.mxu1 %vm2594_vm2, %v8365_v7  ;;  %5651 = vmatprep.mubr.msk.f32.mxu0 %vm2594_vm2, %v8368_v0 }
 0x325   : > { %5684 = vmatpush3.msra.mxu1 %v4058_v38  ;;  %v336_v38 = vsub.s32 2, %v9425_v37 }
 0x326   : > { %5685 = vmatprep.subr.mxu1 %v4057_v1 }
 0x327   : > { %5602 = vmatmul.mubr.msk.f32.gmra.mxu1 %vm2594_vm2, %v8354_v45  ;;  %5652 = vmatmul.mubr.msk.f32.gmra.mxu0 %vm2594_vm2, %v8357_v55 }
 0x328   : > { %5604 = vmatprep.mubr.msk.f32.mxu1 %vm2594_vm2, %v8380_v2  ;;  %5654 = vmatprep.mubr.msk.f32.mxu0 %vm2594_vm2, %v8382_v15 }
 0x329   : > { %5686 = vmatpush3.msra.mxu1 %v4057_v1 }
 0x32a   : > { %5687 = vmatprep.subr.mxu1 %v4056_v49 }
 0x32b   : > { %5605 = vmatmul.mubr.msk.f32.gmra.mxu1 %vm2594_vm2, %v8376_v20  ;;  %5655 = vmatmul.mubr.msk.f32.gmra.mxu0 %vm2594_vm2, %v8378_v11 }
 0x32c   : > { %5688 = vmatpush3.msra.mxu1 %v4056_v49 }
 0x349   : > { %v8596_v60 = vpop.f32.mrf.mxu1 }
 0x34b   : > { %v8598_v39 = vpop.f32.mrf.mxu0  ;;  %v8600_v57 = vpop.f32.mrf.mxu1 }
 0x34d   : > { %v8602_v58 = vpop.f32.mrf.mxu0 }
 0x34e   : > { %v3086_v37 = vadd.f32 %v8602_v58, %v8600_v57 }
 0x353   : > { %v8604_v26 = vpop.f32.mrf.mxu1 }
 0x355   : > { %v8608_v51 = vpop.f32.mrf.mxu1 }
 0x357   : > { %v8606_v14 = vpop.f32.mrf.mxu0 }
 0x359   : > { %v8610_v30 = vpop.f32.mrf.mxu0 }
 0x35b   : > { %v8612_v56 = vpop.f32.mrf.mxu1  ;;  %v8614_v21 = vpop.f32.mrf.mxu0 }
 0x35d   : > { %v8616_v22 = vpop.f32.mrf.mxu1  ;;  %v8618_v18 = vpop.f32.mrf.mxu0 }
 0x36a   : > { %v8622_v31 = vpop.f32.mrf.mxu0 }
 0x36b   : > { %v8620_v33 = vpop.f32.mrf.mxu1 }
 0x36c   : > { %v8626_v36 = vpop.f32.mrf.mxu0 }
 0x36d   : > { %v8624_v54 = vpop.f32.mrf.mxu1 }
 0x36f   : > { %v8628_v12 = vpop.f32.mrf.mxu1 }
 0x371   : > { %v8630_v63 = vpop.f32.mrf.mxu1 }
 0x372   : > { %v8632_v45 = vpop.f32.mrf.mxu0 }
 0x374   : > { %v8634_v55 = vpop.f32.mrf.mxu0 }
 0x375   : > { %v8636_v7 = vpop.f32.mrf.mxu1 }
 0x376   : > { %v8638_v0 = vpop.f32.mrf.mxu0 }
 0x377   : > { %v8640_v20 = vpop.f32.mrf.mxu1 }
 0x378   : > { %v8642_v11 = vpop.f32.mrf.mxu0 }
 0x379   : > { %v8644_v2 = vpop.f32.mrf.mxu1 }
 0x37b   : > { %v8646_v15 = vpop.f32.mrf.mxu0  ;;  %v8648_v27 = vpop.f32.mrf.mxu1 }
 0x37d   : > { %v8650_v3 = vpop.f32.mrf.mxu0  ;;  %v8652_v17 = vpop.f32.mrf.mxu1 }
 0x37f   : > { %v8654_v48 = vpop.f32.mrf.mxu0  ;;  %v8656_v47 = vpop.f32.mrf.mxu1 }
 0x381   : > { %v8658_v9 = vpop.f32.mrf.mxu0  ;;  %v8660_v42 = vpop.f32.mrf.mxu1 }
 0x383   : > { %v8662_v52 = vpop.f32.mrf.mxu0  ;;  %v8664_v32 = vpop.f32.mrf.mxu1 }
 0x385   : > { %v8666_v44 = vpop.f32.mrf.mxu0  ;;  %v8668_v19 = vpop.f32.mrf.mxu1 }
 0x387   : > { %v8670_v41 = vpop.f32.mrf.mxu0  ;;  %v8672_v13 = vpop.f32.mrf.mxu1 }
 0x389   : > { %v8674_v46 = vpop.f32.mrf.mxu0  ;;  %v8676_v35 = vpop.f32.mrf.mxu1 }
 0x38b   : > { %v8678_v16 = vpop.f32.mrf.mxu0  ;;  %v8680_v43 = vpop.f32.mrf.mxu1 }
 0x38d   : > { %v8682_v28 = vpop.f32.mrf.mxu0  ;;  %v8684_v5 = vpop.f32.mrf.mxu1 }
 0x38f   : > { %v8686_v23 = vpop.f32.mrf.mxu0  ;;  %v8688_v4 = vpop.f32.mrf.mxu1 }
 0x390   : > { %9410 = vst [vmem:[#allocation80_spill] sm:$0xff] %v8686_v23  ;;  %9411 = vst [vmem:[#allocation48_spill] sm:$0xff] %v8688_v4 }
 0x391   : > { %v8690_v62 = vpop.f32.mrf.mxu0  ;;  %v8692_v25 = vpop.f32.mrf.mxu1 }
 0x392   : > { %9412 = vst [vmem:[#allocation45_spill] sm:$0xff] %v8690_v62  ;;  %9413 = vst [vmem:[#allocation89_spill] sm:$0xff] %v8692_v25  ;;  %v3096_v25 = vadd.f32 %v8610_v30, %v8608_v51  ;;  %v3106_v51 = vadd.f32 %v8618_v18, %v8616_v22 }
 0x393   : > { %v8694_v8 = vpop.f32.mrf.mxu0  ;;  %v8696_v40 = vpop.f32.mrf.mxu1 }
 0x394   : > { %9414 = vst [vmem:[#allocation87_spill] sm:$0xff] %v8694_v8  ;;  %9415 = vst [vmem:[#allocation56_spill] sm:$0xff] %v8696_v40 }
 0x395   : > { %v8698_v24 = vpop.f32.mrf.mxu0 }
 0x396   : > { %9416 = vst [vmem:[#allocation62_spill] sm:$0xff] %v8698_v24  ;;  %v3101_v24 = vadd.f32 %v8606_v14, %v8604_v26  ;;  %v3111_v26 = vadd.f32 %v8614_v21, %v8612_v56  ;;  %v3121_v21 = vadd.f32 %v8622_v31, %v8620_v33  ;;  %v3131_v31 = vadd.f32 %v8632_v45, %v8628_v12 }
 0x397   : > { %v3141_v45 = vadd.f32 %v8638_v0, %v8636_v7  ;;  %v3151_v0 = vadd.f32 %v8646_v15, %v8644_v2  ;;  %v3161_v15 = vadd.f32 %v8654_v48, %v8652_v17  ;;  %v3171_v48 = vadd.f32 %v8662_v52, %v8660_v42 }
 0x398   : > { %v8700_v61 = vpop.f32.mrf.mxu1  ;;  %v8702_v29 = vpop.f32.mrf.mxu0  ;;  %v3181_v52 = vadd.f32 %v8670_v41, %v8668_v19  ;;  %v3191_v41 = vadd.f32 %v8678_v16, %v8676_v35  ;;  %v9451_v16 = vld [vmem:[#allocation80_spill] sm:$0xff] }
 0x399   : > { %9417 = vst [vmem:[#allocation85_spill] sm:$0xff] %v8700_v61  ;;  %9418 = vst [vmem:[#allocation98_spill] sm:$0xff] %v8702_v29 }
 0x39a   : > { %v8704_v50 = vpop.f32.mrf.mxu1  ;;  %v8706_v53 = vpop.f32.mrf.mxu0 }
 0x39b   : > { %9419 = vst [vmem:[#allocation64_spill] sm:$0xff] %v8704_v50  ;;  %9420 = vst [vmem:[#allocation96_spill] sm:$0xff] %v8706_v53 }
 0x3a1   : > { %v8708_v6 = vpop.f32.mrf.mxu1  ;;  %v8710_v59 = vpop.f32.mrf.mxu0 }
 0x3a2   : > { %9421 = vst [vmem:[#allocation61_spill] sm:$0xff] %v8708_v6  ;;  %9422 = vst [vmem:[#allocation92_spill] sm:$0xff] %v8710_v59  ;;  %v6099_v6 = vld [vmem:[%s8985_s2] sm:$0x7] }
 0x3a3   : > { %v8712_v10 = vpop.f32.mrf.mxu1  ;;  %v8714_v34 = vpop.f32.mrf.mxu0  ;;  %v8728_v53 = vrot.slane %v6099_v6, %v336_v38  ;;  %v9431_v38 = vld [vmem:[#allocation7_spill] sm:$0xff] }
 0x3a4   : > { %9423 = vst [vmem:[#allocation101_spill] sm:$0xff] %v8712_v10  ;;  %9424 = vst [vmem:[#allocation107_spill] sm:$0xff] %v8714_v34  ;;  %v3091_v10 = vadd.f32 %v8598_v39, %v8596_v60 }
 0x3a5   : > { %v762_v8 = vadd.f32 %v9431_v38, %v8728_v53 }
 0x3ab   : > { %v8717_v1 = vpop.f32.mrf.mxu1  ;;  %v8719_v49 = vpop.f32.mrf.mxu0 }
 0x3ac   : > { %9426 = vst [vmem:[#allocation113_spill] sm:$0xff] %v8717_v1  ;;  %9427 = vst [vmem:[#allocation51_spill] sm:$0xff] %v8719_v49 }
 0x3ad   : > { %v8721_v61 = vpop.f32.mrf.mxu1  ;;  %v8723_v29 = vpop.f32.mrf.mxu0 }
 0x3ae   : > { %9428 = vst [vmem:[#allocation50_spill] sm:$0xff] %v8721_v61  ;;  %9429 = vst [vmem:[#allocation71_spill] sm:$0xff] %v8723_v29  ;;  %v9430_v61 = vld [vmem:[#allocation6_spill] sm:$0xff] }
 0x3af   : > { %v5561_v34 = vpop.f32.mrf.mxu1  ;;  %v5611_v59 = vpop.f32.mrf.mxu0  ;;  %v767_v29 = vadd.f32 %v9430_v61, %v8728_v53 }
 0x3b0   : > { %v3603_v1 = vadd.f32 %v5561_v34, %v3091_v10  ;;  %v9432_v34 = vld [vmem:[#allocation8_spill] sm:$0xff] }
 0x3b1   : > { %v3443_v49 = vpop.f32.mrf.mxu1  ;;  %v3833_v50 = vpop.f32.mrf.mxu0  ;;  %v777_v62 = vadd.f32 %v9432_v34, %v8728_v53 }
 0x3b2   : > { %v3993_v40 = vadd.f32 %v5611_v59, %v3603_v1  ;;  %v3602_v6 = vadd.f32 %v3443_v49, %v3086_v37  ;;  %v9433_v49 = vld [vmem:[#allocation9_spill] sm:$0xff] }
 0x3b3   : > { %v5564_v60 = vpop.f32.mrf.mxu1  ;;  %v5614_v39 = vpop.f32.mrf.mxu0  ;;  %v772_v37 = vadd.f32 %v9433_v49, %v8728_v53 }
 0x3b4   : > { %v4025_v57 = vmul.f32 %v3993_v40, %v767_v29  ;;  %v3992_v58 = vadd.f32 %v3833_v50, %v3602_v6  ;;  %v3605_v10 = vadd.f32 %v5564_v60, %v3101_v24  ;;  %v9434_v29 = vld [vmem:[#allocation10_spill] sm:$0xff] }
 0x3b5   : > { %v3453_v61 = vpop.f32.mrf.mxu1  ;;  %v3843_v4 = vpop.f32.mrf.mxu0  ;;  %v787_v50 = vadd.f32 %v9434_v29, %v8728_v53 }
 0x3b6   : > { %v4024_v14 = vmul.f32 %v3992_v58, %v762_v8  ;;  %v3995_v59 = vadd.f32 %v5614_v39, %v3605_v10  ;;  %v3604_v1 = vadd.f32 %v3453_v61, %v3096_v25  ;;  %v9435_v39 = vld [vmem:[#allocation11_spill] sm:$0xff] }
 0x3b7   : > { %v5567_v38 = vpop.f32.mrf.mxu1  ;;  %v5617_v23 = vpop.f32.mrf.mxu0  ;;  %v782_v58 = vadd.f32 %v9435_v39, %v8728_v53 }
 0x3b8   : > { %v4027_v30 = vmul.f32 %v3995_v59, %v777_v62  ;;  %v3994_v40 = vadd.f32 %v3843_v4, %v3604_v1  ;;  %v3607_v24 = vadd.f32 %v5567_v38, %v3111_v26  ;;  %5689 = vmatprep.mubr.f32.mxu1 %v4024_v14  ;;  %v3116_v4 = vadd.f32 %v8626_v36, %v8624_v54  ;;  %v9437_v1 = vld [vmem:[#allocation13_spill] sm:$0xff] }
 0x3b9   : > { %v3463_v6 = vpop.f32.mrf.mxu1  ;;  %v3853_v56 = vpop.f32.mrf.mxu0  ;;  %5690 = vmatmul.mubr.f32.vlgmr.msra.gmra.mxu1 %v4025_v57  ;;  %v9436_v57 = vld [vmem:[#allocation12_spill] sm:$0xff]  ;;  %v792_v49 = vadd.f32 %v9437_v1, %v8728_v53 }
 0x3ba   : > { %v4026_v25 = vmul.f32 %v3994_v40, %v772_v37  ;;  %v3997_v8 = vadd.f32 %v5617_v23, %v3607_v24  ;;  %v3606_v60 = vadd.f32 %v3463_v6, %v3106_v51  ;;  %v797_v61 = vadd.f32 %v9436_v57, %v8728_v53  ;;  %v9441_v57 = vld [vmem:[#allocation17_spill] sm:$0xff] }
 0x3bb   : > { %v5570_v22 = vpop.f32.mrf.mxu1  ;;  %v5620_v18 = vpop.f32.mrf.mxu0  ;;  %v3126_v37 = vadd.f32 %v8634_v55, %v8630_v63 }
 0x3bc   : > { %v4029_v62 = vmul.f32 %v3997_v8, %v787_v50  ;;  %v3996_v10 = vadd.f32 %v3853_v56, %v3606_v60  ;;  %v3609_v34 = vadd.f32 %v5570_v22, %v3121_v21  ;;  %5692 = vmatprep.mubr.f32.mxu1 %v4026_v25  ;;  %v9439_v21 = vld [vmem:[#allocation15_spill] sm:$0xff]  ;;  %v3136_v8 = vadd.f32 %v8642_v11, %v8640_v20  ;;  %v9440_v22 = vld [vmem:[#allocation16_spill] sm:$0xff] }
 0x3bd   : > { %v3473_v26 = vpop.f32.mrf.mxu1  ;;  %v3863_v33 = vpop.f32.mrf.mxu0  ;;  %5693 = vmatmul.mubr.f32.gmra.mxu1 %v4027_v30  ;;  %v9438_v30 = vld [vmem:[#allocation14_spill] sm:$0xff]  ;;  %v802_v25 = vadd.f32 %v9439_v21, %v8728_v53  ;;  %v9445_v21 = vld [vmem:[#allocation21_spill] sm:$0xff] }
 0x3be   : > { %v4028_v23 = vmul.f32 %v3996_v10, %v782_v58  ;;  %v3999_v14 = vadd.f32 %v5620_v18, %v3609_v34  ;;  %v3608_v59 = vadd.f32 %v3473_v26, %v3116_v4  ;;  %v807_v24 = vadd.f32 %v9438_v30, %v8728_v53 }
 0x3bf   : > { %v5573_v54 = vpop.f32.mrf.mxu1  ;;  %v5623_v36 = vpop.f32.mrf.mxu0  ;;  %v817_v18 = vadd.f32 %v9440_v22, %v8728_v53  ;;  %v3146_v26 = vadd.f32 %v8650_v3, %v8648_v27 }
 0x3c0   : > { %v4031_v38 = vmul.f32 %v3999_v14, %v797_v61  ;;  %v3998_v51 = vadd.f32 %v3863_v33, %v3608_v59  ;;  %v3611_v40 = vadd.f32 %v5573_v54, %v3131_v31  ;;  %5695 = vmatprep.mubr.f32.mxu1 %v4028_v23  ;;  %v812_v61 = vadd.f32 %v9441_v57, %v8728_v53  ;;  %v9442_v14 = vld [vmem:[#allocation18_spill] sm:$0xff] }
 0x3c1   : > { %v3483_v29 = vpop.f32.mrf.mxu1  ;;  %v3873_v12 = vpop.f32.mrf.mxu0  ;;  %5696 = vmatmul.mubr.f32.gmra.mxu1 %v4029_v62  ;;  %v827_v59 = vadd.f32 %v9442_v14, %v8728_v53  ;;  %v9449_v14 = vld [vmem:[#allocation25_spill] sm:$0xff] }
 0x3c2   : > { %v4030_v50 = vmul.f32 %v3998_v51, %v792_v49  ;;  %v4001_v6 = vadd.f32 %v5623_v36, %v3611_v40  ;;  %v3610_v56 = vadd.f32 %v3483_v29, %v3126_v37  ;;  %v9443_v37 = vld [vmem:[#allocation19_spill] sm:$0xff]  ;;  %v3156_v51 = vadd.f32 %v8658_v9, %v8656_v47  ;;  %v9444_v29 = vld [vmem:[#allocation20_spill] sm:$0xff] }
 0x3c3   : > { %v5576_v63 = vpop.f32.mrf.mxu1  ;;  %v5626_v55 = vpop.f32.mrf.mxu0 }
 0x3c4   : > { %v4033_v60 = vmul.f32 %v4001_v6, %v807_v24  ;;  %v4000_v39 = vadd.f32 %v3873_v12, %v3610_v56  ;;  %v3613_v58 = vadd.f32 %v5576_v63, %v3141_v45  ;;  %5698 = vmatprep.mubr.f32.mxu1 %v4030_v50  ;;  %v837_v12 = vadd.f32 %v9444_v29, %v8728_v53  ;;  %v9454_v29 = vld [vmem:[#allocation45_spill] sm:$0xff] }
 0x3c5   : > { %v3493_v4 = vpop.f32.mrf.mxu1  ;;  %v3883_v7 = vpop.f32.mrf.mxu0  ;;  %5699 = vmatmul.mubr.f32.gmra.mxu1 %v4031_v38  ;;  %v822_v38 = vadd.f32 %v9443_v37, %v8728_v53  ;;  %v3166_v63 = vadd.f32 %v8666_v44, %v8664_v32 }
 0x3c6   : > { %v4032_v62 = vmul.f32 %v4000_v39, %v802_v25  ;;  %v4003_v10 = vadd.f32 %v5626_v55, %v3613_v58  ;;  %v3612_v34 = vadd.f32 %v3493_v4, %v3136_v8  ;;  %v832_v25 = vadd.f32 %v9445_v21, %v8728_v53  ;;  %v9446_v39 = vld [vmem:[#allocation22_spill] sm:$0xff]  ;;  %v9456_v21 = vld [vmem:[#allocation89_spill] sm:$0xff] }
 0x3c7   : > { %v5579_v20 = vpop.f32.mrf.mxu1  ;;  %v5629_v11 = vpop.f32.mrf.mxu0  ;;  %v847_v58 = vadd.f32 %v9446_v39, %v8728_v53 }
 0x3c8   : > { %v4035_v33 = vmul.f32 %v4003_v10, %v817_v18  ;;  %v4002_v31 = vadd.f32 %v3883_v7, %v3612_v34  ;;  %v3615_v23 = vadd.f32 %v5579_v20, %v3151_v0  ;;  %5701 = vmatprep.mubr.f32.mxu1 %v4032_v62  ;;  %v9447_v0 = vld [vmem:[#allocation23_spill] sm:$0xff]  ;;  %v3176_v10 = vadd.f32 %v8674_v46, %v8672_v13  ;;  %v9448_v20 = vld [vmem:[#allocation24_spill] sm:$0xff] }
 0x3c9   : > { %v3503_v1 = vpop.f32.mrf.mxu1  ;;  %v3893_v2 = vpop.f32.mrf.mxu0  ;;  %5702 = vmatmul.mubr.f32.gmra.mxu1 %v4033_v60  ;;  %v842_v62 = vadd.f32 %v9447_v0, %v8728_v53  ;;  %v9461_v0 = vld [vmem:[#allocation30_spill] sm:$0xff] }
 0x3ca   : > { %v4034_v49 = vmul.f32 %v4002_v31, %v812_v61  ;;  %v4005_v54 = vadd.f32 %v5629_v11, %v3615_v23  ;;  %v3614_v36 = vadd.f32 %v3503_v1, %v3146_v26  ;;  %v857_v11 = vadd.f32 %v9448_v20, %v8728_v53 }
 0x3cb   : > { %v5582_v27 = vpop.f32.mrf.mxu1  ;;  %v5632_v3 = vpop.f32.mrf.mxu0  ;;  %v3186_v1 = vadd.f32 %v8682_v28, %v8680_v43 }
 0x3cc   : > { %v4037_v40 = vmul.f32 %v4005_v54, %v827_v59  ;;  %v4004_v30 = vadd.f32 %v3893_v2, %v3614_v36  ;;  %v3617_v24 = vadd.f32 %v5582_v27, %v3161_v15  ;;  %5704 = vmatprep.mubr.f32.mxu1 %v4034_v49  ;;  %v852_v59 = vadd.f32 %v9449_v14, %v8728_v53  ;;  %v9450_v54 = vld [vmem:[#allocation26_spill] sm:$0xff] }
 0x3cd   : > { %v3513_v45 = vpop.f32.mrf.mxu1  ;;  %v3903_v17 = vpop.f32.mrf.mxu0  ;;  %5705 = vmatmul.mubr.f32.gmra.mxu1 %v4035_v33  ;;  %v867_v36 = vadd.f32 %v9450_v54, %v8728_v53  ;;  %v9468_v54 = vld [vmem:[#allocation61_spill] sm:$0xff] }
 0x3ce   : > { %v4036_v50 = vmul.f32 %v4004_v30, %v822_v38  ;;  %v4007_v6 = vadd.f32 %v5632_v3, %v3617_v24  ;;  %v3616_v56 = vadd.f32 %v3513_v45, %v3156_v51  ;;  %v3201_v38 = vadd.f32 %v9451_v16, %v8684_v5  ;;  %v9453_v24 = vld [vmem:[#allocation48_spill] sm:$0xff] }
 0x3cf   : > { %v5585_v47 = vpop.f32.mrf.mxu1  ;;  %v5635_v9 = vpop.f32.mrf.mxu0 }
 0x3d0   : > { %v4039_v55 = vmul.f32 %v4007_v6, %v837_v12  ;;  %v4006_v8 = vadd.f32 %v3903_v17, %v3616_v56  ;;  %v3619_v60 = vadd.f32 %v5585_v47, %v3171_v48  ;;  %5707 = vmatprep.mubr.f32.mxu1 %v4036_v50  ;;  %v3196_v12 = vadd.f32 %v9454_v29, %v9453_v24  ;;  %v9455_v50 = vld [vmem:[#allocation28_spill] sm:$0xff] }
 0x3d1   : > { %v3523_v22 = vpop.f32.mrf.mxu1  ;;  %v3913_v42 = vpop.f32.mrf.mxu0  ;;  %5708 = vmatmul.mubr.f32.gmra.mxu1 %v4037_v40  ;;  %v9452_v40 = vld [vmem:[#allocation27_spill] sm:$0xff]  ;;  %v877_v6 = vadd.f32 %v9455_v50, %v8728_v53 }
 0x3d2   : > { %v4038_v18 = vmul.f32 %v4006_v8, %v832_v25  ;;  %v4009_v4 = vadd.f32 %v5635_v9, %v3619_v60  ;;  %v3618_v7 = vadd.f32 %v3523_v22, %v3166_v63  ;;  %v862_v30 = vadd.f32 %v9452_v40, %v8728_v53  ;;  %v9457_v25 = vld [vmem:[#allocation87_spill] sm:$0xff]  ;;  %v9458_v8 = vld [vmem:[#allocation29_spill] sm:$0xff]  ;;  %v9459_v22 = vld [vmem:[#allocation56_spill] sm:$0xff] }
 0x3d3   : > { %v5588_v32 = vpop.f32.mrf.mxu1  ;;  %v5638_v44 = vpop.f32.mrf.mxu0  ;;  %v3211_v47 = vadd.f32 %v9457_v25, %v9456_v21  ;;  %v872_v60 = vadd.f32 %v9458_v8, %v8728_v53 }
 0x3d4   : > { %v4041_v34 = vmul.f32 %v4009_v4, %v847_v58  ;;  %v4008_v57 = vadd.f32 %v3913_v42, %v3618_v7  ;;  %v3621_v61 = vadd.f32 %v5588_v32, %v3181_v52  ;;  %5710 = vmatprep.mubr.f32.mxu1 %v4038_v18  ;;  %v9460_v42 = vld [vmem:[#allocation62_spill] sm:$0xff] }
 0x3d5   : > { %v3533_v26 = vpop.f32.mrf.mxu1  ;;  %v3923_v19 = vpop.f32.mrf.mxu0  ;;  %5711 = vmatmul.mubr.f32.gmra.mxu1 %v4039_v55  ;;  %v3206_v52 = vadd.f32 %v9460_v42, %v9459_v22 }
 0x3d6   : > { %v4040_v33 = vmul.f32 %v4008_v57, %v842_v62  ;;  %v4011_v31 = vadd.f32 %v5638_v44, %v3621_v61  ;;  %v3620_v23 = vadd.f32 %v3533_v26, %v3176_v10  ;;  %v887_v62 = vadd.f32 %v9461_v0, %v8728_v53  ;;  %v9462_v10 = vld [vmem:[#allocation85_spill] sm:$0xff]  ;;  %v9464_v26 = vld [vmem:[#allocation31_spill] sm:$0xff] }
 0x3d7   : > { %v5591_v13 = vpop.f32.mrf.mxu1  ;;  %v5641_v46 = vpop.f32.mrf.mxu0 }
 0x3d8   : > { %v4043_v2 = vmul.f32 %v4011_v31, %v857_v11  ;;  %v4010_v15 = vadd.f32 %v3923_v19, %v3620_v23  ;;  %v3623_v49 = vadd.f32 %v5591_v13, %v3191_v41  ;;  %5713 = vmatprep.mubr.f32.mxu1 %v4040_v33  ;;  %v882_v19 = vadd.f32 %v9464_v26, %v8728_v53  ;;  %v9465_v31 = vld [vmem:[#allocation64_spill] sm:$0xff] }
 0x3d9   : > { %v3543_v37 = vpop.f32.mrf.mxu1  ;;  %v3933_v35 = vpop.f32.mrf.mxu0  ;;  %5714 = vmatmul.mubr.f32.gmra.mxu1 %v4041_v34  ;;  %v9463_v34 = vld [vmem:[#allocation98_spill] sm:$0xff]  ;;  %v9466_v23 = vld [vmem:[#allocation96_spill] sm:$0xff] }
 0x3da   : > { %v4042_v27 = vmul.f32 %v4010_v15, %v852_v59  ;;  %v4013_v3 = vadd.f32 %v5641_v46, %v3623_v49  ;;  %v3622_v51 = vadd.f32 %v3543_v37, %v3186_v1  ;;  %v3221_v57 = vadd.f32 %v9463_v34, %v9462_v10  ;;  %v9467_v1 = vld [vmem:[#allocation32_spill] sm:$0xff]  ;;  %v9480_v10 = vld [vmem:[#allocation37_spill] sm:$0xff] }
 0x3db   : > { %v5594_v43 = vpop.f32.mrf.mxu1  ;;  %v5644_v28 = vpop.f32.mrf.mxu0  ;;  %v3216_v14 = vadd.f32 %v9466_v23, %v9465_v31  ;;  %v912_v34 = vadd.f32 %v9480_v10, %v8728_v53 }
 0x3dc   : > { %v4045_v45 = vmul.f32 %v4013_v3, %v867_v36  ;;  %v4012_v17 = vadd.f32 %v3933_v35, %v3622_v51  ;;  %v3625_v48 = vadd.f32 %v5594_v43, %v3201_v38  ;;  %5716 = vmatprep.mubr.f32.mxu1 %v4042_v27  ;;  %v9469_v36 = vld [vmem:[#allocation92_spill] sm:$0xff]  ;;  %v9470_v27 = vld [vmem:[#allocation33_spill] sm:$0xff]  ;;  %v9472_v43 = vld [vmem:[#allocation107_spill] sm:$0xff] }
 0x3dd   : > { %v3553_v56 = vpop.f32.mrf.mxu1  ;;  %v3943_v5 = vpop.f32.mrf.mxu0  ;;  %5717 = vmatmul.mubr.f32.gmra.mxu1 %v4043_v2  ;;  %v897_v2 = vadd.f32 %v9467_v1, %v8728_v53  ;;  %v3231_v37 = vadd.f32 %v9469_v36, %v9468_v54  ;;  %v892_v3 = vadd.f32 %v9470_v27, %v8728_v53 }
 0x3de   : > { %v4044_v9 = vmul.f32 %v4012_v17, %v862_v30  ;;  %v4015_v63 = vadd.f32 %v5644_v28, %v3625_v48  ;;  %v3624_v55 = vadd.f32 %v3553_v56, %v3196_v12  ;;  %v9471_v30 = vld [vmem:[#allocation101_spill] sm:$0xff]  ;;  %v9475_v56 = vld [vmem:[#allocation51_spill] sm:$0xff] }
 0x3df   : > { %v5597_v39 = vpop.f32.mrf.mxu1  ;;  %v5647_v58 = vpop.f32.mrf.mxu0  ;;  %v3226_v28 = vadd.f32 %v9472_v43, %v9471_v30 }
 0x3e0   : > { %v4047_v18 = vmul.f32 %v4015_v63, %v877_v6  ;;  %v4014_v4 = vadd.f32 %v3943_v5, %v3624_v55  ;;  %v3627_v7 = vadd.f32 %v5597_v39, %v3211_v47  ;;  %5719 = vmatprep.mubr.f32.mxu1 %v4044_v9  ;;  %v9474_v6 = vld [vmem:[#allocation113_spill] sm:$0xff]  ;;  %v9476_v9 = vld [vmem:[#allocation35_spill] sm:$0xff] }
 0x3e1   : > { %v3563_v32 = vpop.f32.mrf.mxu1  ;;  %v3953_v44 = vpop.f32.mrf.mxu0  ;;  %5720 = vmatmul.mubr.f32.gmra.mxu1 %v4045_v45  ;;  %v9473_v45 = vld [vmem:[#allocation34_spill] sm:$0xff]  ;;  %v3241_v5 = vadd.f32 %v9475_v56, %v9474_v6  ;;  %v902_v63 = vadd.f32 %v9476_v9, %v8728_v53  ;;  %v9478_v39 = vld [vmem:[#allocation71_spill] sm:$0xff] }
 0x3e2   : > { %v4046_v61 = vmul.f32 %v4014_v4, %v872_v60  ;;  %v4017_v20 = vadd.f32 %v5647_v58, %v3627_v7  ;;  %v3626_v11 = vadd.f32 %v3563_v32, %v3206_v52  ;;  %v907_v17 = vadd.f32 %v9473_v45, %v8728_v53  ;;  %v9477_v60 = vld [vmem:[#allocation50_spill] sm:$0xff]  ;;  %v9479_v4 = vld [vmem:[#allocation36_spill] sm:$0xff] }
 0x3e3   : > { %v5600_v41 = vpop.f32.mrf.mxu1  ;;  %v5650_v33 = vpop.f32.mrf.mxu0  ;;  %v3236_v58 = vadd.f32 %v9478_v39, %v9477_v60  ;;  %v917_v7 = vadd.f32 %v9479_v4, %v8728_v53 }
 0x3e4   : > { %v4049_v59 = vmul.f32 %v4017_v20, %v887_v62  ;;  %v4016_v13 = vadd.f32 %v3953_v44, %v3626_v11  ;;  %v3629_v46 = vadd.f32 %v5600_v41, %v3221_v57  ;;  %5722 = vmatprep.mubr.f32.mxu1 %v4046_v61  ;;  %v8864_v11 = vld [vmem:[%s8989_s6] ss:$0 sm:$0xff] }
 0x3e5   : > { %v3573_v15 = vpop.f32.mrf.mxu1  ;;  %v3963_v49 = vpop.f32.mrf.mxu0  ;;  %5723 = vmatmul.mubr.f32.gmra.mxu1 %v4047_v18 }
 0x3e6   : > { %v4048_v35 = vmul.f32 %v4016_v13, %v882_v19  ;;  %v4019_v16 = vadd.f32 %v5650_v33, %v3629_v46  ;;  %v3628_v38 = vadd.f32 %v3573_v15, %v3216_v14 }
 0x3e7   : > { %v5603_v51 = vpop.f32.mrf.mxu1  ;;  %v5653_v40 = vpop.f32.mrf.mxu0 }
 0x3e8   : > { %v4051_v24 = vmul.f32 %v4019_v16, %v897_v2  ;;  %v4018_v29 = vadd.f32 %v3963_v49, %v3628_v38  ;;  %v3631_v12 = vadd.f32 %v5603_v51, %v3231_v37  ;;  %5725 = vmatprep.mubr.f32.mxu1 %v4048_v35 }
 0x3e9   : > { %v3583_v48 = vpop.f32.mrf.mxu1  ;;  %v3973_v50 = vpop.f32.mrf.mxu0  ;;  %5726 = vmatmul.mubr.f32.gmra.mxu1 %v4049_v59 }
 0x3ea   : > { %v4050_v21 = vmul.f32 %v4018_v29, %v892_v3  ;;  %v4021_v25 = vadd.f32 %v5653_v40, %v3631_v12  ;;  %v3630_v47 = vadd.f32 %v3583_v48, %v3226_v28 }
 0x3eb   : > { %v5606_v55 = vpop.f32.mrf.mxu1  ;;  %v5656_v8 = vpop.f32.mrf.mxu0 }
 0x3ec   : > { %v4053_v22 = vmul.f32 %v4021_v25, %v907_v17  ;;  %v4020_v42 = vadd.f32 %v3973_v50, %v3630_v47  ;;  %v3633_v52 = vadd.f32 %v5606_v55, %v3241_v5  ;;  %5728 = vmatprep.mubr.f32.mxu1 %v4050_v21 }
 0x3ed   : > { %v3593_v18 = vpop.f32.mrf.mxu1  ;;  %5729 = vmatmul.mubr.f32.gmra.mxu1 %v4051_v24  ;;  %v3983_v44 = vpop.f32.mrf.mxu0 }
 0x3ee   : > { %v4052_v0 = vmul.f32 %v4020_v42, %v902_v63  ;;  %v4023_v62 = vadd.f32 %v5656_v8, %v3633_v52  ;;  %v3632_v32 = vadd.f32 %v3593_v18, %v3236_v58 }
 0x3f0   : > { %v4055_v57 = vmul.f32 %v4023_v62, %v917_v7  ;;  %v4022_v61 = vadd.f32 %v3983_v44, %v3632_v32  ;;  %5731 = vmatprep.mubr.f32.mxu1 %v4052_v0 }
 0x3f1   : > { %5732 = vmatmul.mubr.f32.gmra.mxu1 %v4053_v22 }
 0x3f2   : > { %v4054_v20 = vmul.f32 %v4022_v61, %v912_v34 }
 0x3f4   : > { %5734 = vmatprep.mubr.f32.mxu1 %v4054_v20 }
 0x3f5   : > { %5735 = vmatmul.mubr.f32.gmra.mxu1 %v4055_v57 }
 0x479   : > { %v5691_v26 = vpop.f32.mrf.mxu1 }
 0x47a   : > { %v4151_v19 = vadd.f32 %v5691_v26, %v8864_v11 }
 0x47b   : > { %v4145_v41 = vpop.f32.mrf.mxu1 }
 0x47c   : > { %4305 = vst [vmem:[%s8867_s9 + $0x8] sm:$0xff] %v4151_v19  ;;  %v4146_v53 = vadd.f32 %v8864_v11, %v4145_v41 }
 0x47d   : > { %v5694_v33 = vpop.f32.mrf.mxu1 }
 0x47e   : > { %4304 = vst [vmem:[%s8867_s9] sm:$0xff] %v4146_v53  ;;  %v4161_v31 = vadd.f32 %v5694_v33, %v8864_v11 }
 0x47f   : > { %v4155_v23 = vpop.f32.mrf.mxu1 }
 0x480   : > { %4307 = vst [vmem:[%s8867_s9 + $0x18] sm:$0xff] %v4161_v31  ;;  %v4156_v14 = vadd.f32 %v8864_v11, %v4155_v23 }
 0x481   : > { %v5697_v59 = vpop.f32.mrf.mxu1 }
 0x482   : > { %4306 = vst [vmem:[%s8867_s9 + $0x10] sm:$0xff] %v4156_v14  ;;  %v4171_v13 = vadd.f32 %v5697_v59, %v8864_v11 }
 0x483   : > { %v4165_v46 = vpop.f32.mrf.mxu1 }
 0x484   : > { %4309 = vst [vmem:[%s8867_s9 + $0x28] sm:$0xff] %v4171_v13  ;;  %v4166_v1 = vadd.f32 %v8864_v11, %v4165_v46 }
 0x485   : > { %v5700_v2 = vpop.f32.mrf.mxu1 }
 0x486   : > { %4308 = vst [vmem:[%s8867_s9 + $0x20] sm:$0xff] %v4166_v1  ;;  %v4181_v15 = vadd.f32 %v5700_v2, %v8864_v11 }
 0x487   : > { %v4175_v49 = vpop.f32.mrf.mxu1 }
 0x488   : > { %4311 = vst [vmem:[%s8867_s9 + $0x38] sm:$0xff] %v4181_v15  ;;  %v4176_v54 = vadd.f32 %v8864_v11, %v4175_v49 }
 0x489   : > { %v5703_v36 = vpop.f32.mrf.mxu1 }
 0x48a   : > { %4310 = vst [vmem:[%s8867_s9 + $0x30] sm:$0xff] %v4176_v54  ;;  %v4191_v37 = vadd.f32 %v5703_v36, %v8864_v11 }
 0x48b   : > { %v4185_v35 = vpop.f32.mrf.mxu1 }
 0x48c   : > { %4313 = vst [vmem:[%s8867_s9 + $0x48] sm:$0xff] %v4191_v37  ;;  %v4186_v16 = vadd.f32 %v8864_v11, %v4185_v35 }
 0x48d   : > { %v5706_v38 = vpop.f32.mrf.mxu1 }
 0x48e   : > { %4312 = vst [vmem:[%s8867_s9 + $0x40] sm:$0xff] %v4186_v16  ;;  %v4201_v27 = vadd.f32 %v5706_v38, %v8864_v11 }
 0x48f   : > { %v4195_v3 = vpop.f32.mrf.mxu1 }
 0x490   : > { %4315 = vst [vmem:[%s8867_s9 + $0x58] sm:$0xff] %v4201_v27  ;;  %v4196_v51 = vadd.f32 %v8864_v11, %v4195_v3 }
 0x491   : > { %v5709_v40 = vpop.f32.mrf.mxu1 }
 0x492   : > { %4314 = vst [vmem:[%s8867_s9 + $0x50] sm:$0xff] %v4196_v51  ;;  %v4211_v30 = vadd.f32 %v5709_v40, %v8864_v11 }
 0x493   : > { %v4205_v43 = vpop.f32.mrf.mxu1 }
 0x494   : > { %4317 = vst [vmem:[%s8867_s9 + $0x68] sm:$0xff] %v4211_v30  ;;  %v4206_v28 = vadd.f32 %v8864_v11, %v4205_v43 }
 0x495   : > { %v5712_v24 = vpop.f32.mrf.mxu1 }
 0x496   : > { %4316 = vst [vmem:[%s8867_s9 + $0x60] sm:$0xff] %v4206_v28  ;;  %v4221_v29 = vadd.f32 %v5712_v24, %v8864_v11 }
 0x497   : > { %v4215_v12 = vpop.f32.mrf.mxu1 }
 0x498   : > { %4319 = vst [vmem:[%s8867_s9 + $0x78] sm:$0xff] %v4221_v29  ;;  %v4216_v45 = vadd.f32 %v8864_v11, %v4215_v12 }
 0x499   : > { %v5715_v17 = vpop.f32.mrf.mxu1 }
 0x49a   : > { %4318 = vst [vmem:[%s8867_s9 + $0x70] sm:$0xff] %v4216_v45  ;;  %v4231_v48 = vadd.f32 %v5715_v17, %v8864_v11 }
 0x49b   : > { %v4225_v50 = vpop.f32.mrf.mxu1 }
 0x49c   : > { %4321 = vst [vmem:[%s8867_s9 + $0x88] sm:$0xff] %v4231_v48  ;;  %v4226_v6 = vadd.f32 %v8864_v11, %v4225_v50 }
 0x49d   : > { %v5718_v56 = vpop.f32.mrf.mxu1 }
 0x49e   : > { %4320 = vst [vmem:[%s8867_s9 + $0x80] sm:$0xff] %v4226_v6  ;;  %v4241_v5 = vadd.f32 %v5718_v56, %v8864_v11 }
 0x49f   : > { %v4235_v21 = vpop.f32.mrf.mxu1 }
 0x4a0   : > { %4323 = vst [vmem:[%s8867_s9 + $0x98] sm:$0xff] %v4241_v5  ;;  %v4236_v25 = vadd.f32 %v8864_v11, %v4235_v21 }
 0x4a1   : > { %v5721_v47 = vpop.f32.mrf.mxu1 }
 0x4a2   : > { %4322 = vst [vmem:[%s8867_s9 + $0x90] sm:$0xff] %v4236_v25  ;;  %v4251_v9 = vadd.f32 %v5721_v47, %v8864_v11 }
 0x4a3   : > { %v4245_v63 = vpop.f32.mrf.mxu1 }
 0x4a4   : > { %4325 = vst [vmem:[%s8867_s9 + $0xa8] sm:$0xff] %v4251_v9  ;;  %v4246_v55 = vadd.f32 %v8864_v11, %v4245_v63 }
 0x4a5   : > { %v5724_v8 = vpop.f32.mrf.mxu1 }
 0x4a6   : > { %4324 = vst [vmem:[%s8867_s9 + $0xa0] sm:$0xff] %v4246_v55  ;;  %v4261_v60 = vadd.f32 %v5724_v8, %v8864_v11 }
 0x4a7   : > { %v4255_v39 = vpop.f32.mrf.mxu1 }
 0x4a8   : > { %4327 = vst [vmem:[%s8867_s9 + $0xb8] sm:$0xff] %v4261_v60  ;;  %v4256_v58 = vadd.f32 %v8864_v11, %v4255_v39 }
 0x4a9   : > { %v5727_v22 = vpop.f32.mrf.mxu1 }
 0x4aa   : > { %4326 = vst [vmem:[%s8867_s9 + $0xb0] sm:$0xff] %v4256_v58  ;;  %v4271_v42 = vadd.f32 %v5727_v22, %v8864_v11 }
 0x4ab   : > { %v4265_v52 = vpop.f32.mrf.mxu1 }
 0x4ac   : > { %4329 = vst [vmem:[%s8867_s9 + $0xc8] sm:$0xff] %v4271_v42  ;;  %v4266_v18 = vadd.f32 %v8864_v11, %v4265_v52 }
 0x4ad   : > { %v5730_v4 = vpop.f32.mrf.mxu1 }
 0x4ae   : > { %4328 = vst [vmem:[%s8867_s9 + $0xc0] sm:$0xff] %v4266_v18  ;;  %v4281_v7 = vadd.f32 %v5730_v4, %v8864_v11 }
 0x4af   : > { %v4275_v0 = vpop.f32.mrf.mxu1 }
 0x4b0   : > { %4331 = vst [vmem:[%s8867_s9 + $0xd8] sm:$0xff] %v4281_v7  ;;  %v4276_v62 = vadd.f32 %v8864_v11, %v4275_v0 }
 0x4b1   : > { %v5733_v32 = vpop.f32.mrf.mxu1 }
 0x4b2   : > { %4330 = vst [vmem:[%s8867_s9 + $0xd0] sm:$0xff] %v4276_v62  ;;  %v4291_v44 = vadd.f32 %v5733_v32, %v8864_v11 }
 0x4b3   : > { %v4285_v10 = vpop.f32.mrf.mxu1 }
 0x4b4   : > { %4333 = vst [vmem:[%s8867_s9 + $0xe8] sm:$0xff] %v4291_v44  ;;  %v4286_v34 = vadd.f32 %v8864_v11, %v4285_v10 }
 0x4b5   : > { %v5736_v57 = vpop.f32.mrf.mxu1 }
 0x4b6   : > { %4332 = vst [vmem:[%s8867_s9 + $0xe0] sm:$0xff] %v4286_v34  ;;  %v4301_v61 = vadd.f32 %v5736_v57, %v8864_v11 }
 0x4b7   : > { %v4295_v20 = vpop.f32.mrf.mxu1 }
 0x4b8   : > { %4335 = vst [vmem:[%s8867_s9 + $0xf8] sm:$0xff] %v4301_v61  ;;  %v4296_v26 = vadd.f32 %v8864_v11, %v4295_v20 }
 0x4ba   : > { %4334 = vst [vmem:[%s8867_s9 + $0xf0] sm:$0xff] %v4296_v26 }
 0x4bb   : > { %6113 = shalt.err (!%p6110_p3)
}
 0x4bc   : > { %s6114_s29 = scalar_lea.hbm %s8934_s17, 4096  ;;  %s6118_s8 = scalar_lea.hbm %s8990_s7, 16384 }
 0x4bd   : > { %p6115_p4 = scmp.ne.s32.totalorder %s8934_s17, %s6114_s29  ;;  %p6119_p9 = scmp.lt.s32.totalorder %s8934_s17, %s8990_s7 }
 0x4be   : > { %p6120_p10 = scmp.lt.s32.totalorder %s6118_s8, %s6114_s29 }
 0x4bf   : > { %p6116_p7 = pnand %p6115_p4, %p6244_p5 }
 0x4c0   : > { %p6121_p11 = por %p6120_p10, %p6119_p9 }
 0x4c1   : > { %p6117_p8 = pneg %p6116_p7 }
 0x4c3   : > { %p6122_p12 = pnand %p6121_p11, %p6117_p8 }
 0x4c5   : > { %6125 = shalt.err (!%p6122_p12)
}
 0x4c6   : > { %s6164_s15 = smov 128   ;;  %s6165_s16 = smov 8  }
 0x4c7   : > { %5737 = dma.vmem_to_hbm [thread:$0]  (%p6244_p5), %s8936_s14, 4096, %s8934_s17, %s8943_s28, %s6164_s15, %s6164_s15, %s6165_s16  }
 0x4c8 PF: > { %p5743_p13 = scmp.ge.s32.totalorder %s6160_s27, 2  ;;  %s4365_s18 = sand.u32 1, %s6148_s24  }
 0x4c9   : > { %s4366_s20 = scalar_lea.sflag [#allocation3], %s4365_s18 }
 0x4ca   : > { %p5740_p0 = pnand %p5743_p13, %p6248_p6 }
 0x4cc   : > { %p5741_p1 = pneg %p5740_p0 }
 0x4ce   : > { %6143 = dma.done.wait (%p5741_p1), %s4366_s20, 4096  }
 0x4cf   : > { %6145 = vsyncadd (%p5741_p1), %s4366_s20, 4294963200  ;;  %p17_p2 = scmp.ge.s32.totalorder %s6231_s30, 6   ;;  %s9481_s24 = smov %s6152_s25 }
 0x4d0   : > { %s9482_s25 = smov %s6156_s26  ;;  %s9483_s26 = smov %s6242_s10 }
 0x4d1   : > { %s9484_s27 = smov %s6231_s30  ;;  %19 = sbr.rel (!%p17_p2) target bundleno = 3 (0x3), region = 89 }
 0x4d6   :  { %4371 = vsyncpa [#allocation3], 1 }
 0x4d7   :  { %4373 = vsyncpa [#allocation3 + $0x1], 1 }

</bundles_post_ra>
